<compile_context>
chip_gen: v7x
topology: tpu7x:2x2x1
jax: 0.10.0
libtpu: 0.0.40
codegen_flags: <defaults>
</compile_context>

<pallas_src>
import jax
import jax.numpy as jnp
from jax import lax
from jax.experimental import pallas as pl
from jax.experimental.pallas import tpu as pltpu


def _add_conv1x1_kernel(w_ref, a_ref, b_ref, o_ref):
    # Fused VPU add + MXU matmul:  o = W_block @ (a + b)
    # w_ref: (TN, Cin) row-slice of the weight; a/b: (Cin, M) activations.
    s = a_ref[...] + b_ref[...]
    o_ref[...] = lax.dot_general(
        w_ref[...],
        s,
        dimension_numbers=(((1,), (0,)), ((), ())),  # canonical (Cout,Cin)@(Cin,M)
        preferred_element_type=jnp.float32,
    ).astype(o_ref.dtype)


def _pick_tn(cout):
    """Cout tile size: whole weight on 1-TC chips, 2 balanced tiles on v7x."""
    try:
        kind = jax.devices()[0].device_kind.lower()
    except Exception:
        kind = ""
    if "v7" in kind:
        half = -(-cout // 2)              # ceil(cout / 2)
        return ((half + 7) // 8) * 8      # sublane-align (multiple of 8)
    return cout                           # grid=(1,): no per-step overhead


def add_conv2d_1x1(x560, x546, weight, *, tn=None):
    """x560, x546: (N, Cin, H, W) f32; weight: (Cout, Cin, 1, 1) f32.

    Returns (N, Cout, H, W) f32 == conv2d(x560 + x546, weight, stride=1, bias=None).
    """
    n, cin, h, w = x560.shape
    cout = weight.shape[0]
    m = h * w

    if tn is None:
        tn = _pick_tn(cout)
    assert tn % 8 == 0, "tn must be sublane-aligned (multiple of 8)"

    wm = weight.reshape(cout, cin)

    if n == 1:
        # No transpose needed: NCHW with N=1 is already (Cin, H*W) contiguous.
        a = x560.reshape(cin, m)
        b = x546.reshape(cin, m)
    else:
        a = jnp.transpose(x560, (1, 0, 2, 3)).reshape(cin, n * m)
        b = jnp.transpose(x546, (1, 0, 2, 3)).reshape(cin, n * m)
        m = n * m

    grid = (pl.cdiv(cout, tn),)

    cost = pl.CostEstimate(
        flops=2 * m * cin * cout,
        transcendentals=0,
        bytes_accessed=4 * (2 * m * cin + cin * cout + cout * m),
    )

    out_mat = pl.pallas_call(
        _add_conv1x1_kernel,
        out_shape=jax.ShapeDtypeStruct((cout, m), jnp.float32),
        grid=grid,
        in_specs=[
            # Stream the weight in (TN, Cin) row blocks (whole weight when grid=1).
            pl.BlockSpec((tn, cin), lambda j: (j, 0)),
            # Tiny activations: full blocks, resident across the grid.
            pl.BlockSpec((cin, m), lambda j: (0, 0)),
            pl.BlockSpec((cin, m), lambda j: (0, 0)),
        ],
        out_specs=pl.BlockSpec((tn, m), lambda j: (j, 0)),
        compiler_params=pltpu.CompilerParams(
            dimension_semantics=("parallel",),  # independent Cout tiles (v7x megacore)
        ),
        cost_estimate=cost,
    )(wm, a, b)

    if n == 1:
        return out_mat.reshape(1, cout, h, w)
    return jnp.transpose(out_mat.reshape(cout, n, h, w), (1, 0, 2, 3))


if __name__ == "__main__":
    # Shapes from the module: inputs (1, 344, 7, 7), weight (2064, 344, 1, 1).
    N, CIN, H, W = 1, 344, 7, 7
    COUT = 2064

    key = jax.random.PRNGKey(0)
    k1, k2, k3 = jax.random.split(key, 3)
    x560 = jax.random.normal(k1, (N, CIN, H, W), dtype=jnp.float32)
    x546 = jax.random.normal(k2, (N, CIN, H, W), dtype=jnp.float32)
    # Deterministic weight init (kaiming-uniform-like scale for a 1x1 conv).
    bound = 1.0 / jnp.sqrt(jnp.float32(CIN))
    weight = jax.random.uniform(
        k3, (COUT, CIN, 1, 1), dtype=jnp.float32, minval=-bound, maxval=bound
    )

    out = add_conv2d_1x1(x560, x546, weight)
    out = jax.block_until_ready(out)

    # Reference in plain JAX: (x560 + x546) 1x1 conv == channel matmul.
    s = x560 + x546
    ref = jnp.einsum("nchw,oc->nohw", s, weight.reshape(COUT, CIN))
    assert out.shape == (N, COUT, H, W), out.shape
    assert jnp.allclose(out, ref, atol=1e-3, rtol=1e-3)
    print("KERNEL_OK")
</pallas_src>

<mosaic_0001>
module attributes {stable_mosaic.version = 11 : i64} {
  func.func @_add_conv1x1_kernel(%arg0: i32, %arg1: memref<2064x344xf32, #tpu.memory_space<vmem>>, %arg2: memref<344x49xf32, #tpu.memory_space<vmem>>, %arg3: memref<344x49xf32, #tpu.memory_space<vmem>>, %arg4: memref<2064x49xf32, #tpu.memory_space<vmem>>) attributes {dimension_semantics = [#tpu.dimension_semantics<parallel>], iteration_bounds = array<i64: 1>, scalar_prefetch = 0 : i64, scratch_operands = 0 : i64, tpu.core_type = #tpu.core_type<tc>, window_params = [{transform_indices = @transform_0, window_bounds = array<i64: 2064, 344>}, {pipeline_mode = #tpu.pipeline_mode<synchronous>, transform_indices = @transform_1, window_bounds = array<i64: 344, 49>}, {pipeline_mode = #tpu.pipeline_mode<synchronous>, transform_indices = @transform_2, window_bounds = array<i64: 344, 49>}, {transform_indices = @transform_3, window_bounds = array<i64: 2064, 49>}]} {
    %c0 = arith.constant 0 : index
    %c0_0 = arith.constant 0 : index
    %0 = vector.load %arg2[%c0, %c0_0] : memref<344x49xf32, #tpu.memory_space<vmem>>, vector<344x49xf32>
    %c0_1 = arith.constant 0 : index
    %c0_2 = arith.constant 0 : index
    %1 = vector.load %arg3[%c0_1, %c0_2] : memref<344x49xf32, #tpu.memory_space<vmem>>, vector<344x49xf32>
    %2 = arith.addf %0, %1 : vector<344x49xf32>
    %c0_3 = arith.constant 0 : index
    %c0_4 = arith.constant 0 : index
    %3 = vector.load %arg1[%c0_3, %c0_4] : memref<2064x344xf32, #tpu.memory_space<vmem>>, vector<2064x344xf32>
    %cst = arith.constant dense<0.000000e+00> : vector<2064x49xf32>
    %4 = tpu.matmul %3, %2, %cst {dimension_numbers = #tpu.dot_dimension_numbers<[1], [0], [0], [1], [0, 0, 1, 1], [], []>} : vector<2064x344xf32>, vector<344x49xf32>, vector<2064x49xf32> -> vector<2064x49xf32>
    %c0_5 = arith.constant 0 : index
    %c0_6 = arith.constant 0 : index
    %5 = vector.load %arg4[%c0_5, %c0_6] : memref<2064x49xf32, #tpu.memory_space<vmem>>, vector<2064x49xf32>
    tpu.vector_store %arg4[%c0_5, %c0_6], %4 {strides = array<i32>} : memref<2064x49xf32, #tpu.memory_space<vmem>>, vector<2064x49xf32>,
    return
  }
  func.func @transform_0(%arg0: i32) -> (i32, i32) {
    %c0_i32 = arith.constant 0 : i32
    %c0_i32_0 = arith.constant 0 : i32
    return %arg0, %c0_i32 : i32, i32
  }
  func.func @transform_1(%arg0: i32) -> (i32, i32) {
    %c0_i32 = arith.constant 0 : i32
    %c0_i32_0 = arith.constant 0 : i32
    %c0_i32_1 = arith.constant 0 : i32
    return %c0_i32, %c0_i32_0 : i32, i32
  }
  func.func @transform_2(%arg0: i32) -> (i32, i32) {
    %c0_i32 = arith.constant 0 : i32
    %c0_i32_0 = arith.constant 0 : i32
    %c0_i32_1 = arith.constant 0 : i32
    return %c0_i32, %c0_i32_0 : i32, i32
  }
  func.func @transform_3(%arg0: i32) -> (i32, i32) {
    %c0_i32 = arith.constant 0 : i32
    %c0_i32_0 = arith.constant 0 : i32
    return %arg0, %c0_i32 : i32, i32
  }
}

</mosaic_0001>

<bundles_post_ra>
// kernel: tpu_custom_call.1
= control target key start
LH: loop header
LB: loop body
LE: loop exit
PB: predicated region body
PF: predicated region fallthrough
CT: control target
= control target key end

     0   :  { %v5702_v0 = vmov 0.0|0.0   ;;  %vm917_vm0 = vcmask 719872   ;;  %vm4402_vm1 = vcmask 400384   ;;  %s10351_s1 = inlined_call_operand.vmem [shape: f32[344,49], index: 1, kind: input, shape index: {}]   ;;  %s10352_s2 = inlined_call_operand.vmem [shape: f32[344,49], index: 2, kind: input, shape index: {}]   ;;  %s10353_s0 = inlined_call_operand.vmem [shape: f32[2064,344], index: 0, kind: input, shape index: {}]   ;;  %s10354_s3 = inlined_call_operand.vmem [shape: f32[2064,49], index: 3, kind: output, shape index: {}]  }
   0x1   :  { %5601 = vmatprep.subr.bf16.mxu0 %v5702_v0  ;;  %5669 = vmatprep.subr.bf16.mxu1 %v5702_v0  ;;  %v14_v1 = vld [vmem:[%s10351_s1] sm:$0xff]  ;;  %v15_v2 = vld [vmem:[%s10351_s1 + $0x8] sm:$0xff]  ;;  %v16_v6 = vld [vmem:[%s10351_s1 + $0x10] sm:$0xff] }
   0x2   :  { %v57_v3 = vld [vmem:[%s10352_s2] sm:$0xff]  ;;  %v58_v4 = vld [vmem:[%s10352_s2 + $0x8] sm:$0xff]  ;;  %v17_v7 = vld [vmem:[%s10351_s1 + $0x18] sm:$0xff] }
   0x3   :  { %v100_v5 = vadd.f32 %v57_v3, %v14_v1  ;;  %v101_v8 = vadd.f32 %v58_v4, %v15_v2  ;;  %v59_v9 = vld [vmem:[%s10352_s2 + $0x10] sm:$0xff]  ;;  %v60_v10 = vld [vmem:[%s10352_s2 + $0x18] sm:$0xff]  ;;  %v18_v11 = vld [vmem:[%s10351_s1 + $0x20] sm:$0xff] }
   0x4   :  { %v102_v12 = vadd.f32 %v59_v9, %v16_v6  ;;  %v103_v13 = vadd.f32 %v60_v10, %v17_v7  ;;  %v19_v14 = vld [vmem:[%s10351_s1 + $0x28] sm:$0xff]  ;;  %v61_v15 = vld [vmem:[%s10352_s2 + $0x20] sm:$0xff]  ;;  %v20_v21 = vld [vmem:[%s10351_s1 + $0x30] sm:$0xff] }
   0x5   :  { %v62_v16 = vld [vmem:[%s10352_s2 + $0x28] sm:$0xff]  ;;  %v5602_v17 = vpack.c.bf16 %v101_v8, %v100_v5  ;;  %v104_v19 = vadd.f32 %v61_v15, %v18_v11  ;;  %v21_v22 = vld [vmem:[%s10351_s1 + $0x38] sm:$0xff]  ;;  %v63_v23 = vld [vmem:[%s10352_s2 + $0x30] sm:$0xff] }
   0x6   :  { %v5605_v18 = vpack.c.bf16 %v103_v13, %v102_v12  ;;  %v105_v20 = vadd.f32 %v62_v16, %v19_v14  ;;  %v64_v24 = vld [vmem:[%s10352_s2 + $0x38] sm:$0xff]  ;;  %v106_v26 = vadd.f32 %v63_v23, %v20_v21  ;;  %v22_v28 = vld [vmem:[%s10351_s1 + $0x40] sm:$0xff]  ;;  %v23_v29 = vld [vmem:[%s10351_s1 + $0x48] sm:$0xff] }
   0x7   :  { %5603 = vmatpush1.bf16.msra.mxu0 %v5602_v17  ;;  %5685 = vmatpush1.bf16.msra.mxu1 %v5602_v17  ;;  %v107_v27 = vadd.f32 %v64_v24, %v21_v22  ;;  %v65_v30 = vld [vmem:[%s10352_s2 + $0x40] sm:$0xff]  ;;  %v66_v31 = vld [vmem:[%s10352_s2 + $0x48] sm:$0xff]  ;;  %v24_v35 = vld [vmem:[%s10351_s1 + $0x50] sm:$0xff] }
   0x8   :  { %5604 = vmatprep.subr.bf16.mxu0 %v5702_v0  ;;  %5670 = vmatprep.subr.bf16.mxu1 %v5702_v0  ;;  %v5608_v25 = vpack.c.bf16 %v105_v20, %v104_v19  ;;  %v108_v33 = vadd.f32 %v65_v30, %v22_v28  ;;  %v109_v34 = vadd.f32 %v66_v31, %v23_v29  ;;  %v25_v36 = vld [vmem:[%s10351_s1 + $0x58] sm:$0xff]  ;;  %v67_v37 = vld [vmem:[%s10352_s2 + $0x50] sm:$0xff]  ;;  %v26_v42 = vld [vmem:[%s10351_s1 + $0x60] sm:$0xff] }
   0x9   :  { %v5611_v32 = vpack.c.bf16 %v107_v27, %v106_v26  ;;  %v68_v38 = vld [vmem:[%s10352_s2 + $0x58] sm:$0xff]  ;;  %v110_v40 = vadd.f32 %v67_v37, %v24_v35  ;;  %v27_v43 = vld [vmem:[%s10351_s1 + $0x68] sm:$0xff]  ;;  %v69_v44 = vld [vmem:[%s10352_s2 + $0x60] sm:$0xff] }
   0xa   :  { %v5614_v39 = vpack.c.bf16 %v109_v34, %v108_v33  ;;  %v111_v41 = vadd.f32 %v68_v38, %v25_v36  ;;  %v70_v45 = vld [vmem:[%s10352_s2 + $0x68] sm:$0xff]  ;;  %v726_v47 = vld [vmem:[%s10353_s0 + $0x1238] sm:$0xff]  ;;  %v112_v49 = vadd.f32 %v69_v44, %v26_v42  ;;  %v28_v51 = vld [vmem:[%s10351_s1 + $0x70] sm:$0xff] }
   0xb   :  { %5606 = vmatpush1.bf16.msra.mxu0 %v5605_v18  ;;  %5686 = vmatpush1.bf16.msra.mxu1 %v5605_v18  ;;  %v144_v46 = vld [vmem:[%s10353_s0 + $0x8] sm:$0xff]  ;;  %v113_v50 = vadd.f32 %v70_v45, %v27_v43  ;;  %v29_v52 = vld [vmem:[%s10351_s1 + $0x78] sm:$0xff]  ;;  %v71_v53 = vld [vmem:[%s10352_s2 + $0x70] sm:$0xff] }
   0xc   :  { %5607 = vmatprep.subr.bf16.mxu0 %v5702_v0  ;;  %5671 = vmatprep.subr.bf16.mxu1 %v5702_v0  ;;  %v5617_v48 = vpack.c.bf16 %v111_v41, %v110_v40  ;;  %v72_v54 = vld [vmem:[%s10352_s2 + $0x78] sm:$0xff]  ;;  %v114_v56 = vadd.f32 %v71_v53, %v28_v51  ;;  %v30_v58 = vld [vmem:[%s10351_s1 + $0x80] sm:$0xff]  ;;  %v31_v59 = vld [vmem:[%s10351_s1 + $0x88] sm:$0xff] }
   0xd   :  { %1756 = vmatprep.mubr.f32.mxu0 %v144_v46  ;;  %2726 = vmatprep.mubr.f32.mxu1 %v726_v47  ;;  %v5620_v55 = vpack.c.bf16 %v113_v50, %v112_v49  ;;  %v115_v57 = vadd.f32 %v72_v54, %v29_v52  ;;  %v73_v60 = vld [vmem:[%s10352_s2 + $0x80] sm:$0xff]  ;;  %v74_v61 = vld [vmem:[%s10352_s2 + $0x88] sm:$0xff]  ;;  %v32_v2 = vld [vmem:[%s10351_s1 + $0x90] sm:$0xff] }
   0xe   :  { %v116_v63 = vadd.f32 %v73_v60, %v30_v58  ;;  %v117_v1 = vadd.f32 %v74_v61, %v31_v59  ;;  %v33_v3 = vld [vmem:[%s10351_s1 + $0x98] sm:$0xff]  ;;  %v75_v4 = vld [vmem:[%s10352_s2 + $0x90] sm:$0xff]  ;;  %v34_v9 = vld [vmem:[%s10351_s1 + $0xa0] sm:$0xff] }
   0xf   :  { %5609 = vmatpush1.bf16.msra.mxu0 %v5608_v25  ;;  %5687 = vmatpush1.bf16.msra.mxu1 %v5608_v25  ;;  %v5623_v62 = vpack.c.bf16 %v115_v57, %v114_v56  ;;  %v76_v5 = vld [vmem:[%s10352_s2 + $0x98] sm:$0xff]  ;;  %v118_v7 = vadd.f32 %v75_v4, %v32_v2  ;;  %v35_v10 = vld [vmem:[%s10351_s1 + $0xa8] sm:$0xff]  ;;  %v77_v11 = vld [vmem:[%s10352_s2 + $0xa0] sm:$0xff] }
  0x10   :  { %5610 = vmatprep.subr.bf16.mxu0 %v5702_v0  ;;  %5672 = vmatprep.subr.bf16.mxu1 %v5702_v0  ;;  %v5626_v6 = vpack.c.bf16 %v117_v1, %v116_v63  ;;  %v119_v8 = vadd.f32 %v76_v5, %v33_v3  ;;  %v78_v12 = vld [vmem:[%s10352_s2 + $0xa8] sm:$0xff]  ;;  %v120_v14 = vadd.f32 %v77_v11, %v34_v9  ;;  %v36_v16 = vld [vmem:[%s10351_s1 + $0xb0] sm:$0xff]  ;;  %v37_v17 = vld [vmem:[%s10351_s1 + $0xb8] sm:$0xff] }
  0x11   :  { %v121_v15 = vadd.f32 %v78_v12, %v35_v10  ;;  %v79_v18 = vld [vmem:[%s10352_s2 + $0xb0] sm:$0xff]  ;;  %v80_v19 = vld [vmem:[%s10352_s2 + $0xb8] sm:$0xff]  ;;  %v38_v23 = vld [vmem:[%s10351_s1 + $0xc0] sm:$0xff] }
  0x12   :  { %v5629_v13 = vpack.c.bf16 %v119_v8, %v118_v7  ;;  %v122_v21 = vadd.f32 %v79_v18, %v36_v16  ;;  %v123_v22 = vadd.f32 %v80_v19, %v37_v17  ;;  %v39_v24 = vld [vmem:[%s10351_s1 + $0xc8] sm:$0xff]  ;;  %v81_v25 = vld [vmem:[%s10352_s2 + $0xc0] sm:$0xff]  ;;  %v40_v30 = vld [vmem:[%s10351_s1 + $0xd0] sm:$0xff] }
  0x13   :  { %5612 = vmatpush1.bf16.msra.mxu0 %v5611_v32  ;;  %5688 = vmatpush1.bf16.msra.mxu1 %v5611_v32  ;;  %v5632_v20 = vpack.c.bf16 %v121_v15, %v120_v14  ;;  %v82_v26 = vld [vmem:[%s10352_s2 + $0xc8] sm:$0xff]  ;;  %v124_v28 = vadd.f32 %v81_v25, %v38_v23  ;;  %v41_v31 = vld [vmem:[%s10351_s1 + $0xd8] sm:$0xff]  ;;  %v83_v32 = vld [vmem:[%s10352_s2 + $0xd0] sm:$0xff] }
  0x14   :  { %5613 = vmatprep.subr.bf16.mxu0 %v5702_v0  ;;  %5673 = vmatprep.subr.bf16.mxu1 %v5702_v0  ;;  %v5635_v27 = vpack.c.bf16 %v123_v22, %v122_v21  ;;  %v125_v29 = vadd.f32 %v82_v26, %v39_v24  ;;  %v84_v33 = vld [vmem:[%s10352_s2 + $0xd8] sm:$0xff]  ;;  %v126_v35 = vadd.f32 %v83_v32, %v40_v30  ;;  %v42_v37 = vld [vmem:[%s10351_s1 + $0xe0] sm:$0xff]  ;;  %v43_v38 = vld [vmem:[%s10351_s1 + $0xe8] sm:$0xff] }
  0x15   :  { %v127_v36 = vadd.f32 %v84_v33, %v41_v31  ;;  %v86_v40 = vld [vmem:[%s10352_s2 + $0xe8] sm:$0xff]  ;;  %v44_v44 = vld [vmem:[%s10351_s1 + $0xf0] sm:$0xff]  ;;  %v45_v45 = vld [vmem:[%s10351_s1 + $0xf8] sm:$0xff] }
  0x16   :  { %v5638_v34 = vpack.c.bf16 %v125_v29, %v124_v28  ;;  %v129_v43 = vadd.f32 %v86_v40, %v43_v38  ;;  %v87_v46 = vld [vmem:[%s10352_s2 + $0xf0] sm:$0xff]  ;;  %v88_v47 = vld [vmem:[%s10352_s2 + $0xf8] sm:$0xff]  ;;  %v47_v49 = vld [vmem:[%s10351_s1 + $0x108] sm:$0xff] }
  0x17   :  { %5615 = vmatpush1.bf16.msra.mxu0 %v5614_v39  ;;  %5689 = vmatpush1.bf16.msra.mxu1 %v5614_v39  ;;  %v85_v39 = vld [vmem:[%s10352_s2 + $0xe0] sm:$0xff]  ;;  %v5641_v41 = vpack.c.bf16 %v127_v36, %v126_v35  ;;  %v90_v51 = vld [vmem:[%s10352_s2 + $0x108] sm:$0xff]  ;;  %v130_v53 = vadd.f32 %v87_v46, %v44_v44  ;;  %v131_v54 = vadd.f32 %v88_v47, %v45_v45  ;;  %v48_v57 = vld [vmem:[%s10351_s1 + $0x110] sm:$0xff] }
  0x18   :  { %5616 = vmatprep.subr.bf16.mxu0 %v5702_v0  ;;  %5674 = vmatprep.subr.bf16.mxu1 %v5702_v0  ;;  %v128_v42 = vadd.f32 %v85_v39, %v42_v37  ;;  %v89_v50 = vld [vmem:[%s10352_s2 + $0x100] sm:$0xff]  ;;  %v133_v56 = vadd.f32 %v90_v51, %v47_v49  ;;  %v49_v58 = vld [vmem:[%s10351_s1 + $0x118] sm:$0xff]  ;;  %v91_v59 = vld [vmem:[%s10352_s2 + $0x110] sm:$0xff] }
  0x19   :  { %v92_v60 = vld [vmem:[%s10352_s2 + $0x118] sm:$0xff]  ;;  %v5647_v61 = vpack.c.bf16 %v131_v54, %v130_v53  ;;  %v134_v63 = vadd.f32 %v91_v59, %v48_v57  ;;  %v50_v2 = vld [vmem:[%s10351_s1 + $0x120] sm:$0xff]  ;;  %v51_v3 = vld [vmem:[%s10351_s1 + $0x128] sm:$0xff] }
  0x1a   :  { %v5644_v52 = vpack.c.bf16 %v129_v43, %v128_v42  ;;  %v135_v1 = vadd.f32 %v92_v60, %v49_v58  ;;  %v93_v4 = vld [vmem:[%s10352_s2 + $0x120] sm:$0xff]  ;;  %v94_v5 = vld [vmem:[%s10352_s2 + $0x128] sm:$0xff]  ;;  %v729_v8 = vld [vmem:[%s10353_s0 + $0x1250] sm:$0xff] }
  0x1b   :  { %5618 = vmatpush1.bf16.msra.mxu0 %v5617_v48  ;;  %5690 = vmatpush1.bf16.msra.mxu1 %v5617_v48  ;;  %v46_v48 = vld [vmem:[%s10351_s1 + $0x100] sm:$0xff]  ;;  %v136_v10 = vadd.f32 %v93_v4, %v50_v2  ;;  %v137_v11 = vadd.f32 %v94_v5, %v51_v3  ;;  %v146_v12 = vld [vmem:[%s10353_s0 + $0x18] sm:$0xff]  ;;  %v728_v15 = vld [vmem:[%s10353_s0 + $0x1248] sm:$0xff] }
  0x1c   :  { %5619 = vmatprep.subr.bf16.mxu0 %v5702_v0  ;;  %5675 = vmatprep.subr.bf16.mxu1 %v5702_v0  ;;  %v147_v7 = vld [vmem:[%s10353_s0 + $0x20] sm:$0xff]  ;;  %v5653_v9 = vpack.c.bf16 %v135_v1, %v134_v63  ;;  %v53_v14 = vld [vmem:[%s10351_s1 + $0x138] sm:$0xff]  ;;  %v95_v16 = vld [vmem:[%s10352_s2 + $0x130] sm:$0xff] }
  0x1d   :  { %v96_v17 = vld [vmem:[%s10352_s2 + $0x138] sm:$0xff]  ;;  %v732_v19 = vld [vmem:[%s10353_s0 + $0x1268] sm:$0xff]  ;;  %v149_v23 = vld [vmem:[%s10353_s0 + $0x30] sm:$0xff] }
  0x1e   :  { %v150_v18 = vld [vmem:[%s10353_s0 + $0x38] sm:$0xff]  ;;  %v139_v22 = vadd.f32 %v96_v17, %v53_v14  ;;  %v731_v24 = vld [vmem:[%s10353_s0 + $0x1260] sm:$0xff]  ;;  %v153_v25 = vld [vmem:[%s10353_s0 + $0x50] sm:$0xff] }
  0x1f   :  { %5621 = vmatpush1.bf16.msra.mxu0 %v5620_v55  ;;  %5691 = vmatpush1.bf16.msra.mxu1 %v5620_v55  ;;  %v132_v55 = vadd.f32 %v89_v50, %v46_v48  ;;  %v735_v26 = vld [vmem:[%s10353_s0 + $0x1280] sm:$0xff]  ;;  %v152_v28 = vld [vmem:[%s10353_s0 + $0x48] sm:$0xff]  ;;  %v734_v29 = vld [vmem:[%s10353_s0 + $0x1278] sm:$0xff] }
  0x20   :  { %5622 = vmatprep.subr.bf16.mxu0 %v5702_v0  ;;  %5676 = vmatprep.subr.bf16.mxu1 %v5702_v0  ;;  %v156_v30 = vld [vmem:[%s10353_s0 + $0x68] sm:$0xff]  ;;  %v738_v31 = vld [vmem:[%s10353_s0 + $0x1298] sm:$0xff]  ;;  %v155_v32 = vld [vmem:[%s10353_s0 + $0x60] sm:$0xff] }
  0x21   :  { %v737_v33 = vld [vmem:[%s10353_s0 + $0x1290] sm:$0xff]  ;;  %v158_v36 = vld [vmem:[%s10353_s0 + $0x78] sm:$0xff]  ;;  %v740_v37 = vld [vmem:[%s10353_s0 + $0x12a8] sm:$0xff] }
  0x22   :  { %v741_v35 = vld [vmem:[%s10353_s0 + $0x12b0] sm:$0xff]  ;;  %v162_v38 = vld [vmem:[%s10353_s0 + $0x98] sm:$0xff]  ;;  %v744_v39 = vld [vmem:[%s10353_s0 + $0x12c8] sm:$0xff] }
  0x23   :  { %5624 = vmatpush1.bf16.msra.mxu0 %v5623_v62  ;;  %5692 = vmatpush1.bf16.msra.mxu1 %v5623_v62  ;;  %v5649_v62 = vpack.c.bf16 %v133_v56, %v132_v55  ;;  %v161_v40 = vld [vmem:[%s10353_s0 + $0x90] sm:$0xff]  ;;  %v747_v43 = vld [vmem:[%s10353_s0 + $0x12e0] sm:$0xff]  ;;  %v164_v44 = vld [vmem:[%s10353_s0 + $0xa8] sm:$0xff] }
  0x24   :  { %5625 = vmatprep.subr.bf16.mxu0 %v5702_v0  ;;  %5677 = vmatprep.subr.bf16.mxu1 %v5702_v0  ;;  %v165_v42 = vld [vmem:[%s10353_s0 + $0xb0] sm:$0xff]  ;;  %v746_v45 = vld [vmem:[%s10353_s0 + $0x12d8] sm:$0xff]  ;;  %v168_v46 = vld [vmem:[%s10353_s0 + $0xc8] sm:$0xff] }
  0x25   :  { %v750_v47 = vld [vmem:[%s10353_s0 + $0x12f8] sm:$0xff]  ;;  %v167_v48 = vld [vmem:[%s10353_s0 + $0xc0] sm:$0xff]  ;;  %v749_v49 = vld [vmem:[%s10353_s0 + $0x12f0] sm:$0xff] }
  0x26   :  { %v171_v50 = vld [vmem:[%s10353_s0 + $0xe0] sm:$0xff]  ;;  %v753_v51 = vld [vmem:[%s10353_s0 + $0x1310] sm:$0xff]  ;;  %v752_v53 = vld [vmem:[%s10353_s0 + $0x1308] sm:$0xff] }
  0x27   :  { %5627 = vmatpush1.bf16.msra.mxu0 %v5626_v6  ;;  %5693 = vmatpush1.bf16.msra.mxu1 %v5626_v6  ;;  %v725_v6 = vld [vmem:[%s10353_s0 + $0x1230] sm:$0xff]  ;;  %v174_v54 = vld [vmem:[%s10353_s0 + $0xf8] sm:$0xff]  ;;  %v756_v55 = vld [vmem:[%s10353_s0 + $0x1328] sm:$0xff] }
  0x28   :  { %5628 = vmatprep.subr.bf16.mxu0 %v5702_v0  ;;  %5678 = vmatprep.subr.bf16.mxu1 %v5702_v0  ;;  %v173_v56 = vld [vmem:[%s10353_s0 + $0xf0] sm:$0xff]  ;;  %v755_v57 = vld [vmem:[%s10353_s0 + $0x1320] sm:$0xff]  ;;  %v176_v60 = vld [vmem:[%s10353_s0 + $0x108] sm:$0xff] }
  0x29   :  { %v177_v58 = vld [vmem:[%s10353_s0 + $0x110] sm:$0xff]  ;;  %v759_v59 = vld [vmem:[%s10353_s0 + $0x1340] sm:$0xff]  ;;  %v762_v63 = vld [vmem:[%s10353_s0 + $0x1358] sm:$0xff] }
  0x2a   :  { %v54_v1 = vld [vmem:[%s10351_s1 + $0x140] sm:$0xff]  ;;  %v55_v2 = vld [vmem:[%s10351_s1 + $0x148] sm:$0xff]  ;;  %v761_v5 = vld [vmem:[%s10353_s0 + $0x1350] sm:$0xff] }
  0x2b   :  { %5630 = vmatpush1.bf16.msra.mxu0 %v5629_v13  ;;  %5694 = vmatpush1.bf16.msra.mxu1 %v5629_v13  ;;  %v52_v13 = vld [vmem:[%s10351_s1 + $0x130] sm:$0xff]  ;;  %v97_v3 = vld [vmem:[%s10352_s2 + $0x140] sm:$0xff]  ;;  %v768_v14 = vld [vmem:[%s10353_s0 + $0x1388] sm:$0xff] }
  0x2c   :  { %5631 = vmatprep.subr.bf16.mxu0 %v5702_v0  ;;  %5679 = vmatprep.subr.bf16.mxu1 %v5702_v0  ;;  %v138_v21 = vadd.f32 %v95_v16, %v52_v13  ;;  %v179_v4 = vld [vmem:[%s10353_s0 + $0x120] sm:$0xff]  ;;  %v186_v13 = vld [vmem:[%s10353_s0 + $0x158] sm:$0xff]  ;;  %v189_v17 = vld [vmem:[%s10353_s0 + $0x170] sm:$0xff] }
  0x2d   :  { %v767_v16 = vld [vmem:[%s10353_s0 + $0x1380] sm:$0xff] }
  0x2f   :  { %5633 = vmatpush1.bf16.msra.mxu0 %v5632_v20  ;;  %5695 = vmatpush1.bf16.msra.mxu1 %v5632_v20  ;;  %v5657_v20 = vpack.c.bf16 %v137_v11, %v136_v10  ;;  %v182_v11 = vld [vmem:[%s10353_s0 + $0x138] sm:$0xff] }
  0x30   :  { %5634 = vmatprep.subr.bf16.mxu0 %v5702_v0  ;;  %5680 = vmatprep.subr.bf16.mxu1 %v5702_v0 }
  0x33   :  { %5636 = vmatpush1.bf16.msra.mxu0 %v5635_v27  ;;  %5696 = vmatpush1.bf16.msra.mxu1 %v5635_v27  ;;  %v5661_v27 = vpack.c.bf16 %v139_v22, %v138_v21  ;;  %v192_v21 = vld [vmem:[%s10353_s0 + $0x188] sm:$0xff]  ;;  %v774_v22 = vld [vmem:[%s10353_s0 + $0x13b8] sm:$0xff] }
  0x34   :  { %5637 = vmatprep.subr.bf16.mxu0 %v5702_v0  ;;  %5681 = vmatprep.subr.bf16.mxu1 %v5702_v0 }
  0x37   :  { %5639 = vmatpush1.bf16.msra.mxu0 %v5638_v34  ;;  %5697 = vmatpush1.bf16.msra.mxu1 %v5638_v34  ;;  %v159_v34 = vld [vmem:[%s10353_s0 + $0x80] sm:$0xff] }
  0x38   :  { %5640 = vmatprep.subr.bf16.mxu0 %v5702_v0  ;;  %5682 = vmatprep.subr.bf16.mxu1 %v5702_v0 }
  0x3b   :  { %5642 = vmatpush1.bf16.msra.mxu0 %v5641_v41  ;;  %5698 = vmatpush1.bf16.msra.mxu1 %v5641_v41  ;;  %v743_v41 = vld [vmem:[%s10353_s0 + $0x12c0] sm:$0xff] }
  0x3c   :  { %5643 = vmatprep.subr.bf16.mxu0 %v5702_v0  ;;  %5683 = vmatprep.subr.bf16.mxu1 %v5702_v0 }
  0x3f   :  { %5645 = vmatpush1.bf16.msra.mxu0 %v5644_v52  ;;  %5699 = vmatpush1.bf16.msra.mxu1 %v5644_v52  ;;  %v170_v52 = vld [vmem:[%s10353_s0 + $0xd8] sm:$0xff] }
  0x40   :  { %5646 = vmatprep.subr.bf16.mxu0 %v5702_v0  ;;  %5684 = vmatprep.subr.bf16.mxu1 %v5702_v0  ;;  %v143_v0 = vld [vmem:[%s10353_s0] sm:$0xff] }
  0x43   :  { %5648 = vmatpush1.bf16.msra.mxu0 %v5647_v61  ;;  %5700 = vmatpush1.bf16.msra.mxu1 %v5647_v61  ;;  %v758_v61 = vld [vmem:[%s10353_s0 + $0x1338] sm:$0xff] }
  0x44   :  { %5650 = vmatprep.subr.bf16.mxu1 %v5649_v62 }
  0x46   :  { %1757 = vmatmul.mubr.f32.vlgmr.msra.gmra.mrb[0].mxu0 %v143_v0  ;;  %2727 = vmatmul.mubr.f32.vlgmr.msra.gmra.mrb[0].mxu1 %v725_v6  ;;  %v98_v0 = vld [vmem:[%s10352_s2 + $0x148] sm:$0xff]  ;;  %v140_v6 = vadd.f32 %v97_v3, %v54_v1  ;;  %v222_v1 = vld [vmem:[%s10353_s0 + $0x278] sm:$0xff]  ;;  %v221_v3 = vld [vmem:[%s10353_s0 + $0x270] sm:$0xff] }
  0x47   :  { %1761 = vmatprep.mubr.f32.mxu0 %v147_v7  ;;  %2731 = vmatprep.mubr.f32.mxu1 %v729_v8  ;;  %v183_v7 = vld [vmem:[%s10353_s0 + $0x140] sm:$0xff]  ;;  %v765_v8 = vld [vmem:[%s10353_s0 + $0x1370] sm:$0xff] }
  0x48   :  { %5652 = vmatpush3.bf16.msra.mxu1 %v5649_v62  ;;  %v180_v62 = vld [vmem:[%s10353_s0 + $0x128] sm:$0xff] }
  0x49   :  { %5654 = vmatprep.subr.bf16.mxu1 %v5653_v9 }
  0x4a   :  { %1762 = vmatmul.mubr.f32.gmra.mrb[2].mxu0 %v146_v12  ;;  %2732 = vmatmul.mubr.f32.gmra.mrb[2].mxu1 %v728_v15  ;;  %v764_v12 = vld [vmem:[%s10353_s0 + $0x1368] sm:$0xff]  ;;  %v185_v15 = vld [vmem:[%s10353_s0 + $0x150] sm:$0xff] }
  0x4b   :  { %1766 = vmatprep.mubr.f32.mxu0 %v150_v18  ;;  %2736 = vmatprep.mubr.f32.mxu1 %v732_v19  ;;  %v771_v18 = vld [vmem:[%s10353_s0 + $0x13a0] sm:$0xff]  ;;  %v188_v19 = vld [vmem:[%s10353_s0 + $0x168] sm:$0xff] }
  0x4c   :  { %5656 = vmatpush3.bf16.msra.mxu1 %v5653_v9  ;;  %v141_v9 = vadd.f32 %v98_v0, %v55_v2  ;;  %v804_v2 = vld [vmem:[%s10353_s0 + $0x14a8] sm:$0xff]  ;;  %v807_v0 = vld [vmem:[%s10353_s0 + $0x14c0] sm:$0xff] }
  0x4d   :  { %5658 = vmatprep.subr.bf16.mxu1 %v5657_v20 }
  0x4e   :  { %1767 = vmatmul.mubr.f32.gmra.mrb[4].mxu0 %v149_v23  ;;  %2737 = vmatmul.mubr.f32.gmra.mrb[4].mxu1 %v731_v24  ;;  %v5665_v10 = vpack.c.bf16 %v141_v9, %v140_v6  ;;  %v191_v23 = vld [vmem:[%s10353_s0 + $0x180] sm:$0xff]  ;;  %v773_v24 = vld [vmem:[%s10353_s0 + $0x13b0] sm:$0xff]  ;;  %v224_v6 = vld [vmem:[%s10353_s0 + $0x288] sm:$0xff] }
  0x4f   :  { %1771 = vmatprep.mubr.f32.mxu0 %v153_v25  ;;  %2741 = vmatprep.mubr.f32.mxu1 %v735_v26  ;;  %v195_v25 = vld [vmem:[%s10353_s0 + $0x1a0] sm:$0xff]  ;;  %v777_v26 = vld [vmem:[%s10353_s0 + $0x13d0] sm:$0xff]  ;;  %v810_v9 = vld [vmem:[%s10353_s0 + $0x14d8] sm:$0xff] }
  0x50   :  { %5660 = vmatpush3.bf16.msra.mxu1 %v5657_v20  ;;  %v770_v20 = vld [vmem:[%s10353_s0 + $0x1398] sm:$0xff] }
  0x51   :  { %5662 = vmatprep.subr.bf16.mxu1 %v5661_v27 }
  0x52   :  { %1772 = vmatmul.mubr.f32.gmra.mrb[6].mxu0 %v152_v28  ;;  %2742 = vmatmul.mubr.f32.gmra.mrb[6].mxu1 %v734_v29  ;;  %v776_v28 = vld [vmem:[%s10353_s0 + $0x13c8] sm:$0xff]  ;;  %v198_v29 = vld [vmem:[%s10353_s0 + $0x1b8] sm:$0xff] }
  0x53   :  { %1776 = vmatprep.mubr.f32.mxu0 %v156_v30  ;;  %2746 = vmatprep.mubr.f32.mxu1 %v738_v31  ;;  %v780_v30 = vld [vmem:[%s10353_s0 + $0x13e8] sm:$0xff]  ;;  %v197_v31 = vld [vmem:[%s10353_s0 + $0x1b0] sm:$0xff] }
  0x54   :  { %5664 = vmatpush3.bf16.msra.mxu1 %v5661_v27  ;;  %v194_v27 = vld [vmem:[%s10353_s0 + $0x198] sm:$0xff] }
  0x55   :  { %5666 = vmatprep.subr.bf16.mxu1 %v5665_v10 }
  0x56   :  { %1777 = vmatmul.mubr.f32.gmra.mrb[8].mxu0 %v155_v32  ;;  %2747 = vmatmul.mubr.f32.gmra.mrb[8].mxu1 %v737_v33  ;;  %v779_v32 = vld [vmem:[%s10353_s0 + $0x13e0] sm:$0xff]  ;;  %v201_v33 = vld [vmem:[%s10353_s0 + $0x1d0] sm:$0xff] }
  0x57   :  { %1781 = vmatprep.mubr.f32.mxu0 %v159_v34  ;;  %2751 = vmatprep.mubr.f32.mxu1 %v741_v35  ;;  %v783_v34 = vld [vmem:[%s10353_s0 + $0x1400] sm:$0xff]  ;;  %v200_v35 = vld [vmem:[%s10353_s0 + $0x1c8] sm:$0xff] }
  0x58   :  { %5668 = vmatpush3.bf16.msra.mxu1 %v5665_v10  ;;  %v227_v10 = vld [vmem:[%s10353_s0 + $0x2a0] sm:$0xff] }
  0x5a   :  { %1782 = vmatmul.mubr.f32.gmra.mrb[10].mxu0 %v158_v36  ;;  %2752 = vmatmul.mubr.f32.gmra.mrb[10].mxu1 %v740_v37  ;;  %v782_v36 = vld [vmem:[%s10353_s0 + $0x13f8] sm:$0xff]  ;;  %v204_v37 = vld [vmem:[%s10353_s0 + $0x1e8] sm:$0xff] }
  0x5b   :  { %1786 = vmatprep.mubr.f32.mxu0 %v162_v38  ;;  %2756 = vmatprep.mubr.f32.mxu1 %v744_v39  ;;  %v786_v38 = vld [vmem:[%s10353_s0 + $0x1418] sm:$0xff]  ;;  %v203_v39 = vld [vmem:[%s10353_s0 + $0x1e0] sm:$0xff] }
  0x5e   :  { %1787 = vmatmul.mubr.f32.gmra.mrb[12].mxu0 %v161_v40  ;;  %2757 = vmatmul.mubr.f32.gmra.mrb[12].mxu1 %v743_v41  ;;  %v785_v40 = vld [vmem:[%s10353_s0 + $0x1410] sm:$0xff]  ;;  %v207_v41 = vld [vmem:[%s10353_s0 + $0x200] sm:$0xff] }
  0x5f   :  { %1791 = vmatprep.mubr.f32.mxu0 %v165_v42  ;;  %2761 = vmatprep.mubr.f32.mxu1 %v747_v43  ;;  %v789_v42 = vld [vmem:[%s10353_s0 + $0x1430] sm:$0xff]  ;;  %v206_v43 = vld [vmem:[%s10353_s0 + $0x1f8] sm:$0xff] }
  0x62   :  { %1792 = vmatmul.mubr.f32.gmra.mrb[14].mxu0 %v164_v44  ;;  %2762 = vmatmul.mubr.f32.gmra.mrb[14].mxu1 %v746_v45  ;;  %v788_v44 = vld [vmem:[%s10353_s0 + $0x1428] sm:$0xff]  ;;  %v210_v45 = vld [vmem:[%s10353_s0 + $0x218] sm:$0xff] }
  0x63   :  { %1796 = vmatprep.mubr.f32.mxu0 %v168_v46  ;;  %2766 = vmatprep.mubr.f32.mxu1 %v750_v47  ;;  %v792_v46 = vld [vmem:[%s10353_s0 + $0x1448] sm:$0xff]  ;;  %v209_v47 = vld [vmem:[%s10353_s0 + $0x210] sm:$0xff] }
  0x66   :  { %1797 = vmatmul.mubr.f32.gmra.mrb[16].mxu0 %v167_v48  ;;  %2767 = vmatmul.mubr.f32.gmra.mrb[16].mxu1 %v749_v49  ;;  %v791_v48 = vld [vmem:[%s10353_s0 + $0x1440] sm:$0xff]  ;;  %v213_v49 = vld [vmem:[%s10353_s0 + $0x230] sm:$0xff] }
  0x67   :  { %1801 = vmatprep.mubr.f32.mxu0 %v171_v50  ;;  %2771 = vmatprep.mubr.f32.mxu1 %v753_v51  ;;  %v795_v50 = vld [vmem:[%s10353_s0 + $0x1460] sm:$0xff]  ;;  %v56_v51 = vld [vmem:[%s10351_s1 + $0x150] sm:$0xff] }
  0x6a   :  { %1802 = vmatmul.mubr.f32.gmra.mrb[18].mxu0 %v170_v52  ;;  %2772 = vmatmul.mubr.f32.gmra.mrb[18].mxu1 %v752_v53  ;;  %v99_v52 = vld [vmem:[%s10352_s2 + $0x150] sm:$0xff]  ;;  %v212_v53 = vld [vmem:[%s10353_s0 + $0x228] sm:$0xff] }
  0x6b   :  { %1806 = vmatprep.mubr.f32.mxu0 %v174_v54  ;;  %2776 = vmatprep.mubr.f32.mxu1 %v756_v55  ;;  %v794_v54 = vld [vmem:[%s10353_s0 + $0x1458] sm:$0xff]  ;;  %v142_v55 = vadd.f32 %v99_v52, %v56_v51  ;;  %v839_v51 = vld [vmem:[%s10353_s0 + $0x15c0] sm:$0xff]  ;;  %v261_v52 = vld [vmem:[%s10353_s0 + $0x3b0] sm:$0xff] }
  0x6d   :  { %5212 = vmatprep.subr.mxu1 %v142_v55 }
  0x6e   :  { %1807 = vmatmul.mubr.f32.gmra.mrb[20].mxu0 %v173_v56  ;;  %2777 = vmatmul.mubr.f32.gmra.mrb[20].mxu1 %v755_v57  ;;  %v216_v56 = vld [vmem:[%s10353_s0 + $0x248] sm:$0xff]  ;;  %v798_v57 = vld [vmem:[%s10353_s0 + $0x1478] sm:$0xff] }
  0x6f   :  { %1811 = vmatprep.mubr.f32.mxu0 %v177_v58  ;;  %2781 = vmatprep.mubr.f32.mxu1 %v759_v59  ;;  %v215_v58 = vld [vmem:[%s10353_s0 + $0x240] sm:$0xff]  ;;  %v797_v59 = vld [vmem:[%s10353_s0 + $0x1470] sm:$0xff] }
  0x70   :  { %5213 = vmatpush3.msra.mxu1 %v142_v55  ;;  %v842_v55 = vld [vmem:[%s10353_s0 + $0x15d8] sm:$0xff] }
  0x72   :  { %1812 = vmatmul.mubr.f32.gmra.mrb[22].mxu0 %v176_v60  ;;  %2782 = vmatmul.mubr.f32.gmra.mrb[22].mxu1 %v758_v61  ;;  %v219_v60 = vld [vmem:[%s10353_s0 + $0x260] sm:$0xff]  ;;  %v801_v61 = vld [vmem:[%s10353_s0 + $0x1490] sm:$0xff] }
  0x73   :  { %1816 = vmatprep.mubr.f32.mxu0 %v180_v62  ;;  %2786 = vmatprep.mubr.f32.mxu1 %v762_v63  ;;  %v218_v62 = vld [vmem:[%s10353_s0 + $0x258] sm:$0xff]  ;;  %v800_v63 = vld [vmem:[%s10353_s0 + $0x1488] sm:$0xff] }
  0x76   :  { %1817 = vmatmul.mubr.f32.gmra.mrb[24].mxu0 %v179_v4  ;;  %2787 = vmatmul.mubr.f32.gmra.mrb[24].mxu1 %v761_v5  ;;  %v803_v4 = vld [vmem:[%s10353_s0 + $0x14a0] sm:$0xff]  ;;  %v225_v5 = vld [vmem:[%s10353_s0 + $0x290] sm:$0xff] }
  0x77   :  { %1821 = vmatprep.mubr.f32.mxu0 %v183_v7  ;;  %2791 = vmatprep.mubr.f32.mxu1 %v765_v8  ;;  %v806_v7 = vld [vmem:[%s10353_s0 + $0x14b8] sm:$0xff]  ;;  %v228_v8 = vld [vmem:[%s10353_s0 + $0x2a8] sm:$0xff] }
  0x7a   :  { %1822 = vmatmul.mubr.f32.gmra.mrb[26].mxu0 %v182_v11  ;;  %2792 = vmatmul.mubr.f32.gmra.mrb[26].mxu1 %v764_v12  ;;  %v809_v11 = vld [vmem:[%s10353_s0 + $0x14d0] sm:$0xff]  ;;  %v231_v12 = vld [vmem:[%s10353_s0 + $0x2c0] sm:$0xff] }
  0x7b   :  { %1826 = vmatprep.mubr.f32.mxu0 %v186_v13  ;;  %2796 = vmatprep.mubr.f32.mxu1 %v768_v14  ;;  %v813_v13 = vld [vmem:[%s10353_s0 + $0x14f0] sm:$0xff]  ;;  %v230_v14 = vld [vmem:[%s10353_s0 + $0x2b8] sm:$0xff] }
  0x7e   :  { %1827 = vmatmul.mubr.f32.gmra.mrb[28].mxu0 %v185_v15  ;;  %2797 = vmatmul.mubr.f32.gmra.mrb[28].mxu1 %v767_v16  ;;  %v812_v15 = vld [vmem:[%s10353_s0 + $0x14e8] sm:$0xff]  ;;  %v234_v16 = vld [vmem:[%s10353_s0 + $0x2d8] sm:$0xff] }
  0x7f   :  { %1831 = vmatprep.mubr.f32.mxu0 %v189_v17  ;;  %2801 = vmatprep.mubr.f32.mxu1 %v771_v18  ;;  %v816_v17 = vld [vmem:[%s10353_s0 + $0x1508] sm:$0xff]  ;;  %v233_v18 = vld [vmem:[%s10353_s0 + $0x2d0] sm:$0xff] }
  0x82   :  { %1832 = vmatmul.mubr.f32.gmra.mrb[30].mxu0 %v188_v19  ;;  %2802 = vmatmul.mubr.f32.gmra.mrb[30].mxu1 %v770_v20  ;;  %v815_v19 = vld [vmem:[%s10353_s0 + $0x1500] sm:$0xff]  ;;  %v237_v20 = vld [vmem:[%s10353_s0 + $0x2f0] sm:$0xff] }
  0x83   :  { %1836 = vmatprep.mubr.f32.mxu0 %v192_v21  ;;  %2806 = vmatprep.mubr.f32.mxu1 %v774_v22  ;;  %v819_v21 = vld [vmem:[%s10353_s0 + $0x1520] sm:$0xff]  ;;  %v236_v22 = vld [vmem:[%s10353_s0 + $0x2e8] sm:$0xff] }
  0x86   :  { %1837 = vmatmul.mubr.f32.gmra.mrb[32].mxu0 %v191_v23  ;;  %2807 = vmatmul.mubr.f32.gmra.mrb[32].mxu1 %v773_v24  ;;  %v818_v23 = vld [vmem:[%s10353_s0 + $0x1518] sm:$0xff]  ;;  %v240_v24 = vld [vmem:[%s10353_s0 + $0x308] sm:$0xff] }
  0x87   :  { %1841 = vmatprep.mubr.f32.mxu0 %v195_v25  ;;  %2811 = vmatprep.mubr.f32.mxu1 %v777_v26  ;;  %v822_v25 = vld [vmem:[%s10353_s0 + $0x1538] sm:$0xff]  ;;  %v239_v26 = vld [vmem:[%s10353_s0 + $0x300] sm:$0xff] }
  0x8a   :  { %1842 = vmatmul.mubr.f32.gmra.mrb[34].mxu0 %v194_v27  ;;  %2812 = vmatmul.mubr.f32.gmra.mrb[34].mxu1 %v776_v28  ;;  %v821_v27 = vld [vmem:[%s10353_s0 + $0x1530] sm:$0xff]  ;;  %v243_v28 = vld [vmem:[%s10353_s0 + $0x320] sm:$0xff] }
  0x8b   :  { %1846 = vmatprep.mubr.f32.mxu0 %v198_v29  ;;  %2816 = vmatprep.mubr.f32.mxu1 %v780_v30  ;;  %v825_v29 = vld [vmem:[%s10353_s0 + $0x1550] sm:$0xff]  ;;  %v242_v30 = vld [vmem:[%s10353_s0 + $0x318] sm:$0xff] }
  0x8e   :  { %1847 = vmatmul.mubr.f32.gmra.mrb[36].mxu0 %v197_v31  ;;  %2817 = vmatmul.mubr.f32.gmra.mrb[36].mxu1 %v779_v32  ;;  %v824_v31 = vld [vmem:[%s10353_s0 + $0x1548] sm:$0xff]  ;;  %v246_v32 = vld [vmem:[%s10353_s0 + $0x338] sm:$0xff] }
  0x8f   :  { %1851 = vmatprep.mubr.f32.mxu0 %v201_v33  ;;  %2821 = vmatprep.mubr.f32.mxu1 %v783_v34  ;;  %v828_v33 = vld [vmem:[%s10353_s0 + $0x1568] sm:$0xff]  ;;  %v245_v34 = vld [vmem:[%s10353_s0 + $0x330] sm:$0xff] }
  0x92   :  { %1852 = vmatmul.mubr.f32.gmra.mrb[38].mxu0 %v200_v35  ;;  %2822 = vmatmul.mubr.f32.gmra.mrb[38].mxu1 %v782_v36  ;;  %v827_v35 = vld [vmem:[%s10353_s0 + $0x1560] sm:$0xff]  ;;  %v249_v36 = vld [vmem:[%s10353_s0 + $0x350] sm:$0xff] }
  0x93   :  { %1856 = vmatprep.mubr.f32.mxu0 %v204_v37  ;;  %2826 = vmatprep.mubr.f32.mxu1 %v786_v38  ;;  %v831_v37 = vld [vmem:[%s10353_s0 + $0x1580] sm:$0xff]  ;;  %v248_v38 = vld [vmem:[%s10353_s0 + $0x348] sm:$0xff] }
  0x96   :  { %1857 = vmatmul.mubr.f32.gmra.mrb[40].mxu0 %v203_v39  ;;  %2827 = vmatmul.mubr.f32.gmra.mrb[40].mxu1 %v785_v40  ;;  %v830_v39 = vld [vmem:[%s10353_s0 + $0x1578] sm:$0xff]  ;;  %v252_v40 = vld [vmem:[%s10353_s0 + $0x368] sm:$0xff] }
  0x97   :  { %1861 = vmatprep.mubr.f32.mxu0 %v207_v41  ;;  %2831 = vmatprep.mubr.f32.mxu1 %v789_v42  ;;  %v834_v41 = vld [vmem:[%s10353_s0 + $0x1598] sm:$0xff]  ;;  %v251_v42 = vld [vmem:[%s10353_s0 + $0x360] sm:$0xff] }
  0x9a   :  { %1862 = vmatmul.mubr.f32.gmra.mrb[42].mxu0 %v206_v43  ;;  %2832 = vmatmul.mubr.f32.gmra.mrb[42].mxu1 %v788_v44  ;;  %v833_v43 = vld [vmem:[%s10353_s0 + $0x1590] sm:$0xff]  ;;  %v255_v44 = vld [vmem:[%s10353_s0 + $0x380] sm:$0xff] }
  0x9b   :  { %1866 = vmatprep.mubr.f32.mxu0 %v210_v45  ;;  %2836 = vmatprep.mubr.f32.mxu1 %v792_v46  ;;  %v837_v45 = vld [vmem:[%s10353_s0 + $0x15b0] sm:$0xff]  ;;  %v254_v46 = vld [vmem:[%s10353_s0 + $0x378] sm:$0xff] }
  0x9e   :  { %1867 = vmatmul.mubr.f32.gmra.mrb[44].mxu0 %v209_v47  ;;  %2837 = vmatmul.mubr.f32.gmra.mrb[44].mxu1 %v791_v48  ;;  %v836_v47 = vld [vmem:[%s10353_s0 + $0x15a8] sm:$0xff]  ;;  %v258_v48 = vld [vmem:[%s10353_s0 + $0x398] sm:$0xff] }
  0x9f   :  { %1871 = vmatprep.mubr.f32.mxu0 %v213_v49  ;;  %2841 = vmatprep.mubr.f32.mxu1 %v795_v50  ;;  %v840_v49 = vld [vmem:[%s10353_s0 + $0x15c8] sm:$0xff]  ;;  %v257_v50 = vld [vmem:[%s10353_s0 + $0x390] sm:$0xff] }
  0xa2   :  { %1872 = vmatmul.mubr.f32.gmra.mrb[46].mxu0 %v212_v53  ;;  %2842 = vmatmul.mubr.f32.gmra.mrb[46].mxu1 %v794_v54  ;;  %v843_v53 = vld [vmem:[%s10353_s0 + $0x15e0] sm:$0xff]  ;;  %v260_v54 = vld [vmem:[%s10353_s0 + $0x3a8] sm:$0xff] }
  0xa3   :  { %1876 = vmatprep.mubr.f32.mxu0 %v216_v56  ;;  %2846 = vmatprep.mubr.f32.mxu1 %v798_v57  ;;  %v264_v56 = vld [vmem:[%s10353_s0 + $0x3c8] sm:$0xff]  ;;  %v846_v57 = vld [vmem:[%s10353_s0 + $0x15f8] sm:$0xff] }
  0xa6   :  { %1877 = vmatmul.mubr.f32.gmra.mrb[48].mxu0 %v215_v58  ;;  %2847 = vmatmul.mubr.f32.gmra.mrb[48].mxu1 %v797_v59  ;;  %v263_v58 = vld [vmem:[%s10353_s0 + $0x3c0] sm:$0xff]  ;;  %v845_v59 = vld [vmem:[%s10353_s0 + $0x15f0] sm:$0xff] }
  0xa7   :  { %1881 = vmatprep.mubr.f32.mxu0 %v219_v60  ;;  %2851 = vmatprep.mubr.f32.mxu1 %v801_v61  ;;  %v267_v60 = vld [vmem:[%s10353_s0 + $0x3e0] sm:$0xff]  ;;  %v849_v61 = vld [vmem:[%s10353_s0 + $0x1610] sm:$0xff] }
  0xaa   :  { %1882 = vmatmul.mubr.f32.gmra.mrb[50].mxu0 %v218_v62  ;;  %2852 = vmatmul.mubr.f32.gmra.mrb[50].mxu1 %v800_v63  ;;  %v266_v62 = vld [vmem:[%s10353_s0 + $0x3d8] sm:$0xff]  ;;  %v848_v63 = vld [vmem:[%s10353_s0 + $0x1608] sm:$0xff] }
  0xab   :  { %1886 = vmatprep.mubr.f32.mxu0 %v222_v1  ;;  %2856 = vmatprep.mubr.f32.mxu1 %v804_v2  ;;  %v270_v1 = vld [vmem:[%s10353_s0 + $0x3f8] sm:$0xff]  ;;  %v852_v2 = vld [vmem:[%s10353_s0 + $0x1628] sm:$0xff] }
  0xae   :  { %1887 = vmatmul.mubr.f32.gmra.mrb[52].mxu0 %v221_v3  ;;  %2857 = vmatmul.mubr.f32.gmra.mrb[52].mxu1 %v803_v4  ;;  %v269_v3 = vld [vmem:[%s10353_s0 + $0x3f0] sm:$0xff]  ;;  %v851_v4 = vld [vmem:[%s10353_s0 + $0x1620] sm:$0xff] }
  0xaf   :  { %1891 = vmatprep.mubr.f32.mxu0 %v225_v5  ;;  %2861 = vmatprep.mubr.f32.mxu1 %v807_v0  ;;  %v273_v5 = vld [vmem:[%s10353_s0 + $0x410] sm:$0xff]  ;;  %v855_v0 = vld [vmem:[%s10353_s0 + $0x1640] sm:$0xff] }
  0xb2   :  { %1892 = vmatmul.mubr.f32.gmra.mrb[54].mxu0 %v224_v6  ;;  %2862 = vmatmul.mubr.f32.gmra.mrb[54].mxu1 %v806_v7  ;;  %v272_v6 = vld [vmem:[%s10353_s0 + $0x408] sm:$0xff]  ;;  %v854_v7 = vld [vmem:[%s10353_s0 + $0x1638] sm:$0xff] }
  0xb3   :  { %1896 = vmatprep.mubr.f32.mxu0 %v228_v8  ;;  %2866 = vmatprep.mubr.f32.mxu1 %v810_v9  ;;  %v276_v8 = vld [vmem:[%s10353_s0 + $0x428] sm:$0xff]  ;;  %v858_v9 = vld [vmem:[%s10353_s0 + $0x1658] sm:$0xff] }
  0xb6   :  { %1897 = vmatmul.mubr.f32.gmra.mrb[56].mxu0 %v227_v10  ;;  %2867 = vmatmul.mubr.f32.gmra.mrb[56].mxu1 %v809_v11  ;;  %v275_v10 = vld [vmem:[%s10353_s0 + $0x420] sm:$0xff]  ;;  %v857_v11 = vld [vmem:[%s10353_s0 + $0x1650] sm:$0xff] }
  0xb7   :  { %1901 = vmatprep.mubr.f32.mxu0 %v231_v12  ;;  %2871 = vmatprep.mubr.f32.mxu1 %v813_v13  ;;  %v279_v12 = vld [vmem:[%s10353_s0 + $0x440] sm:$0xff]  ;;  %v861_v13 = vld [vmem:[%s10353_s0 + $0x1670] sm:$0xff] }
  0xba   :  { %1902 = vmatmul.mubr.f32.gmra.mrb[58].mxu0 %v230_v14  ;;  %2872 = vmatmul.mubr.f32.gmra.mrb[58].mxu1 %v812_v15  ;;  %v278_v14 = vld [vmem:[%s10353_s0 + $0x438] sm:$0xff]  ;;  %v860_v15 = vld [vmem:[%s10353_s0 + $0x1668] sm:$0xff] }
  0xbb   :  { %1906 = vmatprep.mubr.f32.mxu0 %v234_v16  ;;  %2876 = vmatprep.mubr.f32.mxu1 %v816_v17  ;;  %v282_v16 = vld [vmem:[%s10353_s0 + $0x458] sm:$0xff]  ;;  %v864_v17 = vld [vmem:[%s10353_s0 + $0x1688] sm:$0xff] }
  0xbe   :  { %1907 = vmatmul.mubr.f32.gmra.mrb[60].mxu0 %v233_v18  ;;  %2877 = vmatmul.mubr.f32.gmra.mrb[60].mxu1 %v815_v19  ;;  %v281_v18 = vld [vmem:[%s10353_s0 + $0x450] sm:$0xff]  ;;  %v863_v19 = vld [vmem:[%s10353_s0 + $0x1680] sm:$0xff] }
  0xbf   :  { %1911 = vmatprep.mubr.f32.mxu0 %v237_v20  ;;  %2881 = vmatprep.mubr.f32.mxu1 %v819_v21  ;;  %v285_v20 = vld [vmem:[%s10353_s0 + $0x470] sm:$0xff]  ;;  %v867_v21 = vld [vmem:[%s10353_s0 + $0x16a0] sm:$0xff] }
  0xc2   :  { %1912 = vmatmul.mubr.f32.gmra.mrb[62].mxu0 %v236_v22  ;;  %2882 = vmatmul.mubr.f32.gmra.mrb[62].mxu1 %v818_v23  ;;  %v284_v22 = vld [vmem:[%s10353_s0 + $0x468] sm:$0xff]  ;;  %v866_v23 = vld [vmem:[%s10353_s0 + $0x1698] sm:$0xff] }
  0xc3   :  { %1916 = vmatprep.mubr.f32.mxu0 %v240_v24  ;;  %2886 = vmatprep.mubr.f32.mxu1 %v822_v25  ;;  %v288_v24 = vld [vmem:[%s10353_s0 + $0x488] sm:$0xff]  ;;  %v870_v25 = vld [vmem:[%s10353_s0 + $0x16b8] sm:$0xff] }
  0xc6   :  { %1917 = vmatmul.mubr.f32.gmra.mrb[64].mxu0 %v239_v26  ;;  %2887 = vmatmul.mubr.f32.gmra.mrb[64].mxu1 %v821_v27  ;;  %v287_v26 = vld [vmem:[%s10353_s0 + $0x480] sm:$0xff]  ;;  %v869_v27 = vld [vmem:[%s10353_s0 + $0x16b0] sm:$0xff] }
  0xc7   :  { %1921 = vmatprep.mubr.f32.mxu0 %v243_v28  ;;  %2891 = vmatprep.mubr.f32.mxu1 %v825_v29  ;;  %v291_v28 = vld [vmem:[%s10353_s0 + $0x4a0] sm:$0xff]  ;;  %v873_v29 = vld [vmem:[%s10353_s0 + $0x16d0] sm:$0xff] }
  0xca   :  { %1922 = vmatmul.mubr.f32.gmra.mrb[66].mxu0 %v242_v30  ;;  %2892 = vmatmul.mubr.f32.gmra.mrb[66].mxu1 %v824_v31  ;;  %v290_v30 = vld [vmem:[%s10353_s0 + $0x498] sm:$0xff]  ;;  %v872_v31 = vld [vmem:[%s10353_s0 + $0x16c8] sm:$0xff] }
  0xcb   :  { %1926 = vmatprep.mubr.f32.mxu0 %v246_v32  ;;  %2896 = vmatprep.mubr.f32.mxu1 %v828_v33  ;;  %v294_v32 = vld [vmem:[%s10353_s0 + $0x4b8] sm:$0xff]  ;;  %v876_v33 = vld [vmem:[%s10353_s0 + $0x16e8] sm:$0xff] }
  0xce   :  { %1927 = vmatmul.mubr.f32.gmra.mrb[68].mxu0 %v245_v34  ;;  %2897 = vmatmul.mubr.f32.gmra.mrb[68].mxu1 %v827_v35  ;;  %v293_v34 = vld [vmem:[%s10353_s0 + $0x4b0] sm:$0xff]  ;;  %v875_v35 = vld [vmem:[%s10353_s0 + $0x16e0] sm:$0xff] }
  0xcf   :  { %1931 = vmatprep.mubr.f32.mxu0 %v249_v36  ;;  %2901 = vmatprep.mubr.f32.mxu1 %v831_v37  ;;  %v297_v36 = vld [vmem:[%s10353_s0 + $0x4d0] sm:$0xff]  ;;  %v879_v37 = vld [vmem:[%s10353_s0 + $0x1700] sm:$0xff] }
  0xd2   :  { %1932 = vmatmul.mubr.f32.gmra.mrb[70].mxu0 %v248_v38  ;;  %2902 = vmatmul.mubr.f32.gmra.mrb[70].mxu1 %v830_v39  ;;  %v296_v38 = vld [vmem:[%s10353_s0 + $0x4c8] sm:$0xff]  ;;  %v878_v39 = vld [vmem:[%s10353_s0 + $0x16f8] sm:$0xff] }
  0xd3   :  { %1936 = vmatprep.mubr.f32.mxu0 %v252_v40  ;;  %2906 = vmatprep.mubr.f32.mxu1 %v834_v41  ;;  %v300_v40 = vld [vmem:[%s10353_s0 + $0x4e8] sm:$0xff]  ;;  %v882_v41 = vld [vmem:[%s10353_s0 + $0x1718] sm:$0xff] }
  0xd6   :  { %1937 = vmatmul.mubr.f32.gmra.mrb[72].mxu0 %v251_v42  ;;  %2907 = vmatmul.mubr.f32.gmra.mrb[72].mxu1 %v833_v43  ;;  %v299_v42 = vld [vmem:[%s10353_s0 + $0x4e0] sm:$0xff]  ;;  %v881_v43 = vld [vmem:[%s10353_s0 + $0x1710] sm:$0xff] }
  0xd7   :  { %1941 = vmatprep.mubr.f32.mxu0 %v255_v44  ;;  %2911 = vmatprep.mubr.f32.mxu1 %v837_v45  ;;  %v303_v44 = vld [vmem:[%s10353_s0 + $0x500] sm:$0xff]  ;;  %v885_v45 = vld [vmem:[%s10353_s0 + $0x1730] sm:$0xff] }
  0xda   :  { %1942 = vmatmul.mubr.f32.gmra.mrb[74].mxu0 %v254_v46  ;;  %2912 = vmatmul.mubr.f32.gmra.mrb[74].mxu1 %v836_v47  ;;  %v302_v46 = vld [vmem:[%s10353_s0 + $0x4f8] sm:$0xff]  ;;  %v884_v47 = vld [vmem:[%s10353_s0 + $0x1728] sm:$0xff] }
  0xdb   :  { %1946 = vmatprep.mubr.f32.mxu0 %v258_v48  ;;  %2916 = vmatprep.mubr.f32.mxu1 %v840_v49  ;;  %v306_v48 = vld [vmem:[%s10353_s0 + $0x518] sm:$0xff]  ;;  %v888_v49 = vld [vmem:[%s10353_s0 + $0x1748] sm:$0xff] }
  0xde   :  { %1947 = vmatmul.mubr.f32.gmra.mrb[76].mxu0 %v257_v50  ;;  %2917 = vmatmul.mubr.f32.gmra.mrb[76].mxu1 %v839_v51 }
  0xdf   :  { %1951 = vmatprep.mubr.f32.mxu0 %v261_v52  ;;  %2921 = vmatprep.mubr.f32.mxu1 %v843_v53 }
  0xe2   :  { %1952 = vmatmul.mubr.f32.gmra.mrb[78].mxu0 %v260_v54  ;;  %2922 = vmatmul.mubr.f32.gmra.mrb[78].mxu1 %v842_v55  ;;  %v305_v54 = vld [vmem:[%s10353_s0 + $0x510] sm:$0xff]  ;;  %v887_v55 = vld [vmem:[%s10353_s0 + $0x1740] sm:$0xff] }
  0xe3   :  { %1956 = vmatprep.mubr.f32.mxu0 %v264_v56  ;;  %2926 = vmatprep.mubr.f32.mxu1 %v846_v57  ;;  %v309_v56 = vld [vmem:[%s10353_s0 + $0x530] sm:$0xff]  ;;  %v891_v57 = vld [vmem:[%s10353_s0 + $0x1760] sm:$0xff] }
  0xe6   :  { %1957 = vmatmul.mubr.f32.gmra.mrb[80].mxu0 %v263_v58  ;;  %2927 = vmatmul.mubr.f32.gmra.mrb[80].mxu1 %v845_v59 }
  0xe7   :  { %1961 = vmatprep.mubr.f32.mxu0 %v267_v60  ;;  %2931 = vmatprep.mubr.f32.mxu1 %v849_v61 }
  0xea   :  { %1962 = vmatmul.mubr.f32.gmra.mrb[82].mxu0 %v266_v62  ;;  %2932 = vmatmul.mubr.f32.gmra.mrb[82].mxu1 %v848_v63  ;;  %v308_v62 = vld [vmem:[%s10353_s0 + $0x528] sm:$0xff]  ;;  %v890_v63 = vld [vmem:[%s10353_s0 + $0x1758] sm:$0xff] }
  0xeb   :  { %1966 = vmatprep.mubr.f32.mxu0 %v270_v1  ;;  %2936 = vmatprep.mubr.f32.mxu1 %v852_v2  ;;  %v312_v1 = vld [vmem:[%s10353_s0 + $0x548] sm:$0xff]  ;;  %v894_v2 = vld [vmem:[%s10353_s0 + $0x1778] sm:$0xff] }
  0xee   :  { %1967 = vmatmul.mubr.f32.gmra.mrb[84].mxu0 %v269_v3  ;;  %2937 = vmatmul.mubr.f32.gmra.mrb[84].mxu1 %v851_v4 }
  0xef   :  { %1971 = vmatprep.mubr.f32.mxu0 %v273_v5  ;;  %2941 = vmatprep.mubr.f32.mxu1 %v855_v0 }
  0xf2   :  { %1972 = vmatmul.mubr.f32.gmra.mrb[86].mxu0 %v272_v6  ;;  %2942 = vmatmul.mubr.f32.gmra.mrb[86].mxu1 %v854_v7  ;;  %v311_v6 = vld [vmem:[%s10353_s0 + $0x540] sm:$0xff]  ;;  %v893_v7 = vld [vmem:[%s10353_s0 + $0x1770] sm:$0xff] }
  0xf3   :  { %1976 = vmatprep.mubr.f32.mxu0 %v276_v8  ;;  %2946 = vmatprep.mubr.f32.mxu1 %v858_v9  ;;  %v315_v8 = vld [vmem:[%s10353_s0 + $0x560] sm:$0xff]  ;;  %v897_v9 = vld [vmem:[%s10353_s0 + $0x1790] sm:$0xff] }
  0xf6   :  { %1977 = vmatmul.mubr.f32.gmra.mrb[88].mxu0 %v275_v10  ;;  %2947 = vmatmul.mubr.f32.gmra.mrb[88].mxu1 %v857_v11 }
  0xf7   :  { %1981 = vmatprep.mubr.f32.mxu0 %v279_v12  ;;  %2951 = vmatprep.mubr.f32.mxu1 %v861_v13 }
  0xfa   :  { %1982 = vmatmul.mubr.f32.gmra.mrb[90].mxu0 %v278_v14  ;;  %2952 = vmatmul.mubr.f32.gmra.mrb[90].mxu1 %v860_v15  ;;  %v314_v14 = vld [vmem:[%s10353_s0 + $0x558] sm:$0xff]  ;;  %v896_v15 = vld [vmem:[%s10353_s0 + $0x1788] sm:$0xff] }
  0xfb   :  { %1986 = vmatprep.mubr.f32.mxu0 %v282_v16  ;;  %2956 = vmatprep.mubr.f32.mxu1 %v864_v17  ;;  %v318_v16 = vld [vmem:[%s10353_s0 + $0x578] sm:$0xff]  ;;  %v900_v17 = vld [vmem:[%s10353_s0 + $0x17a8] sm:$0xff] }
  0xfe   :  { %1987 = vmatmul.mubr.f32.gmra.mrb[92].mxu0 %v281_v18  ;;  %2957 = vmatmul.mubr.f32.gmra.mrb[92].mxu1 %v863_v19 }
  0xff   :  { %1991 = vmatprep.mubr.f32.mxu0 %v285_v20  ;;  %2961 = vmatprep.mubr.f32.mxu1 %v867_v21 }
 0x102   :  { %1992 = vmatmul.mubr.f32.gmra.mrb[94].mxu0 %v284_v22  ;;  %2962 = vmatmul.mubr.f32.gmra.mrb[94].mxu1 %v866_v23  ;;  %v317_v22 = vld [vmem:[%s10353_s0 + $0x570] sm:$0xff]  ;;  %v899_v23 = vld [vmem:[%s10353_s0 + $0x17a0] sm:$0xff] }
 0x103   :  { %1996 = vmatprep.mubr.f32.mxu0 %v288_v24  ;;  %2966 = vmatprep.mubr.f32.mxu1 %v870_v25  ;;  %v321_v24 = vld [vmem:[%s10353_s0 + $0x590] sm:$0xff]  ;;  %v903_v25 = vld [vmem:[%s10353_s0 + $0x17c0] sm:$0xff] }
 0x106   :  { %1997 = vmatmul.mubr.f32.gmra.mrb[96].mxu0 %v287_v26  ;;  %2967 = vmatmul.mubr.f32.gmra.mrb[96].mxu1 %v869_v27 }
 0x107   :  { %2001 = vmatprep.mubr.f32.mxu0 %v291_v28  ;;  %2971 = vmatprep.mubr.f32.mxu1 %v873_v29 }
 0x10a   :  { %2002 = vmatmul.mubr.f32.gmra.mrb[98].mxu0 %v290_v30  ;;  %2972 = vmatmul.mubr.f32.gmra.mrb[98].mxu1 %v872_v31  ;;  %v320_v30 = vld [vmem:[%s10353_s0 + $0x588] sm:$0xff]  ;;  %v902_v31 = vld [vmem:[%s10353_s0 + $0x17b8] sm:$0xff] }
 0x10b   :  { %2006 = vmatprep.mubr.f32.mxu0 %v294_v32  ;;  %2976 = vmatprep.mubr.f32.mxu1 %v876_v33  ;;  %v324_v32 = vld [vmem:[%s10353_s0 + $0x5a8] sm:$0xff]  ;;  %v906_v33 = vld [vmem:[%s10353_s0 + $0x17d8] sm:$0xff] }
 0x10e   :  { %2007 = vmatmul.mubr.f32.gmra.mrb[100].mxu0 %v293_v34  ;;  %2977 = vmatmul.mubr.f32.gmra.mrb[100].mxu1 %v875_v35 }
 0x10f   :  { %2011 = vmatprep.mubr.f32.mxu0 %v297_v36  ;;  %2981 = vmatprep.mubr.f32.mxu1 %v879_v37 }
 0x112   :  { %2012 = vmatmul.mubr.f32.gmra.mrb[102].mxu0 %v296_v38  ;;  %2982 = vmatmul.mubr.f32.gmra.mrb[102].mxu1 %v878_v39  ;;  %v323_v38 = vld [vmem:[%s10353_s0 + $0x5a0] sm:$0xff]  ;;  %v905_v39 = vld [vmem:[%s10353_s0 + $0x17d0] sm:$0xff] }
 0x113   :  { %2016 = vmatprep.mubr.f32.mxu0 %v300_v40  ;;  %2986 = vmatprep.mubr.f32.mxu1 %v882_v41  ;;  %v327_v40 = vld [vmem:[%s10353_s0 + $0x5c0] sm:$0xff]  ;;  %v909_v41 = vld [vmem:[%s10353_s0 + $0x17f0] sm:$0xff] }
 0x116   :  { %2017 = vmatmul.mubr.f32.gmra.mrb[104].mxu0 %v299_v42  ;;  %2987 = vmatmul.mubr.f32.gmra.mrb[104].mxu1 %v881_v43 }
 0x117   :  { %2021 = vmatprep.mubr.f32.mxu0 %v303_v44  ;;  %2991 = vmatprep.mubr.f32.mxu1 %v885_v45 }
 0x119   :  { %v6667_v50 = vpop.f32.mrb[0].mxu0  ;;  %v6669_v51 = vpop.f32.mrb[0].mxu1 }
 0x11a   :  { %10355 = vst [vmem:[#allocation2_spill] sm:$0xff] %v6669_v51  ;;  %v1760_v52 = vpop.f32.mrb[1].mxu0  ;;  %2022 = vmatmul.mubr.f32.gmra.mrb[106].mxu0 %v302_v46  ;;  %2992 = vmatmul.mubr.f32.gmra.mrb[106].mxu1 %v884_v47  ;;  %v2730_v53 = vpop.f32.mrb[1].mxu1  ;;  %v326_v46 = vld [vmem:[%s10353_s0 + $0x5b8] sm:$0xff]  ;;  %v908_v47 = vld [vmem:[%s10353_s0 + $0x17e8] sm:$0xff] }
 0x11b   :  { %2026 = vmatprep.mubr.f32.mxu0 %v306_v48  ;;  %2996 = vmatprep.mubr.f32.mxu1 %v888_v49  ;;  %v330_v48 = vld [vmem:[%s10353_s0 + $0x5d8] sm:$0xff]  ;;  %v912_v49 = vld [vmem:[%s10353_s0 + $0x1808] sm:$0xff] }
 0x11c   :  { %v406_v51 = vld [vmem:[%s10353_s0 + $0x838] sm:$0xff] }
 0x11d   :  { %v6683_v58 = vpop.f32.mrb[2].mxu0  ;;  %v6685_v59 = vpop.f32.mrb[2].mxu1 }
 0x11e   :  { %10356 = vst [vmem:[#allocation3_spill] sm:$0xff] %v6685_v59  ;;  %v1765_v60 = vpop.f32.mrb[3].mxu0  ;;  %2027 = vmatmul.mubr.f32.gmra.mrb[108].mxu0 %v305_v54  ;;  %2997 = vmatmul.mubr.f32.gmra.mrb[108].mxu1 %v887_v55  ;;  %v2735_v61 = vpop.f32.mrb[3].mxu1  ;;  %v412_v59 = vld [vmem:[%s10353_s0 + $0x868] sm:$0xff] }
 0x11f   :  { %2031 = vmatprep.mubr.f32.mxu0 %v309_v56  ;;  %3001 = vmatprep.mubr.f32.mxu1 %v891_v57  ;;  %v329_v56 = vld [vmem:[%s10353_s0 + $0x5d0] sm:$0xff]  ;;  %v911_v57 = vld [vmem:[%s10353_s0 + $0x1800] sm:$0xff] }
 0x120   :  { %v333_v60 = vld [vmem:[%s10353_s0 + $0x5f0] sm:$0xff]  ;;  %v915_v61 = vld [vmem:[%s10353_s0 + $0x1820] sm:$0xff] }
 0x121   :  { %v6699_v3 = vpop.f32.mrb[4].mxu0  ;;  %v6701_v4 = vpop.f32.mrb[4].mxu1 }
 0x122   :  { %10357 = vst [vmem:[#allocation4_spill] sm:$0xff] %v6701_v4  ;;  %v1770_v5 = vpop.f32.mrb[5].mxu0  ;;  %2032 = vmatmul.mubr.f32.gmra.mrb[110].mxu0 %v308_v62  ;;  %3002 = vmatmul.mubr.f32.gmra.mrb[110].mxu1 %v890_v63  ;;  %v2740_v0 = vpop.f32.mrb[5].mxu1  ;;  %v394_v4 = vld [vmem:[%s10353_s0 + $0x7d8] sm:$0xff] }
 0x123   :  { %2036 = vmatprep.mubr.f32.mxu0 %v312_v1  ;;  %3006 = vmatprep.mubr.f32.mxu1 %v894_v2  ;;  %v332_v5 = vld [vmem:[%s10353_s0 + $0x5e8] sm:$0xff]  ;;  %v914_v0 = vld [vmem:[%s10353_s0 + $0x1818] sm:$0xff] }
 0x125   :  { %v6715_v10 = vpop.f32.mrb[6].mxu0  ;;  %v6717_v11 = vpop.f32.mrb[6].mxu1 }
 0x126   :  { %10358 = vst [vmem:[#allocation5_spill] sm:$0xff] %v6717_v11  ;;  %v1775_v12 = vpop.f32.mrb[7].mxu0  ;;  %2037 = vmatmul.mubr.f32.gmra.mrb[112].mxu0 %v311_v6  ;;  %3007 = vmatmul.mubr.f32.gmra.mrb[112].mxu1 %v893_v7  ;;  %v2745_v13 = vpop.f32.mrb[7].mxu1  ;;  %v336_v6 = vld [vmem:[%s10353_s0 + $0x608] sm:$0xff]  ;;  %v145_v7 = vld [vmem:[%s10353_s0 + $0x10] sm:$0xff] }
 0x127   :  { %2041 = vmatprep.mubr.f32.mxu0 %v315_v8  ;;  %3011 = vmatprep.mubr.f32.mxu1 %v897_v9  ;;  %v400_v11 = vld [vmem:[%s10353_s0 + $0x808] sm:$0xff] }
 0x129   :  { %v6731_v18 = vpop.f32.mrb[8].mxu0  ;;  %v6733_v19 = vpop.f32.mrb[8].mxu1 }
 0x12a   :  { %10359 = vst [vmem:[#allocation6_spill] sm:$0xff] %v6733_v19  ;;  %v1780_v20 = vpop.f32.mrb[9].mxu0  ;;  %2042 = vmatmul.mubr.f32.gmra.mrb[114].mxu0 %v314_v14  ;;  %3012 = vmatmul.mubr.f32.gmra.mrb[114].mxu1 %v896_v15  ;;  %v2750_v21 = vpop.f32.mrb[9].mxu1  ;;  %v335_v14 = vld [vmem:[%s10353_s0 + $0x600] sm:$0xff]  ;;  %v148_v15 = vld [vmem:[%s10353_s0 + $0x28] sm:$0xff]  ;;  %v382_v19 = vld [vmem:[%s10353_s0 + $0x778] sm:$0xff] }
 0x12b   :  { %2046 = vmatprep.mubr.f32.mxu0 %v318_v16  ;;  %3016 = vmatprep.mubr.f32.mxu1 %v900_v17  ;;  %v339_v16 = vld [vmem:[%s10353_s0 + $0x620] sm:$0xff] }
 0x12c   :  { %v151_v17 = vld [vmem:[%s10353_s0 + $0x40] sm:$0xff] }
 0x12d   :  { %v6747_v26 = vpop.f32.mrb[10].mxu0  ;;  %v6749_v27 = vpop.f32.mrb[10].mxu1 }
 0x12e   :  { %10360 = vst [vmem:[#allocation7_spill] sm:$0xff] %v6749_v27  ;;  %v1785_v28 = vpop.f32.mrb[11].mxu0  ;;  %2047 = vmatmul.mubr.f32.gmra.mrb[116].mxu0 %v317_v22  ;;  %3017 = vmatmul.mubr.f32.gmra.mrb[116].mxu1 %v899_v23  ;;  %v2755_v29 = vpop.f32.mrb[11].mxu1  ;;  %v388_v27 = vld [vmem:[%s10353_s0 + $0x7a8] sm:$0xff] }
 0x12f   :  { %2051 = vmatprep.mubr.f32.mxu0 %v321_v24  ;;  %3021 = vmatprep.mubr.f32.mxu1 %v903_v25  ;;  %v338_v24 = vld [vmem:[%s10353_s0 + $0x618] sm:$0xff]  ;;  %v157_v29 = vld [vmem:[%s10353_s0 + $0x70] sm:$0xff] }
 0x130   :  { %v154_v25 = vld [vmem:[%s10353_s0 + $0x58] sm:$0xff] }
 0x131   :  { %v6763_v34 = vpop.f32.mrb[12].mxu0  ;;  %v6765_v35 = vpop.f32.mrb[12].mxu1  ;;  %v342_v28 = vld [vmem:[%s10353_s0 + $0x638] sm:$0xff] }
 0x132   :  { %10361 = vst [vmem:[#allocation8_spill] sm:$0xff] %v6765_v35  ;;  %v1790_v36 = vpop.f32.mrb[13].mxu0  ;;  %2052 = vmatmul.mubr.f32.gmra.mrb[118].mxu0 %v320_v30  ;;  %3022 = vmatmul.mubr.f32.gmra.mrb[118].mxu1 %v902_v31  ;;  %v2760_v37 = vpop.f32.mrb[13].mxu1  ;;  %v370_v35 = vld [vmem:[%s10353_s0 + $0x718] sm:$0xff] }
 0x133   :  { %2056 = vmatprep.mubr.f32.mxu0 %v324_v32  ;;  %3026 = vmatprep.mubr.f32.mxu1 %v906_v33  ;;  %v341_v36 = vld [vmem:[%s10353_s0 + $0x630] sm:$0xff]  ;;  %v160_v37 = vld [vmem:[%s10353_s0 + $0x88] sm:$0xff] }
 0x135   :  { %v6779_v42 = vpop.f32.mrb[14].mxu0  ;;  %v6781_v43 = vpop.f32.mrb[14].mxu1 }
 0x136   :  { %10362 = vst [vmem:[#allocation9_spill] sm:$0xff] %v6781_v43  ;;  %v1795_v44 = vpop.f32.mrb[15].mxu0  ;;  %2057 = vmatmul.mubr.f32.gmra.mrb[120].mxu0 %v323_v38  ;;  %3027 = vmatmul.mubr.f32.gmra.mrb[120].mxu1 %v905_v39  ;;  %v2765_v45 = vpop.f32.mrb[15].mxu1  ;;  %v345_v38 = vld [vmem:[%s10353_s0 + $0x650] sm:$0xff]  ;;  %v163_v39 = vld [vmem:[%s10353_s0 + $0xa0] sm:$0xff]  ;;  %v376_v43 = vld [vmem:[%s10353_s0 + $0x748] sm:$0xff] }
 0x137   :  { %2061 = vmatprep.mubr.f32.mxu0 %v327_v40  ;;  %3031 = vmatprep.mubr.f32.mxu1 %v909_v41 }
 0x139   :  { %v6795_v52 = vpop.f32.mrb[16].mxu0  ;;  %v6797_v53 = vpop.f32.mrb[16].mxu1 }
 0x13a   :  { %10363 = vst [vmem:[#allocation10_spill] sm:$0xff] %v6797_v53  ;;  %v1800_v54 = vpop.f32.mrb[17].mxu0  ;;  %2062 = vmatmul.mubr.f32.gmra.mrb[122].mxu0 %v326_v46  ;;  %3032 = vmatmul.mubr.f32.gmra.mrb[122].mxu1 %v908_v47  ;;  %v2770_v55 = vpop.f32.mrb[17].mxu1  ;;  %v344_v46 = vld [vmem:[%s10353_s0 + $0x648] sm:$0xff]  ;;  %v166_v47 = vld [vmem:[%s10353_s0 + $0xb8] sm:$0xff] }
 0x13b   :  { %2066 = vmatprep.mubr.f32.mxu0 %v330_v48  ;;  %3036 = vmatprep.mubr.f32.mxu1 %v912_v49  ;;  %v348_v48 = vld [vmem:[%s10353_s0 + $0x668] sm:$0xff]  ;;  %v169_v49 = vld [vmem:[%s10353_s0 + $0xd0] sm:$0xff]  ;;  %v358_v53 = vld [vmem:[%s10353_s0 + $0x6b8] sm:$0xff] }
 0x13d   :  { %v6811_v62 = vpop.f32.mrb[18].mxu0  ;;  %v6813_v63 = vpop.f32.mrb[18].mxu1 }
 0x13e   :  { %10364 = vst [vmem:[#allocation11_spill] sm:$0xff] %v6813_v63  ;;  %v1805_v1 = vpop.f32.mrb[19].mxu0  ;;  %2067 = vmatmul.mubr.f32.gmra.mrb[124].mxu0 %v329_v56  ;;  %3037 = vmatmul.mubr.f32.gmra.mrb[124].mxu1 %v911_v57  ;;  %v2775_v2 = vpop.f32.mrb[19].mxu1  ;;  %v364_v63 = vld [vmem:[%s10353_s0 + $0x6e8] sm:$0xff] }
 0x13f   :  { %2071 = vmatprep.mubr.f32.mxu0 %v333_v60  ;;  %3041 = vmatprep.mubr.f32.mxu1 %v915_v61  ;;  %v347_v60 = vld [vmem:[%s10353_s0 + $0x660] sm:$0xff]  ;;  %v172_v61 = vld [vmem:[%s10353_s0 + $0xe8] sm:$0xff] }
 0x140   :  { %v351_v1 = vld [vmem:[%s10353_s0 + $0x680] sm:$0xff] }
 0x141   :  { %v6827_v8 = vpop.f32.mrb[20].mxu0  ;;  %v6829_v9 = vpop.f32.mrb[20].mxu1  ;;  %v175_v2 = vld [vmem:[%s10353_s0 + $0x100] sm:$0xff] }
 0x142   :  { %10365 = vst [vmem:[#allocation12_spill] sm:$0xff] %v6829_v9  ;;  %v1810_v12 = vpop.f32.mrb[21].mxu0  ;;  %2072 = vmatmul.mubr.f32.gmra.mrb[126].mxu0 %v332_v5  ;;  %3042 = vmatmul.mubr.f32.gmra.mrb[126].mxu1 %v914_v0  ;;  %v2780_v13 = vpop.f32.mrb[21].mxu1  ;;  %v346_v9 = vld [vmem:[%s10353_s0 + $0x658] sm:$0xff] }
 0x143   :  { %2076 = vmatprep.mubr.f32.mxu0 %v336_v6  ;;  %5214 = vmatprep.mubr.msk.f32.mxu1 %vm917_vm0, %v145_v7  ;;  %v350_v12 = vld [vmem:[%s10353_s0 + $0x678] sm:$0xff] }
 0x144   :  { %v178_v13 = vld [vmem:[%s10353_s0 + $0x118] sm:$0xff] }
 0x145   :  { %v6844_v20 = vpop.f32.mrb[22].mxu0  ;;  %v6846_v21 = vpop.f32.mrb[22].mxu1 }
 0x146   :  { %10366 = vst [vmem:[#allocation13_spill] sm:$0xff] %v6846_v21  ;;  %v1815_v22 = vpop.f32.mrb[23].mxu0  ;;  %2077 = vmatmul.mubr.f32.gmra.mrb[128].mxu0 %v335_v14  ;;  %5215 = vmatmul.mubr.msk.f32.vlgmr.msra.gmra.mrb[128].mxu1 %vm917_vm0, %v148_v15  ;;  %v2785_v23 = vpop.f32.mrb[23].mxu1  ;;  %v354_v14 = vld [vmem:[%s10353_s0 + $0x698] sm:$0xff]  ;;  %v181_v15 = vld [vmem:[%s10353_s0 + $0x130] sm:$0xff]  ;;  %v352_v21 = vld [vmem:[%s10353_s0 + $0x688] sm:$0xff] }
 0x147   :  { %2081 = vmatprep.mubr.f32.mxu0 %v339_v16  ;;  %5217 = vmatprep.mubr.msk.f32.mxu1 %vm917_vm0, %v151_v17 }
 0x149   :  { %v6862_v30 = vpop.f32.mrb[24].mxu0  ;;  %v6864_v31 = vpop.f32.mrb[24].mxu1 }
 0x14a   :  { %10367 = vst [vmem:[#allocation14_spill] sm:$0xff] %v6864_v31  ;;  %v1820_v32 = vpop.f32.mrb[25].mxu0  ;;  %2082 = vmatmul.mubr.f32.gmra.mrb[130].mxu0 %v338_v24  ;;  %5218 = vmatmul.mubr.msk.f32.gmra.mrb[130].mxu1 %vm917_vm0, %v154_v25  ;;  %v2790_v33 = vpop.f32.mrb[25].mxu1  ;;  %v353_v24 = vld [vmem:[%s10353_s0 + $0x690] sm:$0xff]  ;;  %v184_v25 = vld [vmem:[%s10353_s0 + $0x148] sm:$0xff]  ;;  %v334_v31 = vld [vmem:[%s10353_s0 + $0x5f8] sm:$0xff] }
 0x14b   :  { %2086 = vmatprep.mubr.f32.mxu0 %v342_v28  ;;  %5220 = vmatprep.mubr.msk.f32.mxu1 %vm917_vm0, %v157_v29  ;;  %v357_v28 = vld [vmem:[%s10353_s0 + $0x6b0] sm:$0xff]  ;;  %v187_v29 = vld [vmem:[%s10353_s0 + $0x160] sm:$0xff] }
 0x14d   :  { %v6880_v40 = vpop.f32.mrb[26].mxu0  ;;  %v6882_v41 = vpop.f32.mrb[26].mxu1 }
 0x14e   :  { %10368 = vst [vmem:[#allocation15_spill] sm:$0xff] %v6882_v41  ;;  %v1825_v44 = vpop.f32.mrb[27].mxu0  ;;  %2087 = vmatmul.mubr.f32.gmra.mrb[132].mxu0 %v341_v36  ;;  %5221 = vmatmul.mubr.msk.f32.gmra.mrb[132].mxu1 %vm917_vm0, %v160_v37  ;;  %v2795_v45 = vpop.f32.mrb[27].mxu1  ;;  %v340_v41 = vld [vmem:[%s10353_s0 + $0x628] sm:$0xff] }
 0x14f   :  { %2091 = vmatprep.mubr.f32.mxu0 %v345_v38  ;;  %5223 = vmatprep.mubr.msk.f32.mxu1 %vm917_vm0, %v163_v39  ;;  %v356_v38 = vld [vmem:[%s10353_s0 + $0x6a8] sm:$0xff]  ;;  %v190_v39 = vld [vmem:[%s10353_s0 + $0x178] sm:$0xff]  ;;  %v193_v45 = vld [vmem:[%s10353_s0 + $0x190] sm:$0xff] }
 0x150   :  { %v360_v44 = vld [vmem:[%s10353_s0 + $0x6c8] sm:$0xff] }
 0x151   :  { %v6898_v54 = vpop.f32.mrb[28].mxu0  ;;  %v6900_v55 = vpop.f32.mrb[28].mxu1 }
 0x152   :  { %10369 = vst [vmem:[#allocation16_spill] sm:$0xff] %v6900_v55  ;;  %v1830_v56 = vpop.f32.mrb[29].mxu0  ;;  %2092 = vmatmul.mubr.f32.gmra.mrb[134].mxu0 %v344_v46  ;;  %5224 = vmatmul.mubr.msk.f32.gmra.mrb[134].mxu1 %vm917_vm0, %v166_v47  ;;  %v2800_v57 = vpop.f32.mrb[29].mxu1  ;;  %v322_v55 = vld [vmem:[%s10353_s0 + $0x598] sm:$0xff] }
 0x153   :  { %2096 = vmatprep.mubr.f32.mxu0 %v348_v48  ;;  %5226 = vmatprep.mubr.msk.f32.mxu1 %vm917_vm0, %v169_v49  ;;  %v359_v56 = vld [vmem:[%s10353_s0 + $0x6c0] sm:$0xff]  ;;  %v196_v57 = vld [vmem:[%s10353_s0 + $0x1a8] sm:$0xff] }
 0x155   :  { %v6916_v5 = vpop.f32.mrb[30].mxu0  ;;  %v6918_v0 = vpop.f32.mrb[30].mxu1 }
 0x156   :  { %10370 = vst [vmem:[#allocation17_spill] sm:$0xff] %v6918_v0  ;;  %v1835_v6 = vpop.f32.mrb[31].mxu0  ;;  %2097 = vmatmul.mubr.f32.gmra.mrb[136].mxu0 %v347_v60  ;;  %5227 = vmatmul.mubr.msk.f32.gmra.mrb[136].mxu1 %vm917_vm0, %v172_v61  ;;  %v2805_v7 = vpop.f32.mrb[31].mxu1  ;;  %v363_v60 = vld [vmem:[%s10353_s0 + $0x6e0] sm:$0xff]  ;;  %v328_v0 = vld [vmem:[%s10353_s0 + $0x5c8] sm:$0xff] }
 0x157   :  { %2101 = vmatprep.mubr.f32.mxu0 %v351_v1  ;;  %5229 = vmatprep.mubr.msk.f32.mxu1 %vm917_vm0, %v175_v2  ;;  %v199_v61 = vld [vmem:[%s10353_s0 + $0x1c0] sm:$0xff] }
 0x159   :  { %v6934_v16 = vpop.f32.mrb[32].mxu0  ;;  %v6936_v17 = vpop.f32.mrb[32].mxu1 }
 0x15a   :  { %10371 = vst [vmem:[#allocation18_spill] sm:$0xff] %v6936_v17  ;;  %v1840_v22 = vpop.f32.mrb[33].mxu0  ;;  %2102 = vmatmul.mubr.f32.gmra.mrb[138].mxu0 %v350_v12  ;;  %5230 = vmatmul.mubr.msk.f32.gmra.mrb[138].mxu1 %vm917_vm0, %v178_v13  ;;  %v2810_v23 = vpop.f32.mrb[33].mxu1  ;;  %v362_v12 = vld [vmem:[%s10353_s0 + $0x6d8] sm:$0xff] }
 0x15b   :  { %2106 = vmatprep.mubr.f32.mxu0 %v354_v14  ;;  %5232 = vmatprep.mubr.msk.f32.mxu1 %vm917_vm0, %v181_v15  ;;  %v202_v13 = vld [vmem:[%s10353_s0 + $0x1d8] sm:$0xff]  ;;  %v205_v15 = vld [vmem:[%s10353_s0 + $0x1f0] sm:$0xff] }
 0x15c   :  { %v366_v14 = vld [vmem:[%s10353_s0 + $0x6f8] sm:$0xff] }
 0x15d   :  { %v6952_v32 = vpop.f32.mrb[34].mxu0  ;;  %v6954_v33 = vpop.f32.mrb[34].mxu1  ;;  %v310_v17 = vld [vmem:[%s10353_s0 + $0x538] sm:$0xff] }
 0x15e   :  { %10372 = vst [vmem:[#allocation19_spill] sm:$0xff] %v6954_v33  ;;  %v1845_v36 = vpop.f32.mrb[35].mxu0  ;;  %2107 = vmatmul.mubr.f32.gmra.mrb[140].mxu0 %v353_v24  ;;  %5233 = vmatmul.mubr.msk.f32.gmra.mrb[140].mxu1 %vm917_vm0, %v184_v25  ;;  %v2815_v37 = vpop.f32.mrb[35].mxu1  ;;  %v316_v33 = vld [vmem:[%s10353_s0 + $0x568] sm:$0xff] }
 0x15f   :  { %2111 = vmatprep.mubr.f32.mxu0 %v357_v28  ;;  %5235 = vmatprep.mubr.msk.f32.mxu1 %vm917_vm0, %v187_v29  ;;  %v365_v28 = vld [vmem:[%s10353_s0 + $0x6f0] sm:$0xff]  ;;  %v208_v29 = vld [vmem:[%s10353_s0 + $0x208] sm:$0xff]  ;;  %v211_v37 = vld [vmem:[%s10353_s0 + $0x220] sm:$0xff] }
 0x160   :  { %v369_v36 = vld [vmem:[%s10353_s0 + $0x710] sm:$0xff] }
 0x161   :  { %v6970_v46 = vpop.f32.mrb[36].mxu0  ;;  %v6972_v47 = vpop.f32.mrb[36].mxu1 }
 0x162   :  { %10373 = vst [vmem:[#allocation20_spill] sm:$0xff] %v6972_v47  ;;  %v1850_v48 = vpop.f32.mrb[37].mxu0  ;;  %2112 = vmatmul.mubr.f32.gmra.mrb[142].mxu0 %v356_v38  ;;  %5236 = vmatmul.mubr.msk.f32.gmra.mrb[142].mxu1 %vm917_vm0, %v190_v39  ;;  %v2820_v49 = vpop.f32.mrb[37].mxu1  ;;  %v298_v47 = vld [vmem:[%s10353_s0 + $0x4d8] sm:$0xff] }
 0x163   :  { %2116 = vmatprep.mubr.f32.mxu0 %v360_v44  ;;  %5238 = vmatprep.mubr.msk.f32.mxu1 %vm917_vm0, %v193_v45  ;;  %v368_v48 = vld [vmem:[%s10353_s0 + $0x708] sm:$0xff]  ;;  %v214_v49 = vld [vmem:[%s10353_s0 + $0x238] sm:$0xff] }
 0x165   :  { %v6988_v1 = vpop.f32.mrb[38].mxu0  ;;  %v6990_v2 = vpop.f32.mrb[38].mxu1 }
 0x166   :  { %10374 = vst [vmem:[#allocation21_spill] sm:$0xff] %v6990_v2  ;;  %v1855_v6 = vpop.f32.mrb[39].mxu0  ;;  %2117 = vmatmul.mubr.f32.gmra.mrb[144].mxu0 %v359_v56  ;;  %5239 = vmatmul.mubr.msk.f32.gmra.mrb[144].mxu1 %vm917_vm0, %v196_v57  ;;  %v2825_v7 = vpop.f32.mrb[39].mxu1  ;;  %v372_v56 = vld [vmem:[%s10353_s0 + $0x728] sm:$0xff]  ;;  %v217_v57 = vld [vmem:[%s10353_s0 + $0x250] sm:$0xff] }
 0x167   :  { %2121 = vmatprep.mubr.f32.mxu0 %v363_v60  ;;  %5241 = vmatprep.mubr.msk.f32.mxu1 %vm917_vm0, %v199_v61  ;;  %v304_v2 = vld [vmem:[%s10353_s0 + $0x508] sm:$0xff] }
 0x169   :  { %v7006_v22 = vpop.f32.mrb[40].mxu0  ;;  %v7008_v23 = vpop.f32.mrb[40].mxu1 }
 0x16a   :  { %10375 = vst [vmem:[#allocation22_spill] sm:$0xff] %v7008_v23  ;;  %v1860_v24 = vpop.f32.mrb[41].mxu0  ;;  %2122 = vmatmul.mubr.f32.gmra.mrb[146].mxu0 %v362_v12  ;;  %5242 = vmatmul.mubr.msk.f32.gmra.mrb[146].mxu1 %vm917_vm0, %v202_v13  ;;  %v2830_v25 = vpop.f32.mrb[41].mxu1  ;;  %v371_v12 = vld [vmem:[%s10353_s0 + $0x720] sm:$0xff]  ;;  %v220_v13 = vld [vmem:[%s10353_s0 + $0x268] sm:$0xff]  ;;  %v286_v23 = vld [vmem:[%s10353_s0 + $0x478] sm:$0xff] }
 0x16b   :  { %2126 = vmatprep.mubr.f32.mxu0 %v366_v14  ;;  %5244 = vmatprep.mubr.msk.f32.mxu1 %vm917_vm0, %v205_v15  ;;  %v375_v14 = vld [vmem:[%s10353_s0 + $0x740] sm:$0xff] }
 0x16c   :  { %v223_v15 = vld [vmem:[%s10353_s0 + $0x280] sm:$0xff] }
 0x16d   :  { %v7024_v38 = vpop.f32.mrb[42].mxu0  ;;  %v7026_v39 = vpop.f32.mrb[42].mxu1 }
 0x16e   :  { %10376 = vst [vmem:[#allocation23_spill] sm:$0xff] %v7026_v39  ;;  %v1865_v44 = vpop.f32.mrb[43].mxu0  ;;  %2127 = vmatmul.mubr.f32.gmra.mrb[148].mxu0 %v365_v28  ;;  %5245 = vmatmul.mubr.msk.f32.gmra.mrb[148].mxu1 %vm917_vm0, %v208_v29  ;;  %v2835_v45 = vpop.f32.mrb[43].mxu1  ;;  %v292_v39 = vld [vmem:[%s10353_s0 + $0x4a8] sm:$0xff] }
 0x16f   :  { %2131 = vmatprep.mubr.f32.mxu0 %v369_v36  ;;  %5247 = vmatprep.mubr.msk.f32.mxu1 %vm917_vm0, %v211_v37  ;;  %v374_v36 = vld [vmem:[%s10353_s0 + $0x738] sm:$0xff]  ;;  %v229_v45 = vld [vmem:[%s10353_s0 + $0x2b0] sm:$0xff] }
 0x170   :  { %v226_v37 = vld [vmem:[%s10353_s0 + $0x298] sm:$0xff] }
 0x171   :  { %v7042_v60 = vpop.f32.mrb[44].mxu0  ;;  %v7044_v61 = vpop.f32.mrb[44].mxu1  ;;  %v378_v44 = vld [vmem:[%s10353_s0 + $0x758] sm:$0xff] }
 0x172   :  { %10377 = vst [vmem:[#allocation24_spill] sm:$0xff] %v7044_v61  ;;  %v1870_v6 = vpop.f32.mrb[45].mxu0  ;;  %2132 = vmatmul.mubr.f32.gmra.mrb[150].mxu0 %v368_v48  ;;  %5248 = vmatmul.mubr.msk.f32.gmra.mrb[150].mxu1 %vm917_vm0, %v214_v49  ;;  %v2840_v7 = vpop.f32.mrb[45].mxu1  ;;  %v274_v61 = vld [vmem:[%s10353_s0 + $0x418] sm:$0xff] }
 0x173   :  { %2136 = vmatprep.mubr.f32.mxu0 %v372_v56  ;;  %5250 = vmatprep.mubr.msk.f32.mxu1 %vm917_vm0, %v217_v57  ;;  %v377_v6 = vld [vmem:[%s10353_s0 + $0x750] sm:$0xff]  ;;  %v232_v7 = vld [vmem:[%s10353_s0 + $0x2c8] sm:$0xff] }
 0x175   :  { %v7060_v24 = vpop.f32.mrb[46].mxu0  ;;  %v7062_v25 = vpop.f32.mrb[46].mxu1 }
 0x176   :  { %10378 = vst [vmem:[#allocation25_spill] sm:$0xff] %v7062_v25  ;;  %v1875_v28 = vpop.f32.mrb[47].mxu0  ;;  %2137 = vmatmul.mubr.f32.gmra.mrb[152].mxu0 %v371_v12  ;;  %5251 = vmatmul.mubr.msk.f32.gmra.mrb[152].mxu1 %vm917_vm0, %v220_v13  ;;  %v2845_v29 = vpop.f32.mrb[47].mxu1  ;;  %v381_v12 = vld [vmem:[%s10353_s0 + $0x770] sm:$0xff]  ;;  %v235_v13 = vld [vmem:[%s10353_s0 + $0x2e0] sm:$0xff]  ;;  %v280_v25 = vld [vmem:[%s10353_s0 + $0x448] sm:$0xff] }
 0x177   :  { %2141 = vmatprep.mubr.f32.mxu0 %v375_v14  ;;  %5253 = vmatprep.mubr.msk.f32.mxu1 %vm917_vm0, %v223_v15 }
 0x179   :  { %v7078_v48 = vpop.f32.mrb[48].mxu0  ;;  %v7080_v49 = vpop.f32.mrb[48].mxu1 }
 0x17a   :  { %10379 = vst [vmem:[#allocation26_spill] sm:$0xff] %v7080_v49  ;;  %v1880_v56 = vpop.f32.mrb[49].mxu0  ;;  %2142 = vmatmul.mubr.f32.gmra.mrb[154].mxu0 %v374_v36  ;;  %5254 = vmatmul.mubr.msk.f32.gmra.mrb[154].mxu1 %vm917_vm0, %v226_v37  ;;  %v2850_v57 = vpop.f32.mrb[49].mxu1  ;;  %v380_v36 = vld [vmem:[%s10353_s0 + $0x768] sm:$0xff]  ;;  %v238_v37 = vld [vmem:[%s10353_s0 + $0x2f8] sm:$0xff] }
 0x17b   :  { %2146 = vmatprep.mubr.f32.mxu0 %v378_v44  ;;  %5256 = vmatprep.mubr.msk.f32.mxu1 %vm917_vm0, %v229_v45  ;;  %v384_v44 = vld [vmem:[%s10353_s0 + $0x788] sm:$0xff]  ;;  %v241_v45 = vld [vmem:[%s10353_s0 + $0x310] sm:$0xff]  ;;  %v262_v49 = vld [vmem:[%s10353_s0 + $0x3b8] sm:$0xff] }
 0x17d   :  { %v7096_v14 = vpop.f32.mrb[50].mxu0  ;;  %v7098_v15 = vpop.f32.mrb[50].mxu1 }
 0x17e   :  { %10380 = vst [vmem:[#allocation27_spill] sm:$0xff] %v7098_v15  ;;  %v1885_v28 = vpop.f32.mrb[51].mxu0  ;;  %2147 = vmatmul.mubr.f32.gmra.mrb[156].mxu0 %v377_v6  ;;  %5257 = vmatmul.mubr.msk.f32.gmra.mrb[156].mxu1 %vm917_vm0, %v232_v7  ;;  %v2855_v29 = vpop.f32.mrb[51].mxu1  ;;  %v268_v15 = vld [vmem:[%s10353_s0 + $0x3e8] sm:$0xff] }
 0x17f   :  { %2151 = vmatprep.mubr.f32.mxu0 %v381_v12  ;;  %5259 = vmatprep.mubr.msk.f32.mxu1 %vm917_vm0, %v235_v13  ;;  %v383_v12 = vld [vmem:[%s10353_s0 + $0x780] sm:$0xff]  ;;  %v244_v13 = vld [vmem:[%s10353_s0 + $0x328] sm:$0xff] }
 0x180   :  { %v387_v28 = vld [vmem:[%s10353_s0 + $0x7a0] sm:$0xff] }
 0x181   :  { %v7114_v56 = vpop.f32.mrb[52].mxu0  ;;  %v7116_v57 = vpop.f32.mrb[52].mxu1  ;;  %v247_v29 = vld [vmem:[%s10353_s0 + $0x340] sm:$0xff] }
 0x182   :  { %10381 = vst [vmem:[#allocation28_spill] sm:$0xff] %v7116_v57  ;;  %v1890_v6 = vpop.f32.mrb[53].mxu0  ;;  %2152 = vmatmul.mubr.f32.gmra.mrb[158].mxu0 %v380_v36  ;;  %5260 = vmatmul.mubr.msk.f32.gmra.mrb[158].mxu1 %vm917_vm0, %v238_v37  ;;  %v2860_v7 = vpop.f32.mrb[53].mxu1  ;;  %v390_v57 = vld [vmem:[%s10353_s0 + $0x7b8] sm:$0xff] }
 0x183   :  { %2156 = vmatprep.mubr.f32.mxu0 %v384_v44  ;;  %5262 = vmatprep.mubr.msk.f32.mxu1 %vm917_vm0, %v241_v45  ;;  %v386_v6 = vld [vmem:[%s10353_s0 + $0x798] sm:$0xff] }
 0x184   :  { %v250_v7 = vld [vmem:[%s10353_s0 + $0x358] sm:$0xff] }
 0x185   :  { %v7132_v36 = vpop.f32.mrb[54].mxu0  ;;  %v7134_v37 = vpop.f32.mrb[54].mxu1 }
 0x186   :  { %10382 = vst [vmem:[#allocation29_spill] sm:$0xff] %v7134_v37  ;;  %v1895_v44 = vpop.f32.mrb[55].mxu0  ;;  %2157 = vmatmul.mubr.f32.gmra.mrb[160].mxu0 %v383_v12  ;;  %5263 = vmatmul.mubr.msk.f32.gmra.mrb[160].mxu1 %vm917_vm0, %v244_v13  ;;  %v2865_v45 = vpop.f32.mrb[55].mxu1  ;;  %v253_v12 = vld [vmem:[%s10353_s0 + $0x370] sm:$0xff]  ;;  %v256_v37 = vld [vmem:[%s10353_s0 + $0x388] sm:$0xff] }
 0x187   :  { %2161 = vmatprep.mubr.f32.mxu0 %v387_v28  ;;  %5265 = vmatprep.mubr.msk.f32.mxu1 %vm917_vm0, %v247_v29  ;;  %v389_v45 = vld [vmem:[%s10353_s0 + $0x7b0] sm:$0xff] }
 0x189   :  { %v7150_v13 = vpop.f32.mrb[56].mxu0  ;;  %v7152_v28 = vpop.f32.mrb[56].mxu1 }
 0x18a   :  { %10383 = vst [vmem:[#allocation30_spill] sm:$0xff] %v7152_v28  ;;  %v1900_v29 = vpop.f32.mrb[57].mxu0  ;;  %2162 = vmatmul.mubr.f32.gmra.mrb[162].mxu0 %v386_v6  ;;  %5266 = vmatmul.mubr.msk.f32.gmra.mrb[162].mxu1 %vm917_vm0, %v250_v7  ;;  %v2870_v44 = vpop.f32.mrb[57].mxu1  ;;  %v393_v28 = vld [vmem:[%s10353_s0 + $0x7d0] sm:$0xff]  ;;  %v259_v6 = vld [vmem:[%s10353_s0 + $0x3a0] sm:$0xff] }
 0x18b   :  { %2166 = vmatprep.mubr.f32.mxu0 %v390_v57  ;;  %5268 = vmatprep.mubr.msk.f32.mxu1 %vm917_vm0, %v253_v12  ;;  %v392_v44 = vld [vmem:[%s10353_s0 + $0x7c8] sm:$0xff] }
 0x18d   :  { %v7168_v7 = vpop.f32.mrb[58].mxu0  ;;  %v7170_v57 = vpop.f32.mrb[58].mxu1 }
 0x18e   :  { %10384 = vst [vmem:[#allocation31_spill] sm:$0xff] %v7170_v57  ;;  %v1905_v12 = vpop.f32.mrb[59].mxu0  ;;  %2167 = vmatmul.mubr.f32.gmra.mrb[164].mxu0 %v389_v45  ;;  %5269 = vmatmul.mubr.msk.f32.gmra.mrb[164].mxu1 %vm917_vm0, %v256_v37  ;;  %v2875_v29 = vpop.f32.mrb[59].mxu1  ;;  %v396_v57 = vld [vmem:[%s10353_s0 + $0x7e8] sm:$0xff]  ;;  %v265_v37 = vld [vmem:[%s10353_s0 + $0x3d0] sm:$0xff] }
 0x18f   :  { %2171 = vmatprep.mubr.f32.mxu0 %v393_v28  ;;  %5271 = vmatprep.mubr.msk.f32.mxu1 %vm917_vm0, %v259_v6  ;;  %v395_v29 = vld [vmem:[%s10353_s0 + $0x7e0] sm:$0xff] }
 0x191   :  { %v7186_v45 = vpop.f32.mrb[60].mxu0  ;;  %v7188_v28 = vpop.f32.mrb[60].mxu1 }
 0x192   :  { %10385 = vst [vmem:[#allocation32_spill] sm:$0xff] %v7188_v28  ;;  %v1910_v6 = vpop.f32.mrb[61].mxu0  ;;  %2172 = vmatmul.mubr.f32.gmra.mrb[166].mxu0 %v392_v44  ;;  %5272 = vmatmul.mubr.msk.f32.gmra.mrb[166].mxu1 %vm917_vm0, %v262_v49  ;;  %v2880_v12 = vpop.f32.mrb[61].mxu1  ;;  %v399_v28 = vld [vmem:[%s10353_s0 + $0x800] sm:$0xff] }
 0x193   :  { %2176 = vmatprep.mubr.f32.mxu0 %v396_v57  ;;  %5274 = vmatprep.mubr.msk.f32.mxu1 %vm917_vm0, %v265_v37  ;;  %v271_v49 = vld [vmem:[%s10353_s0 + $0x400] sm:$0xff]  ;;  %v398_v12 = vld [vmem:[%s10353_s0 + $0x7f8] sm:$0xff] }
 0x195   :  { %v7204_v44 = vpop.f32.mrb[62].mxu0  ;;  %v7206_v57 = vpop.f32.mrb[62].mxu1 }
 0x196   :  { %10386 = vst [vmem:[#allocation33_spill] sm:$0xff] %v7206_v57  ;;  %v1915_v37 = vpop.f32.mrb[63].mxu0  ;;  %2177 = vmatmul.mubr.f32.gmra.mrb[168].mxu0 %v395_v29  ;;  %5275 = vmatmul.mubr.msk.f32.gmra.mrb[168].mxu1 %vm917_vm0, %v268_v15  ;;  %v2885_v6 = vpop.f32.mrb[63].mxu1  ;;  %v402_v57 = vld [vmem:[%s10353_s0 + $0x818] sm:$0xff]  ;;  %v277_v15 = vld [vmem:[%s10353_s0 + $0x430] sm:$0xff] }
 0x197   :  { %2181 = vmatprep.mubr.f32.mxu0 %v399_v28  ;;  %5277 = vmatprep.mubr.msk.f32.mxu1 %vm917_vm0, %v271_v49  ;;  %v401_v6 = vld [vmem:[%s10353_s0 + $0x810] sm:$0xff] }
 0x199   :  { %v7222_v29 = vpop.f32.mrb[64].mxu0  ;;  %v7224_v28 = vpop.f32.mrb[64].mxu1 }
 0x19a   :  { %10387 = vst [vmem:[#allocation34_spill] sm:$0xff] %v7224_v28  ;;  %v1920_v49 = vpop.f32.mrb[65].mxu0  ;;  %2182 = vmatmul.mubr.f32.gmra.mrb[170].mxu0 %v398_v12  ;;  %5278 = vmatmul.mubr.msk.f32.gmra.mrb[170].mxu1 %vm917_vm0, %v274_v61  ;;  %v2890_v37 = vpop.f32.mrb[65].mxu1  ;;  %v405_v28 = vld [vmem:[%s10353_s0 + $0x830] sm:$0xff]  ;;  %v283_v61 = vld [vmem:[%s10353_s0 + $0x460] sm:$0xff] }
 0x19b   :  { %2186 = vmatprep.mubr.f32.mxu0 %v402_v57  ;;  %5280 = vmatprep.mubr.msk.f32.mxu1 %vm917_vm0, %v277_v15  ;;  %v404_v37 = vld [vmem:[%s10353_s0 + $0x828] sm:$0xff] }
 0x19d   :  { %v7240_v12 = vpop.f32.mrb[66].mxu0  ;;  %v7242_v57 = vpop.f32.mrb[66].mxu1 }
 0x19e   :  { %10388 = vst [vmem:[#allocation35_spill] sm:$0xff] %v7242_v57  ;;  %v1925_v15 = vpop.f32.mrb[67].mxu0  ;;  %2187 = vmatmul.mubr.f32.gmra.mrb[172].mxu0 %v401_v6  ;;  %5281 = vmatmul.mubr.msk.f32.gmra.mrb[172].mxu1 %vm917_vm0, %v280_v25  ;;  %v2895_v49 = vpop.f32.mrb[67].mxu1  ;;  %v408_v57 = vld [vmem:[%s10353_s0 + $0x848] sm:$0xff]  ;;  %v289_v25 = vld [vmem:[%s10353_s0 + $0x490] sm:$0xff] }
 0x19f   :  { %2191 = vmatprep.mubr.f32.mxu0 %v405_v28  ;;  %5283 = vmatprep.mubr.msk.f32.mxu1 %vm917_vm0, %v283_v61  ;;  %v407_v49 = vld [vmem:[%s10353_s0 + $0x840] sm:$0xff] }
 0x1a1   :  { %v7258_v6 = vpop.f32.mrb[68].mxu0  ;;  %v7260_v28 = vpop.f32.mrb[68].mxu1 }
 0x1a2   :  { %10389 = vst [vmem:[#allocation36_spill] sm:$0xff] %v7260_v28  ;;  %v1930_v61 = vpop.f32.mrb[69].mxu0  ;;  %2192 = vmatmul.mubr.f32.gmra.mrb[174].mxu0 %v404_v37  ;;  %5284 = vmatmul.mubr.msk.f32.gmra.mrb[174].mxu1 %vm917_vm0, %v286_v23  ;;  %v2900_v15 = vpop.f32.mrb[69].mxu1  ;;  %v411_v28 = vld [vmem:[%s10353_s0 + $0x860] sm:$0xff] }
 0x1a3   :  { %2196 = vmatprep.mubr.f32.mxu0 %v408_v57  ;;  %5286 = vmatprep.mubr.msk.f32.mxu1 %vm917_vm0, %v289_v25  ;;  %v295_v23 = vld [vmem:[%s10353_s0 + $0x4c0] sm:$0xff]  ;;  %v410_v15 = vld [vmem:[%s10353_s0 + $0x858] sm:$0xff] }
 0x1a5   :  { %v7276_v37 = vpop.f32.mrb[70].mxu0  ;;  %v7278_v57 = vpop.f32.mrb[70].mxu1 }
 0x1a6   :  { %10390 = vst [vmem:[#allocation37_spill] sm:$0xff] %v7278_v57  ;;  %v1935_v25 = vpop.f32.mrb[71].mxu0  ;;  %2197 = vmatmul.mubr.f32.gmra.mrb[176].mxu0 %v407_v49  ;;  %5287 = vmatmul.mubr.msk.f32.gmra.mrb[176].mxu1 %vm917_vm0, %v292_v39  ;;  %v2905_v61 = vpop.f32.mrb[71].mxu1  ;;  %v414_v57 = vld [vmem:[%s10353_s0 + $0x878] sm:$0xff]  ;;  %v301_v39 = vld [vmem:[%s10353_s0 + $0x4f0] sm:$0xff] }
 0x1a7   :  { %2201 = vmatprep.mubr.f32.mxu0 %v411_v28  ;;  %5289 = vmatprep.mubr.msk.f32.mxu1 %vm917_vm0, %v295_v23  ;;  %v413_v61 = vld [vmem:[%s10353_s0 + $0x870] sm:$0xff] }
 0x1a9   :  { %v7294_v49 = vpop.f32.mrb[72].mxu0  ;;  %v7296_v28 = vpop.f32.mrb[72].mxu1 }
 0x1aa   :  { %10391 = vst [vmem:[#allocation38_spill] sm:$0xff] %v7296_v28  ;;  %v1940_v23 = vpop.f32.mrb[73].mxu0  ;;  %2202 = vmatmul.mubr.f32.gmra.mrb[178].mxu0 %v410_v15  ;;  %5290 = vmatmul.mubr.msk.f32.gmra.mrb[178].mxu1 %vm917_vm0, %v298_v47  ;;  %v2910_v25 = vpop.f32.mrb[73].mxu1  ;;  %v417_v28 = vld [vmem:[%s10353_s0 + $0x890] sm:$0xff]  ;;  %v307_v47 = vld [vmem:[%s10353_s0 + $0x520] sm:$0xff] }
 0x1ab   :  { %2206 = vmatprep.mubr.f32.mxu0 %v414_v57  ;;  %5292 = vmatprep.mubr.msk.f32.mxu1 %vm917_vm0, %v301_v39  ;;  %v416_v25 = vld [vmem:[%s10353_s0 + $0x888] sm:$0xff] }
 0x1ad   :  { %v7312_v15 = vpop.f32.mrb[74].mxu0  ;;  %v7314_v57 = vpop.f32.mrb[74].mxu1 }
 0x1ae   :  { %10392 = vst [vmem:[#allocation39_spill] sm:$0xff] %v7314_v57  ;;  %v1945_v39 = vpop.f32.mrb[75].mxu0  ;;  %2207 = vmatmul.mubr.f32.gmra.mrb[180].mxu0 %v413_v61  ;;  %5293 = vmatmul.mubr.msk.f32.gmra.mrb[180].mxu1 %vm917_vm0, %v304_v2  ;;  %v2915_v23 = vpop.f32.mrb[75].mxu1  ;;  %v420_v57 = vld [vmem:[%s10353_s0 + $0x8a8] sm:$0xff]  ;;  %v313_v2 = vld [vmem:[%s10353_s0 + $0x550] sm:$0xff] }
 0x1af   :  { %2211 = vmatprep.mubr.f32.mxu0 %v417_v28  ;;  %5295 = vmatprep.mubr.msk.f32.mxu1 %vm917_vm0, %v307_v47  ;;  %v419_v23 = vld [vmem:[%s10353_s0 + $0x8a0] sm:$0xff] }
 0x1b1   :  { %v7330_v61 = vpop.f32.mrb[76].mxu0  ;;  %v7332_v28 = vpop.f32.mrb[76].mxu1 }
 0x1b2   :  { %10393 = vst [vmem:[#allocation40_spill] sm:$0xff] %v7332_v28  ;;  %v1950_v47 = vpop.f32.mrb[77].mxu0  ;;  %2212 = vmatmul.mubr.f32.gmra.mrb[182].mxu0 %v416_v25  ;;  %5296 = vmatmul.mubr.msk.f32.gmra.mrb[182].mxu1 %vm917_vm0, %v310_v17  ;;  %v2920_v39 = vpop.f32.mrb[77].mxu1  ;;  %v423_v28 = vld [vmem:[%s10353_s0 + $0x8c0] sm:$0xff] }
 0x1b3   :  { %2216 = vmatprep.mubr.f32.mxu0 %v420_v57  ;;  %5298 = vmatprep.mubr.msk.f32.mxu1 %vm917_vm0, %v313_v2  ;;  %v319_v17 = vld [vmem:[%s10353_s0 + $0x580] sm:$0xff]  ;;  %v422_v39 = vld [vmem:[%s10353_s0 + $0x8b8] sm:$0xff] }
 0x1b5   :  { %v7348_v25 = vpop.f32.mrb[78].mxu0  ;;  %v7350_v57 = vpop.f32.mrb[78].mxu1 }
 0x1b6   :  { %10394 = vst [vmem:[#allocation41_spill] sm:$0xff] %v7350_v57  ;;  %v1955_v2 = vpop.f32.mrb[79].mxu0  ;;  %2217 = vmatmul.mubr.f32.gmra.mrb[184].mxu0 %v419_v23  ;;  %5299 = vmatmul.mubr.msk.f32.gmra.mrb[184].mxu1 %vm917_vm0, %v316_v33  ;;  %v2925_v47 = vpop.f32.mrb[79].mxu1  ;;  %v426_v57 = vld [vmem:[%s10353_s0 + $0x8d8] sm:$0xff]  ;;  %v325_v33 = vld [vmem:[%s10353_s0 + $0x5b0] sm:$0xff] }
 0x1b7   :  { %2221 = vmatprep.mubr.f32.mxu0 %v423_v28  ;;  %5301 = vmatprep.mubr.msk.f32.mxu1 %vm917_vm0, %v319_v17  ;;  %v425_v47 = vld [vmem:[%s10353_s0 + $0x8d0] sm:$0xff] }
 0x1b9   :  { %v7366_v23 = vpop.f32.mrb[80].mxu0  ;;  %v7368_v28 = vpop.f32.mrb[80].mxu1 }
 0x1ba   :  { %10395 = vst [vmem:[#allocation42_spill] sm:$0xff] %v7368_v28  ;;  %v1960_v17 = vpop.f32.mrb[81].mxu0  ;;  %2222 = vmatmul.mubr.f32.gmra.mrb[186].mxu0 %v422_v39  ;;  %5302 = vmatmul.mubr.msk.f32.gmra.mrb[186].mxu1 %vm917_vm0, %v322_v55  ;;  %v2930_v2 = vpop.f32.mrb[81].mxu1  ;;  %v429_v28 = vld [vmem:[%s10353_s0 + $0x8f0] sm:$0xff]  ;;  %v331_v55 = vld [vmem:[%s10353_s0 + $0x5e0] sm:$0xff] }
 0x1bb   :  { %2226 = vmatprep.mubr.f32.mxu0 %v426_v57  ;;  %5304 = vmatprep.mubr.msk.f32.mxu1 %vm917_vm0, %v325_v33  ;;  %v428_v2 = vld [vmem:[%s10353_s0 + $0x8e8] sm:$0xff] }
 0x1bd   :  { %v7384_v39 = vpop.f32.mrb[82].mxu0  ;;  %v7386_v57 = vpop.f32.mrb[82].mxu1 }
 0x1be   :  { %10396 = vst [vmem:[#allocation43_spill] sm:$0xff] %v7386_v57  ;;  %v1965_v33 = vpop.f32.mrb[83].mxu0  ;;  %2227 = vmatmul.mubr.f32.gmra.mrb[188].mxu0 %v425_v47  ;;  %5305 = vmatmul.mubr.msk.f32.gmra.mrb[188].mxu1 %vm917_vm0, %v328_v0  ;;  %v2935_v17 = vpop.f32.mrb[83].mxu1  ;;  %v432_v57 = vld [vmem:[%s10353_s0 + $0x908] sm:$0xff]  ;;  %v337_v0 = vld [vmem:[%s10353_s0 + $0x610] sm:$0xff] }
 0x1bf   :  { %2231 = vmatprep.mubr.f32.mxu0 %v429_v28  ;;  %5307 = vmatprep.mubr.msk.f32.mxu1 %vm917_vm0, %v331_v55  ;;  %v431_v17 = vld [vmem:[%s10353_s0 + $0x900] sm:$0xff] }
 0x1c1   :  { %v7402_v47 = vpop.f32.mrb[84].mxu0  ;;  %v7404_v28 = vpop.f32.mrb[84].mxu1 }
 0x1c2   :  { %10397 = vst [vmem:[#allocation44_spill] sm:$0xff] %v7404_v28  ;;  %v1970_v55 = vpop.f32.mrb[85].mxu0  ;;  %2232 = vmatmul.mubr.f32.gmra.mrb[190].mxu0 %v428_v2  ;;  %5308 = vmatmul.mubr.msk.f32.gmra.mrb[190].mxu1 %vm917_vm0, %v334_v31  ;;  %v2940_v33 = vpop.f32.mrb[85].mxu1  ;;  %v435_v28 = vld [vmem:[%s10353_s0 + $0x920] sm:$0xff] }
 0x1c3   :  { %2236 = vmatprep.mubr.f32.mxu0 %v432_v57  ;;  %5310 = vmatprep.mubr.msk.f32.mxu1 %vm917_vm0, %v337_v0  ;;  %v343_v31 = vld [vmem:[%s10353_s0 + $0x640] sm:$0xff]  ;;  %v434_v33 = vld [vmem:[%s10353_s0 + $0x918] sm:$0xff] }
 0x1c5   :  { %v7420_v2 = vpop.f32.mrb[86].mxu0  ;;  %v7422_v57 = vpop.f32.mrb[86].mxu1 }
 0x1c6   :  { %10398 = vst [vmem:[#allocation45_spill] sm:$0xff] %v7422_v57  ;;  %v1975_v0 = vpop.f32.mrb[87].mxu0  ;;  %2237 = vmatmul.mubr.f32.gmra.mrb[192].mxu0 %v431_v17  ;;  %5311 = vmatmul.mubr.msk.f32.gmra.mrb[192].mxu1 %vm917_vm0, %v340_v41  ;;  %v2945_v55 = vpop.f32.mrb[87].mxu1  ;;  %v438_v57 = vld [vmem:[%s10353_s0 + $0x938] sm:$0xff]  ;;  %v349_v41 = vld [vmem:[%s10353_s0 + $0x670] sm:$0xff] }
 0x1c7   :  { %2241 = vmatprep.mubr.f32.mxu0 %v435_v28  ;;  %5313 = vmatprep.mubr.msk.f32.mxu1 %vm917_vm0, %v343_v31  ;;  %v437_v55 = vld [vmem:[%s10353_s0 + $0x930] sm:$0xff] }
 0x1c9   :  { %v7438_v17 = vpop.f32.mrb[88].mxu0  ;;  %v7440_v28 = vpop.f32.mrb[88].mxu1 }
 0x1ca   :  { %10399 = vst [vmem:[#allocation46_spill] sm:$0xff] %v7440_v28  ;;  %v1980_v31 = vpop.f32.mrb[89].mxu0  ;;  %2242 = vmatmul.mubr.f32.gmra.mrb[194].mxu0 %v434_v33  ;;  %5314 = vmatmul.mubr.msk.f32.gmra.mrb[194].mxu1 %vm917_vm0, %v346_v9  ;;  %v2950_v0 = vpop.f32.mrb[89].mxu1  ;;  %v441_v28 = vld [vmem:[%s10353_s0 + $0x950] sm:$0xff]  ;;  %v355_v9 = vld [vmem:[%s10353_s0 + $0x6a0] sm:$0xff] }
 0x1cb   :  { %2246 = vmatprep.mubr.f32.mxu0 %v438_v57  ;;  %5316 = vmatprep.mubr.msk.f32.mxu1 %vm917_vm0, %v349_v41  ;;  %v440_v0 = vld [vmem:[%s10353_s0 + $0x948] sm:$0xff] }
 0x1cd   :  { %v7456_v33 = vpop.f32.mrb[90].mxu0  ;;  %v7458_v57 = vpop.f32.mrb[90].mxu1 }
 0x1ce   :  { %10400 = vst [vmem:[#allocation47_spill] sm:$0xff] %v7458_v57  ;;  %v1985_v41 = vpop.f32.mrb[91].mxu0  ;;  %2247 = vmatmul.mubr.f32.gmra.mrb[196].mxu0 %v437_v55  ;;  %5317 = vmatmul.mubr.msk.f32.gmra.mrb[196].mxu1 %vm917_vm0, %v352_v21  ;;  %v2955_v31 = vpop.f32.mrb[91].mxu1  ;;  %v444_v57 = vld [vmem:[%s10353_s0 + $0x968] sm:$0xff]  ;;  %v361_v21 = vld [vmem:[%s10353_s0 + $0x6d0] sm:$0xff] }
 0x1cf   :  { %2251 = vmatprep.mubr.f32.mxu0 %v441_v28  ;;  %5319 = vmatprep.mubr.msk.f32.mxu1 %vm917_vm0, %v355_v9  ;;  %v443_v31 = vld [vmem:[%s10353_s0 + $0x960] sm:$0xff] }
 0x1d1   :  { %v7474_v55 = vpop.f32.mrb[92].mxu0  ;;  %v7476_v28 = vpop.f32.mrb[92].mxu1 }
 0x1d2   :  { %10401 = vst [vmem:[#allocation48_spill] sm:$0xff] %v7476_v28  ;;  %v1990_v9 = vpop.f32.mrb[93].mxu0  ;;  %2252 = vmatmul.mubr.f32.gmra.mrb[198].mxu0 %v440_v0  ;;  %5320 = vmatmul.mubr.msk.f32.gmra.mrb[198].mxu1 %vm917_vm0, %v358_v53  ;;  %v2960_v41 = vpop.f32.mrb[93].mxu1  ;;  %v447_v28 = vld [vmem:[%s10353_s0 + $0x980] sm:$0xff] }
 0x1d3   :  { %2256 = vmatprep.mubr.f32.mxu0 %v444_v57  ;;  %5322 = vmatprep.mubr.msk.f32.mxu1 %vm917_vm0, %v361_v21  ;;  %v367_v53 = vld [vmem:[%s10353_s0 + $0x700] sm:$0xff]  ;;  %v446_v41 = vld [vmem:[%s10353_s0 + $0x978] sm:$0xff] }
 0x1d5   :  { %v7492_v0 = vpop.f32.mrb[94].mxu0  ;;  %v7494_v57 = vpop.f32.mrb[94].mxu1 }
 0x1d6   :  { %10402 = vst [vmem:[#allocation49_spill] sm:$0xff] %v7494_v57  ;;  %v1995_v21 = vpop.f32.mrb[95].mxu0  ;;  %2257 = vmatmul.mubr.f32.gmra.mrb[200].mxu0 %v443_v31  ;;  %5323 = vmatmul.mubr.msk.f32.gmra.mrb[200].mxu1 %vm917_vm0, %v364_v63  ;;  %v2965_v9 = vpop.f32.mrb[95].mxu1  ;;  %v450_v57 = vld [vmem:[%s10353_s0 + $0x998] sm:$0xff]  ;;  %v373_v63 = vld [vmem:[%s10353_s0 + $0x730] sm:$0xff] }
 0x1d7   :  { %2261 = vmatprep.mubr.f32.mxu0 %v447_v28  ;;  %5325 = vmatprep.mubr.msk.f32.mxu1 %vm917_vm0, %v367_v53  ;;  %v449_v9 = vld [vmem:[%s10353_s0 + $0x990] sm:$0xff] }
 0x1d9   :  { %v7510_v31 = vpop.f32.mrb[96].mxu0  ;;  %v7512_v28 = vpop.f32.mrb[96].mxu1 }
 0x1da   :  { %10403 = vst [vmem:[#allocation50_spill] sm:$0xff] %v7512_v28  ;;  %v2000_v53 = vpop.f32.mrb[97].mxu0  ;;  %2262 = vmatmul.mubr.f32.gmra.mrb[202].mxu0 %v446_v41  ;;  %5326 = vmatmul.mubr.msk.f32.gmra.mrb[202].mxu1 %vm917_vm0, %v370_v35  ;;  %v2970_v21 = vpop.f32.mrb[97].mxu1  ;;  %v453_v28 = vld [vmem:[%s10353_s0 + $0x9b0] sm:$0xff]  ;;  %v379_v35 = vld [vmem:[%s10353_s0 + $0x760] sm:$0xff] }
 0x1db   :  { %2266 = vmatprep.mubr.f32.mxu0 %v450_v57  ;;  %5328 = vmatprep.mubr.msk.f32.mxu1 %vm917_vm0, %v373_v63  ;;  %v452_v21 = vld [vmem:[%s10353_s0 + $0x9a8] sm:$0xff] }
 0x1dd   :  { %v7528_v41 = vpop.f32.mrb[98].mxu0  ;;  %v7530_v57 = vpop.f32.mrb[98].mxu1 }
 0x1de   :  { %10404 = vst [vmem:[#allocation51_spill] sm:$0xff] %v7530_v57  ;;  %v2005_v63 = vpop.f32.mrb[99].mxu0  ;;  %2267 = vmatmul.mubr.f32.gmra.mrb[204].mxu0 %v449_v9  ;;  %5329 = vmatmul.mubr.msk.f32.gmra.mrb[204].mxu1 %vm917_vm0, %v376_v43  ;;  %v2975_v53 = vpop.f32.mrb[99].mxu1  ;;  %v456_v57 = vld [vmem:[%s10353_s0 + $0x9c8] sm:$0xff]  ;;  %v385_v43 = vld [vmem:[%s10353_s0 + $0x790] sm:$0xff] }
 0x1df   :  { %2271 = vmatprep.mubr.f32.mxu0 %v453_v28  ;;  %5331 = vmatprep.mubr.msk.f32.mxu1 %vm917_vm0, %v379_v35  ;;  %v455_v53 = vld [vmem:[%s10353_s0 + $0x9c0] sm:$0xff] }
 0x1e1   :  { %v7546_v9 = vpop.f32.mrb[100].mxu0  ;;  %v7548_v28 = vpop.f32.mrb[100].mxu1 }
 0x1e2   :  { %10405 = vst [vmem:[#allocation52_spill] sm:$0xff] %v7548_v28  ;;  %v2010_v35 = vpop.f32.mrb[101].mxu0  ;;  %2272 = vmatmul.mubr.f32.gmra.mrb[206].mxu0 %v452_v21  ;;  %5332 = vmatmul.mubr.msk.f32.gmra.mrb[206].mxu1 %vm917_vm0, %v382_v19  ;;  %v2980_v63 = vpop.f32.mrb[101].mxu1  ;;  %v459_v28 = vld [vmem:[%s10353_s0 + $0x9e0] sm:$0xff] }
 0x1e3   :  { %2276 = vmatprep.mubr.f32.mxu0 %v456_v57  ;;  %5334 = vmatprep.mubr.msk.f32.mxu1 %vm917_vm0, %v385_v43  ;;  %v391_v19 = vld [vmem:[%s10353_s0 + $0x7c0] sm:$0xff]  ;;  %v458_v63 = vld [vmem:[%s10353_s0 + $0x9d8] sm:$0xff] }
 0x1e5   :  { %v7564_v21 = vpop.f32.mrb[102].mxu0  ;;  %v7566_v57 = vpop.f32.mrb[102].mxu1 }
 0x1e6   :  { %10406 = vst [vmem:[#allocation53_spill] sm:$0xff] %v7566_v57  ;;  %v2015_v43 = vpop.f32.mrb[103].mxu0  ;;  %2277 = vmatmul.mubr.f32.gmra.mrb[208].mxu0 %v455_v53  ;;  %5335 = vmatmul.mubr.msk.f32.gmra.mrb[208].mxu1 %vm917_vm0, %v388_v27  ;;  %v2985_v35 = vpop.f32.mrb[103].mxu1  ;;  %v462_v57 = vld [vmem:[%s10353_s0 + $0x9f8] sm:$0xff]  ;;  %v397_v27 = vld [vmem:[%s10353_s0 + $0x7f0] sm:$0xff] }
 0x1e7   :  { %2281 = vmatprep.mubr.f32.mxu0 %v459_v28  ;;  %5337 = vmatprep.mubr.msk.f32.mxu1 %vm917_vm0, %v391_v19  ;;  %v461_v35 = vld [vmem:[%s10353_s0 + $0x9f0] sm:$0xff] }
 0x1e9   :  { %v7582_v53 = vpop.f32.mrb[104].mxu0  ;;  %v7584_v28 = vpop.f32.mrb[104].mxu1 }
 0x1ea   :  { %10407 = vst [vmem:[#allocation54_spill] sm:$0xff] %v7582_v53  ;;  %10408 = vst [vmem:[#allocation55_spill] sm:$0xff] %v7584_v28  ;;  %v2020_v19 = vpop.f32.mrb[105].mxu0  ;;  %2282 = vmatmul.mubr.f32.gmra.mrb[210].mxu0 %v458_v63  ;;  %5338 = vmatmul.mubr.msk.f32.gmra.mrb[210].mxu1 %vm917_vm0, %v394_v4  ;;  %v2990_v43 = vpop.f32.mrb[105].mxu1  ;;  %v465_v28 = vld [vmem:[%s10353_s0 + $0xa10] sm:$0xff]  ;;  %v403_v4 = vld [vmem:[%s10353_s0 + $0x820] sm:$0xff] }
 0x1eb   :  { %2286 = vmatprep.mubr.f32.mxu0 %v462_v57  ;;  %5340 = vmatprep.mubr.msk.f32.mxu1 %vm917_vm0, %v397_v27  ;;  %v464_v43 = vld [vmem:[%s10353_s0 + $0xa08] sm:$0xff]  ;;  %v497_v53 = vld [vmem:[%s10353_s0 + $0xb10] sm:$0xff] }
 0x1ed   :  { %v7600_v63 = vpop.f32.mrb[106].mxu0  ;;  %v7602_v57 = vpop.f32.mrb[106].mxu1 }
 0x1ee   :  { %10409 = vst [vmem:[#allocation56_spill] sm:$0xff] %v7602_v57  ;;  %v2025_v27 = vpop.f32.mrb[107].mxu0  ;;  %2287 = vmatmul.mubr.f32.gmra.mrb[212].mxu0 %v461_v35  ;;  %5341 = vmatmul.mubr.msk.f32.gmra.mrb[212].mxu1 %vm917_vm0, %v400_v11  ;;  %v2995_v19 = vpop.f32.mrb[107].mxu1  ;;  %v468_v57 = vld [vmem:[%s10353_s0 + $0xa28] sm:$0xff]  ;;  %v409_v11 = vld [vmem:[%s10353_s0 + $0x850] sm:$0xff] }
 0x1ef   :  { %2291 = vmatprep.mubr.f32.mxu0 %v465_v28  ;;  %5343 = vmatprep.mubr.msk.f32.mxu1 %vm917_vm0, %v403_v4  ;;  %v467_v19 = vld [vmem:[%s10353_s0 + $0xa20] sm:$0xff] }
 0x1f1   :  { %v7618_v35 = vpop.f32.mrb[108].mxu0  ;;  %v7620_v28 = vpop.f32.mrb[108].mxu1 }
 0x1f2   :  { %10410 = vst [vmem:[#allocation57_spill] sm:$0xff] %v7618_v35  ;;  %10411 = vst [vmem:[#allocation58_spill] sm:$0xff] %v7620_v28  ;;  %v2030_v4 = vpop.f32.mrb[109].mxu0  ;;  %2292 = vmatmul.mubr.f32.gmra.mrb[214].mxu0 %v464_v43  ;;  %5344 = vmatmul.mubr.msk.f32.gmra.mrb[214].mxu1 %vm917_vm0, %v406_v51  ;;  %v3000_v27 = vpop.f32.mrb[109].mxu1  ;;  %v471_v28 = vld [vmem:[%s10353_s0 + $0xa40] sm:$0xff]  ;;  %v418_v35 = vld [vmem:[%s10353_s0 + $0x898] sm:$0xff] }
 0x1f3   :  { %2296 = vmatprep.mubr.f32.mxu0 %v468_v57  ;;  %5346 = vmatprep.mubr.msk.f32.mxu1 %vm917_vm0, %v409_v11  ;;  %v415_v51 = vld [vmem:[%s10353_s0 + $0x880] sm:$0xff]  ;;  %v470_v27 = vld [vmem:[%s10353_s0 + $0xa38] sm:$0xff] }
 0x1f5   :  { %v7636_v43 = vpop.f32.mrb[110].mxu0  ;;  %v7638_v57 = vpop.f32.mrb[110].mxu1 }
 0x1f6   :  { %10412 = vst [vmem:[#allocation59_spill] sm:$0xff] %v7636_v43  ;;  %10413 = vst [vmem:[#allocation60_spill] sm:$0xff] %v7638_v57  ;;  %v2035_v11 = vpop.f32.mrb[111].mxu0  ;;  %2297 = vmatmul.mubr.f32.gmra.mrb[216].mxu0 %v467_v19  ;;  %5347 = vmatmul.mubr.msk.f32.gmra.mrb[216].mxu1 %vm917_vm0, %v412_v59  ;;  %v3005_v4 = vpop.f32.mrb[111].mxu1  ;;  %v474_v57 = vld [vmem:[%s10353_s0 + $0xa58] sm:$0xff]  ;;  %v421_v59 = vld [vmem:[%s10353_s0 + $0x8b0] sm:$0xff] }
 0x1f7   :  { %2301 = vmatprep.mubr.f32.mxu0 %v471_v28  ;;  %5349 = vmatprep.mubr.msk.f32.mxu1 %vm917_vm0, %v415_v51  ;;  %v473_v4 = vld [vmem:[%s10353_s0 + $0xa50] sm:$0xff]  ;;  %v424_v43 = vld [vmem:[%s10353_s0 + $0x8c8] sm:$0xff] }
 0x1f9   :  { %v7654_v19 = vpop.f32.mrb[112].mxu0  ;;  %v7656_v28 = vpop.f32.mrb[112].mxu1 }
 0x1fa   :  { %10414 = vst [vmem:[#allocation61_spill] sm:$0xff] %v7654_v19  ;;  %10415 = vst [vmem:[#allocation62_spill] sm:$0xff] %v7656_v28  ;;  %v2040_v51 = vpop.f32.mrb[113].mxu0  ;;  %2302 = vmatmul.mubr.f32.gmra.mrb[218].mxu0 %v470_v27  ;;  %5350 = vmatmul.mubr.msk.f32.gmra.mrb[218].mxu1 %vm917_vm0, %v418_v35  ;;  %v3010_v11 = vpop.f32.mrb[113].mxu1  ;;  %v477_v28 = vld [vmem:[%s10353_s0 + $0xa70] sm:$0xff]  ;;  %v427_v35 = vld [vmem:[%s10353_s0 + $0x8e0] sm:$0xff] }
 0x1fb   :  { %2306 = vmatprep.mubr.f32.mxu0 %v474_v57  ;;  %5352 = vmatprep.mubr.msk.f32.mxu1 %vm917_vm0, %v421_v59  ;;  %v476_v11 = vld [vmem:[%s10353_s0 + $0xa68] sm:$0xff]  ;;  %v430_v19 = vld [vmem:[%s10353_s0 + $0x8f8] sm:$0xff] }
 0x1fd   :  { %v7672_v27 = vpop.f32.mrb[114].mxu0  ;;  %v7674_v57 = vpop.f32.mrb[114].mxu1 }
 0x1fe   :  { %10416 = vst [vmem:[#allocation63_spill] sm:$0xff] %v7672_v27  ;;  %10417 = vst [vmem:[#allocation64_spill] sm:$0xff] %v7674_v57  ;;  %v2045_v59 = vpop.f32.mrb[115].mxu0  ;;  %2307 = vmatmul.mubr.f32.gmra.mrb[220].mxu0 %v473_v4  ;;  %5353 = vmatmul.mubr.msk.f32.gmra.mrb[220].mxu1 %vm917_vm0, %v424_v43  ;;  %v3015_v51 = vpop.f32.mrb[115].mxu1  ;;  %v480_v57 = vld [vmem:[%s10353_s0 + $0xa88] sm:$0xff]  ;;  %v433_v43 = vld [vmem:[%s10353_s0 + $0x910] sm:$0xff] }
 0x1ff   :  { %2311 = vmatprep.mubr.f32.mxu0 %v477_v28  ;;  %5355 = vmatprep.mubr.msk.f32.mxu1 %vm917_vm0, %v427_v35  ;;  %v479_v51 = vld [vmem:[%s10353_s0 + $0xa80] sm:$0xff]  ;;  %v436_v27 = vld [vmem:[%s10353_s0 + $0x928] sm:$0xff] }
 0x201   :  { %v7690_v4 = vpop.f32.mrb[116].mxu0  ;;  %v7692_v28 = vpop.f32.mrb[116].mxu1 }
 0x202   :  { %10418 = vst [vmem:[#allocation65_spill] sm:$0xff] %v7690_v4  ;;  %10419 = vst [vmem:[#allocation66_spill] sm:$0xff] %v7692_v28  ;;  %v2050_v35 = vpop.f32.mrb[117].mxu0  ;;  %2312 = vmatmul.mubr.f32.gmra.mrb[222].mxu0 %v476_v11  ;;  %5356 = vmatmul.mubr.msk.f32.gmra.mrb[222].mxu1 %vm917_vm0, %v430_v19  ;;  %v3020_v59 = vpop.f32.mrb[117].mxu1  ;;  %v483_v28 = vld [vmem:[%s10353_s0 + $0xaa0] sm:$0xff]  ;;  %v442_v4 = vld [vmem:[%s10353_s0 + $0x958] sm:$0xff] }
 0x203   :  { %2316 = vmatprep.mubr.f32.mxu0 %v480_v57  ;;  %5358 = vmatprep.mubr.msk.f32.mxu1 %vm917_vm0, %v433_v43  ;;  %v439_v19 = vld [vmem:[%s10353_s0 + $0x940] sm:$0xff]  ;;  %v482_v59 = vld [vmem:[%s10353_s0 + $0xa98] sm:$0xff] }
 0x205   :  { %v7708_v11 = vpop.f32.mrb[118].mxu0  ;;  %v7710_v57 = vpop.f32.mrb[118].mxu1 }
 0x206   :  { %10420 = vst [vmem:[#allocation67_spill] sm:$0xff] %v7708_v11  ;;  %10421 = vst [vmem:[#allocation68_spill] sm:$0xff] %v7710_v57  ;;  %v2055_v43 = vpop.f32.mrb[119].mxu0  ;;  %2317 = vmatmul.mubr.f32.gmra.mrb[224].mxu0 %v479_v51  ;;  %5359 = vmatmul.mubr.msk.f32.gmra.mrb[224].mxu1 %vm917_vm0, %v436_v27  ;;  %v3025_v35 = vpop.f32.mrb[119].mxu1  ;;  %v486_v57 = vld [vmem:[%s10353_s0 + $0xab8] sm:$0xff]  ;;  %v445_v27 = vld [vmem:[%s10353_s0 + $0x970] sm:$0xff] }
 0x207   :  { %2321 = vmatprep.mubr.f32.mxu0 %v483_v28  ;;  %5361 = vmatprep.mubr.msk.f32.mxu1 %vm917_vm0, %v439_v19  ;;  %v485_v35 = vld [vmem:[%s10353_s0 + $0xab0] sm:$0xff]  ;;  %v448_v11 = vld [vmem:[%s10353_s0 + $0x988] sm:$0xff] }
 0x209   :  { %v7726_v51 = vpop.f32.mrb[120].mxu0  ;;  %v7728_v28 = vpop.f32.mrb[120].mxu1 }
 0x20a   :  { %10422 = vst [vmem:[#allocation69_spill] sm:$0xff] %v7726_v51  ;;  %10423 = vst [vmem:[#allocation70_spill] sm:$0xff] %v7728_v28  ;;  %v2060_v19 = vpop.f32.mrb[121].mxu0  ;;  %2322 = vmatmul.mubr.f32.gmra.mrb[226].mxu0 %v482_v59  ;;  %5362 = vmatmul.mubr.msk.f32.gmra.mrb[226].mxu1 %vm917_vm0, %v442_v4  ;;  %v3030_v43 = vpop.f32.mrb[121].mxu1  ;;  %v489_v28 = vld [vmem:[%s10353_s0 + $0xad0] sm:$0xff]  ;;  %v451_v4 = vld [vmem:[%s10353_s0 + $0x9a0] sm:$0xff] }
 0x20b   :  { %2326 = vmatprep.mubr.f32.mxu0 %v486_v57  ;;  %5364 = vmatprep.mubr.msk.f32.mxu1 %vm917_vm0, %v445_v27  ;;  %v488_v43 = vld [vmem:[%s10353_s0 + $0xac8] sm:$0xff]  ;;  %v454_v51 = vld [vmem:[%s10353_s0 + $0x9b8] sm:$0xff] }
 0x20d   :  { %v7744_v59 = vpop.f32.mrb[122].mxu0  ;;  %v7746_v57 = vpop.f32.mrb[122].mxu1 }
 0x20e   :  { %10424 = vst [vmem:[#allocation71_spill] sm:$0xff] %v7744_v59  ;;  %10425 = vst [vmem:[#allocation72_spill] sm:$0xff] %v7746_v57  ;;  %v2065_v27 = vpop.f32.mrb[123].mxu0  ;;  %2327 = vmatmul.mubr.f32.gmra.mrb[228].mxu0 %v485_v35  ;;  %5365 = vmatmul.mubr.msk.f32.gmra.mrb[228].mxu1 %vm917_vm0, %v448_v11  ;;  %v3035_v19 = vpop.f32.mrb[123].mxu1  ;;  %v492_v57 = vld [vmem:[%s10353_s0 + $0xae8] sm:$0xff]  ;;  %v457_v11 = vld [vmem:[%s10353_s0 + $0x9d0] sm:$0xff] }
 0x20f   :  { %2331 = vmatprep.mubr.f32.mxu0 %v489_v28  ;;  %5367 = vmatprep.mubr.msk.f32.mxu1 %vm917_vm0, %v451_v4  ;;  %v491_v19 = vld [vmem:[%s10353_s0 + $0xae0] sm:$0xff]  ;;  %v460_v59 = vld [vmem:[%s10353_s0 + $0x9e8] sm:$0xff] }
 0x211   :  { %v7762_v35 = vpop.f32.mrb[124].mxu0  ;;  %v7764_v28 = vpop.f32.mrb[124].mxu1 }
 0x212   :  { %10426 = vst [vmem:[#allocation73_spill] sm:$0xff] %v7762_v35  ;;  %10427 = vst [vmem:[#allocation74_spill] sm:$0xff] %v7764_v28  ;;  %v2070_v4 = vpop.f32.mrb[125].mxu0  ;;  %2332 = vmatmul.mubr.f32.gmra.mrb[230].mxu0 %v488_v43  ;;  %5368 = vmatmul.mubr.msk.f32.gmra.mrb[230].mxu1 %vm917_vm0, %v454_v51  ;;  %v3040_v27 = vpop.f32.mrb[125].mxu1  ;;  %v495_v28 = vld [vmem:[%s10353_s0 + $0xb00] sm:$0xff]  ;;  %v466_v35 = vld [vmem:[%s10353_s0 + $0xa18] sm:$0xff] }
 0x213   :  { %2336 = vmatprep.mubr.f32.mxu0 %v492_v57  ;;  %5370 = vmatprep.mubr.msk.f32.mxu1 %vm917_vm0, %v457_v11  ;;  %v463_v51 = vld [vmem:[%s10353_s0 + $0xa00] sm:$0xff]  ;;  %v494_v27 = vld [vmem:[%s10353_s0 + $0xaf8] sm:$0xff] }
 0x215   :  { %v7780_v43 = vpop.f32.mrb[126].mxu0  ;;  %v7782_v57 = vpop.f32.mrb[126].mxu1 }
 0x216   :  { %10428 = vst [vmem:[#allocation75_spill] sm:$0xff] %v7780_v43  ;;  %10429 = vst [vmem:[#allocation76_spill] sm:$0xff] %v7782_v57  ;;  %v2075_v11 = vpop.f32.mrb[127].mxu0  ;;  %2337 = vmatmul.mubr.f32.gmra.mrb[232].mxu0 %v491_v19  ;;  %5371 = vmatmul.mubr.msk.f32.gmra.mrb[232].mxu1 %vm917_vm0, %v460_v59  ;;  %v3045_v4 = vpop.f32.mrb[127].mxu1  ;;  %v498_v57 = vld [vmem:[%s10353_s0 + $0xb18] sm:$0xff]  ;;  %v469_v59 = vld [vmem:[%s10353_s0 + $0xa30] sm:$0xff] }
 0x217   :  { %2341 = vmatprep.mubr.f32.mxu0 %v495_v28  ;;  %5373 = vmatprep.mubr.msk.f32.mxu1 %vm917_vm0, %v463_v51 }
 0x219   :  { %v7798_v19 = vpop.f32.mrb[128].mxu0  ;;  %v5216_v28 = vpop.f32.mrb[128].mxu1 }
 0x21a   :  { %10430 = vst [vmem:[#allocation77_spill] sm:$0xff] %v7798_v19  ;;  %v3119_v51 = vadd.f32 %v5216_v28, %v6683_v58  ;;  %v2080_v11 = vpop.f32.mrb[129].mxu0  ;;  %2342 = vmatmul.mubr.f32.gmra.mrb[234].mxu0 %v494_v27  ;;  %v3113_v4 = vpop.f32.mrb[129].mxu1  ;;  %5374 = vmatmul.mubr.msk.f32.gmra.mrb[234].mxu1 %vm917_vm0, %v466_v35  ;;  %v472_v19 = vld [vmem:[%s10353_s0 + $0xa48] sm:$0xff]  ;;  %v475_v58 = vld [vmem:[%s10353_s0 + $0xa60] sm:$0xff] }
 0x21b   :  { %v3114_v43 = vadd.f32 %v3113_v4, %v6667_v50  ;;  %2346 = vmatprep.mubr.f32.mxu0 %v498_v57  ;;  %5376 = vmatprep.mubr.msk.f32.mxu1 %vm917_vm0, %v469_v59  ;;  %v501_v50 = vld [vmem:[%s10353_s0 + $0xb30] sm:$0xff]  ;;  %v500_v11 = vld [vmem:[%s10353_s0 + $0xb28] sm:$0xff] }
 0x21c   :  { %4404 = vst.msk [vmem:[%s10354_s3 + $0x8] sm:$0xff] %vm4402_vm1, %v3119_v51 }
 0x21d   :  { %4403 = vst.msk [vmem:[%s10354_s3] sm:$0xff] %vm4402_vm1, %v3114_v43  ;;  %v7824_v35 = vpop.f32.mrb[130].mxu0  ;;  %v5219_v57 = vpop.f32.mrb[130].mxu1  ;;  %v478_v43 = vld [vmem:[%s10353_s0 + $0xa78] sm:$0xff] }
 0x21e   :  { %v3129_v27 = vadd.f32 %v5219_v57, %v6715_v10  ;;  %v2085_v59 = vpop.f32.mrb[131].mxu0  ;;  %2347 = vmatmul.mubr.f32.gmra.mrb[236].mxu0 %v497_v53  ;;  %v3123_v28 = vpop.f32.mrb[131].mxu1  ;;  %5377 = vmatmul.mubr.msk.f32.gmra.mrb[236].mxu1 %vm917_vm0, %v472_v19  ;;  %v481_v10 = vld [vmem:[%s10353_s0 + $0xa90] sm:$0xff] }
 0x21f   :  { %v3124_v51 = vadd.f32 %v3123_v28, %v6699_v3  ;;  %2351 = vmatprep.mubr.f32.mxu0 %v501_v50  ;;  %5379 = vmatprep.mubr.msk.f32.mxu1 %vm917_vm0, %v475_v58  ;;  %v504_v3 = vld [vmem:[%s10353_s0 + $0xb48] sm:$0xff] }
 0x220   :  { %4406 = vst.msk [vmem:[%s10354_s3 + $0x18] sm:$0xff] %vm4402_vm1, %v3129_v27  ;;  %v503_v27 = vld [vmem:[%s10353_s0 + $0xb40] sm:$0xff]  ;;  %v484_v59 = vld [vmem:[%s10353_s0 + $0xaa8] sm:$0xff] }
 0x221   :  { %4405 = vst.msk [vmem:[%s10354_s3 + $0x10] sm:$0xff] %vm4402_vm1, %v3124_v51  ;;  %v7850_v53 = vpop.f32.mrb[132].mxu0  ;;  %v5222_v19 = vpop.f32.mrb[132].mxu1 }
 0x222   :  { %v3139_v4 = vadd.f32 %v5222_v19, %v6747_v26  ;;  %v2090_v50 = vpop.f32.mrb[133].mxu0  ;;  %2352 = vmatmul.mubr.f32.gmra.mrb[238].mxu0 %v500_v11  ;;  %v3133_v58 = vpop.f32.mrb[133].mxu1  ;;  %5380 = vmatmul.mubr.msk.f32.gmra.mrb[238].mxu1 %vm917_vm0, %v478_v43  ;;  %v487_v26 = vld [vmem:[%s10353_s0 + $0xac0] sm:$0xff]  ;;  %v506_v19 = vld [vmem:[%s10353_s0 + $0xb58] sm:$0xff] }
 0x223   :  { %v3134_v57 = vadd.f32 %v3133_v58, %v6731_v18  ;;  %2356 = vmatprep.mubr.f32.mxu0 %v504_v3  ;;  %5382 = vmatprep.mubr.msk.f32.mxu1 %vm917_vm0, %v481_v10  ;;  %v507_v18 = vld [vmem:[%s10353_s0 + $0xb60] sm:$0xff] }
 0x224   :  { %4408 = vst.msk [vmem:[%s10354_s3 + $0x28] sm:$0xff] %vm4402_vm1, %v3139_v4  ;;  %v490_v4 = vld [vmem:[%s10353_s0 + $0xad8] sm:$0xff] }
 0x225   :  { %4407 = vst.msk [vmem:[%s10354_s3 + $0x20] sm:$0xff] %vm4402_vm1, %v3134_v57  ;;  %v7876_v28 = vpop.f32.mrb[134].mxu0  ;;  %v5225_v51 = vpop.f32.mrb[134].mxu1 }
 0x226   :  { %v3149_v11 = vadd.f32 %v5225_v51, %v6779_v42  ;;  %v2095_v43 = vpop.f32.mrb[135].mxu0  ;;  %2357 = vmatmul.mubr.f32.gmra.mrb[240].mxu0 %v503_v27  ;;  %v3143_v3 = vpop.f32.mrb[135].mxu1  ;;  %5383 = vmatmul.mubr.msk.f32.gmra.mrb[240].mxu1 %vm917_vm0, %v484_v59  ;;  %v493_v42 = vld [vmem:[%s10353_s0 + $0xaf0] sm:$0xff]  ;;  %v496_v51 = vld [vmem:[%s10353_s0 + $0xb08] sm:$0xff] }
 0x227   :  { %v3144_v10 = vadd.f32 %v3143_v3, %v6763_v34  ;;  %2361 = vmatprep.mubr.f32.mxu0 %v507_v18  ;;  %5385 = vmatprep.mubr.msk.f32.mxu1 %vm917_vm0, %v487_v26  ;;  %v510_v34 = vld [vmem:[%s10353_s0 + $0xb78] sm:$0xff]  ;;  %v509_v26 = vld [vmem:[%s10353_s0 + $0xb70] sm:$0xff] }
 0x228   :  { %4410 = vst.msk [vmem:[%s10354_s3 + $0x38] sm:$0xff] %vm4402_vm1, %v3149_v11 }
 0x229   :  { %4409 = vst.msk [vmem:[%s10354_s3 + $0x30] sm:$0xff] %vm4402_vm1, %v3144_v10  ;;  %v7902_v50 = vpop.f32.mrb[136].mxu0  ;;  %v5228_v58 = vpop.f32.mrb[136].mxu1 }
 0x22a   :  { %v3159_v57 = vadd.f32 %v5228_v58, %v6811_v62  ;;  %v2100_v27 = vpop.f32.mrb[137].mxu0  ;;  %2362 = vmatmul.mubr.f32.gmra.mrb[242].mxu0 %v506_v19  ;;  %v3153_v59 = vpop.f32.mrb[137].mxu1  ;;  %5386 = vmatmul.mubr.msk.f32.gmra.mrb[242].mxu1 %vm917_vm0, %v490_v4  ;;  %v499_v62 = vld [vmem:[%s10353_s0 + $0xb20] sm:$0xff] }
 0x22b   :  { %v3154_v18 = vadd.f32 %v3153_v59, %v6795_v52  ;;  %2366 = vmatprep.mubr.f32.mxu0 %v510_v34  ;;  %5388 = vmatprep.mubr.msk.f32.mxu1 %vm917_vm0, %v493_v42  ;;  %v513_v52 = vld [vmem:[%s10353_s0 + $0xb90] sm:$0xff]  ;;  %v512_v34 = vld [vmem:[%s10353_s0 + $0xb88] sm:$0xff]  ;;  %v502_v42 = vld [vmem:[%s10353_s0 + $0xb38] sm:$0xff] }
 0x22c   :  { %4412 = vst.msk [vmem:[%s10354_s3 + $0x48] sm:$0xff] %vm4402_vm1, %v3159_v57 }
 0x22d   :  { %4411 = vst.msk [vmem:[%s10354_s3 + $0x40] sm:$0xff] %vm4402_vm1, %v3154_v18  ;;  %v7928_v11 = vpop.f32.mrb[138].mxu0  ;;  %v5231_v43 = vpop.f32.mrb[138].mxu1 }
 0x22e   :  { %v3169_v3 = vadd.f32 %v5231_v43, %v6844_v20  ;;  %v2105_v10 = vpop.f32.mrb[139].mxu0  ;;  %2367 = vmatmul.mubr.f32.gmra.mrb[244].mxu0 %v509_v26  ;;  %v3163_v19 = vpop.f32.mrb[139].mxu1  ;;  %5389 = vmatmul.mubr.msk.f32.gmra.mrb[244].mxu1 %vm917_vm0, %v496_v51  ;;  %v505_v20 = vld [vmem:[%s10353_s0 + $0xb50] sm:$0xff]  ;;  %v515_v51 = vld [vmem:[%s10353_s0 + $0xba0] sm:$0xff] }
 0x22f   :  { %v3164_v4 = vadd.f32 %v3163_v19, %v6827_v8  ;;  %2371 = vmatprep.mubr.f32.mxu0 %v513_v52  ;;  %5391 = vmatprep.mubr.msk.f32.mxu1 %vm917_vm0, %v499_v62  ;;  %v516_v8 = vld [vmem:[%s10353_s0 + $0xba8] sm:$0xff] }
 0x230   :  { %4414 = vst.msk [vmem:[%s10354_s3 + $0x58] sm:$0xff] %vm4402_vm1, %v3169_v3  ;;  %v508_v52 = vld [vmem:[%s10353_s0 + $0xb68] sm:$0xff] }
 0x231   :  { %4413 = vst.msk [vmem:[%s10354_s3 + $0x50] sm:$0xff] %vm4402_vm1, %v3164_v4  ;;  %v7954_v58 = vpop.f32.mrb[140].mxu0  ;;  %v5234_v57 = vpop.f32.mrb[140].mxu1 }
 0x232   :  { %v3179_v27 = vadd.f32 %v5234_v57, %v6880_v40  ;;  %v2110_v59 = vpop.f32.mrb[141].mxu0  ;;  %2372 = vmatmul.mubr.f32.gmra.mrb[246].mxu0 %v512_v34  ;;  %v3173_v18 = vpop.f32.mrb[141].mxu1  ;;  %5392 = vmatmul.mubr.msk.f32.gmra.mrb[246].mxu1 %vm917_vm0, %v502_v42  ;;  %v511_v40 = vld [vmem:[%s10353_s0 + $0xb80] sm:$0xff]  ;;  %v518_v34 = vld [vmem:[%s10353_s0 + $0xbb8] sm:$0xff] }
 0x233   :  { %v3174_v26 = vadd.f32 %v3173_v18, %v6862_v30  ;;  %2376 = vmatprep.mubr.f32.mxu0 %v516_v8  ;;  %5394 = vmatprep.mubr.msk.f32.mxu1 %vm917_vm0, %v505_v20  ;;  %v519_v30 = vld [vmem:[%s10353_s0 + $0xbc0] sm:$0xff]  ;;  %v514_v42 = vld [vmem:[%s10353_s0 + $0xb98] sm:$0xff] }
 0x234   :  { %4416 = vst.msk [vmem:[%s10354_s3 + $0x68] sm:$0xff] %vm4402_vm1, %v3179_v27 }
 0x235   :  { %4415 = vst.msk [vmem:[%s10354_s3 + $0x60] sm:$0xff] %vm4402_vm1, %v3174_v26  ;;  %v7980_v62 = vpop.f32.mrb[142].mxu0  ;;  %v5237_v43 = vpop.f32.mrb[142].mxu1  ;;  %v521_v26 = vld [vmem:[%s10353_s0 + $0xbd0] sm:$0xff] }
 0x236   :  { %v3189_v3 = vadd.f32 %v5237_v43, %v6916_v5  ;;  %v2115_v10 = vpop.f32.mrb[143].mxu0  ;;  %2377 = vmatmul.mubr.f32.gmra.mrb[248].mxu0 %v515_v51  ;;  %v3183_v19 = vpop.f32.mrb[143].mxu1  ;;  %5395 = vmatmul.mubr.msk.f32.gmra.mrb[248].mxu1 %vm917_vm0, %v508_v52  ;;  %v517_v5 = vld [vmem:[%s10353_s0 + $0xbb0] sm:$0xff]  ;;  %v520_v51 = vld [vmem:[%s10353_s0 + $0xbc8] sm:$0xff] }
 0x237   :  { %v3184_v4 = vadd.f32 %v3183_v19, %v6898_v54  ;;  %2381 = vmatprep.mubr.f32.mxu0 %v519_v30  ;;  %5397 = vmatprep.mubr.msk.f32.mxu1 %vm917_vm0, %v511_v40  ;;  %v522_v54 = vld [vmem:[%s10353_s0 + $0xbd8] sm:$0xff]  ;;  %v524_v19 = vld [vmem:[%s10353_s0 + $0xbe8] sm:$0xff] }
 0x238   :  { %4418 = vst.msk [vmem:[%s10354_s3 + $0x78] sm:$0xff] %vm4402_vm1, %v3189_v3 }
 0x239   :  { %4417 = vst.msk [vmem:[%s10354_s3 + $0x70] sm:$0xff] %vm4402_vm1, %v3184_v4  ;;  %v8006_v8 = vpop.f32.mrb[144].mxu0  ;;  %v5240_v20 = vpop.f32.mrb[144].mxu1  ;;  %v526_v4 = vld [vmem:[%s10353_s0 + $0xbf8] sm:$0xff] }
 0x23a   :  { %v3199_v57 = vadd.f32 %v5240_v20, %v6952_v32  ;;  %v2120_v27 = vpop.f32.mrb[145].mxu0  ;;  %2382 = vmatmul.mubr.f32.gmra.mrb[250].mxu0 %v518_v34  ;;  %v3193_v59 = vpop.f32.mrb[145].mxu1  ;;  %5398 = vmatmul.mubr.msk.f32.gmra.mrb[250].mxu1 %vm917_vm0, %v514_v42  ;;  %v523_v32 = vld [vmem:[%s10353_s0 + $0xbe0] sm:$0xff] }
 0x23b   :  { %v3194_v18 = vadd.f32 %v3193_v59, %v6934_v16  ;;  %2386 = vmatprep.mubr.f32.mxu0 %v522_v54  ;;  %5400 = vmatprep.mubr.msk.f32.mxu1 %vm917_vm0, %v517_v5  ;;  %v525_v16 = vld [vmem:[%s10353_s0 + $0xbf0] sm:$0xff]  ;;  %v527_v27 = vld [vmem:[%s10353_s0 + $0xc00] sm:$0xff]  ;;  %v532_v59 = vld [vmem:[%s10353_s0 + $0xc28] sm:$0xff] }
 0x23c   :  { %4420 = vst.msk [vmem:[%s10354_s3 + $0x88] sm:$0xff] %vm4402_vm1, %v3199_v57 }
 0x23d   :  { %4419 = vst.msk [vmem:[%s10354_s3 + $0x80] sm:$0xff] %vm4402_vm1, %v3194_v18  ;;  %v8032_v52 = vpop.f32.mrb[146].mxu0  ;;  %v5243_v30 = vpop.f32.mrb[146].mxu1 }
 0x23e   :  { %v3209_v40 = vadd.f32 %v5243_v30, %v6988_v1  ;;  %v2125_v43 = vpop.f32.mrb[147].mxu0  ;;  %2387 = vmatmul.mubr.f32.gmra.mrb[252].mxu0 %v521_v26  ;;  %v3203_v3 = vpop.f32.mrb[147].mxu1  ;;  %5401 = vmatmul.mubr.msk.f32.gmra.mrb[252].mxu1 %vm917_vm0, %v520_v51  ;;  %v529_v1 = vld [vmem:[%s10353_s0 + $0xc10] sm:$0xff] }
 0x23f   :  { %v3204_v10 = vadd.f32 %v3203_v3, %v6970_v46  ;;  %2391 = vmatprep.mubr.f32.mxu0 %v525_v16  ;;  %5403 = vmatprep.mubr.msk.f32.mxu1 %vm917_vm0, %v523_v32  ;;  %v528_v46 = vld [vmem:[%s10353_s0 + $0xc08] sm:$0xff]  ;;  %v538_v43 = vld [vmem:[%s10353_s0 + $0xc58] sm:$0xff] }
 0x240   :  { %4422 = vst.msk [vmem:[%s10354_s3 + $0x98] sm:$0xff] %vm4402_vm1, %v3209_v40  ;;  %v530_v40 = vld [vmem:[%s10353_s0 + $0xc18] sm:$0xff] }
 0x241   :  { %4421 = vst.msk [vmem:[%s10354_s3 + $0x90] sm:$0xff] %vm4402_vm1, %v3204_v10  ;;  %v8058_v34 = vpop.f32.mrb[148].mxu0  ;;  %v5246_v42 = vpop.f32.mrb[148].mxu1 }
 0x242   :  { %v3219_v54 = vadd.f32 %v5246_v42, %v7024_v38  ;;  %v2130_v5 = vpop.f32.mrb[149].mxu0  ;;  %2392 = vmatmul.mubr.f32.gmra.mrb[254].mxu0 %v524_v19  ;;  %v3213_v20 = vpop.f32.mrb[149].mxu1  ;;  %5404 = vmatmul.mubr.msk.f32.gmra.mrb[254].mxu1 %vm917_vm0, %v526_v4  ;;  %v535_v38 = vld [vmem:[%s10353_s0 + $0xc40] sm:$0xff]  ;;  %v533_v42 = vld [vmem:[%s10353_s0 + $0xc30] sm:$0xff] }
 0x243   :  { %v3214_v57 = vadd.f32 %v3213_v20, %v7006_v22  ;;  %2396 = vmatprep.mubr.f32.mxu0 %v528_v46  ;;  %5406 = vmatprep.mubr.msk.f32.mxu1 %vm917_vm0, %v529_v1  ;;  %v531_v22 = vld [vmem:[%s10353_s0 + $0xc20] sm:$0xff] }
 0x244   :  { %4424 = vst.msk [vmem:[%s10354_s3 + $0xa8] sm:$0xff] %vm4402_vm1, %v3219_v54  ;;  %v544_v54 = vld [vmem:[%s10353_s0 + $0xc88] sm:$0xff] }
 0x245   :  { %4423 = vst.msk [vmem:[%s10354_s3 + $0xa0] sm:$0xff] %vm4402_vm1, %v3214_v57  ;;  %v8084_v18 = vpop.f32.mrb[150].mxu0  ;;  %v5249_v26 = vpop.f32.mrb[150].mxu1 }
 0x246   :  { %v3229_v51 = vadd.f32 %v5249_v26, %v7060_v24  ;;  %v2135_v16 = vpop.f32.mrb[151].mxu0  ;;  %2397 = vmatmul.mubr.f32.gmra.mrb[0].mxu0 %v527_v27  ;;  %v3223_v32 = vpop.f32.mrb[151].mxu1  ;;  %5407 = vmatmul.mubr.msk.f32.gmra.mrb[0].mxu1 %vm917_vm0, %v532_v59  ;;  %v541_v24 = vld [vmem:[%s10353_s0 + $0xc70] sm:$0xff]  ;;  %v550_v26 = vld [vmem:[%s10353_s0 + $0xcb8] sm:$0xff] }
 0x247   :  { %v3224_v30 = vadd.f32 %v3223_v32, %v7042_v60  ;;  %2401 = vmatprep.mubr.f32.mxu0 %v531_v22  ;;  %5409 = vmatprep.mubr.msk.f32.mxu1 %vm917_vm0, %v535_v38  ;;  %v534_v60 = vld [vmem:[%s10353_s0 + $0xc38] sm:$0xff]  ;;  %v536_v38 = vld [vmem:[%s10353_s0 + $0xc48] sm:$0xff] }
 0x248   :  { %4426 = vst.msk [vmem:[%s10354_s3 + $0xb8] sm:$0xff] %vm4402_vm1, %v3229_v51 }
 0x249   :  { %4425 = vst.msk [vmem:[%s10354_s3 + $0xb0] sm:$0xff] %vm4402_vm1, %v3224_v30  ;;  %v8110_v3 = vpop.f32.mrb[152].mxu0  ;;  %v5252_v10 = vpop.f32.mrb[152].mxu1 }
 0x24a   :  { %v3239_v19 = vadd.f32 %v5252_v10, %v7096_v14  ;;  %v2140_v4 = vpop.f32.mrb[153].mxu0  ;;  %2402 = vmatmul.mubr.f32.gmra.mrb[2].mxu0 %v530_v40  ;;  %v3233_v46 = vpop.f32.mrb[153].mxu1  ;;  %5410 = vmatmul.mubr.msk.f32.gmra.mrb[2].mxu1 %vm917_vm0, %v538_v43  ;;  %v547_v14 = vld [vmem:[%s10353_s0 + $0xca0] sm:$0xff] }
 0x24b   :  { %v3234_v1 = vadd.f32 %v3233_v46, %v7078_v48  ;;  %2406 = vmatprep.mubr.f32.mxu0 %v534_v60  ;;  %5412 = vmatprep.mubr.msk.f32.mxu1 %vm917_vm0, %v541_v24  ;;  %v537_v48 = vld [vmem:[%s10353_s0 + $0xc50] sm:$0xff]  ;;  %v539_v60 = vld [vmem:[%s10353_s0 + $0xc60] sm:$0xff]  ;;  %v556_v24 = vld [vmem:[%s10353_s0 + $0xce8] sm:$0xff] }
 0x24c   :  { %4428 = vst.msk [vmem:[%s10354_s3 + $0xc8] sm:$0xff] %vm4402_vm1, %v3239_v19 }
 0x24d   :  { %4427 = vst.msk [vmem:[%s10354_s3 + $0xc0] sm:$0xff] %vm4402_vm1, %v3234_v1  ;;  %v8136_v5 = vpop.f32.mrb[154].mxu0  ;;  %v5255_v20 = vpop.f32.mrb[154].mxu1 }
 0x24e   :  { %v3249_v57 = vadd.f32 %v5255_v20, %v7132_v36  ;;  %v2145_v27 = vpop.f32.mrb[155].mxu0  ;;  %2407 = vmatmul.mubr.f32.gmra.mrb[4].mxu0 %v533_v42  ;;  %v3243_v59 = vpop.f32.mrb[155].mxu1  ;;  %5413 = vmatmul.mubr.msk.f32.gmra.mrb[4].mxu1 %vm917_vm0, %v544_v54  ;;  %v553_v36 = vld [vmem:[%s10353_s0 + $0xcd0] sm:$0xff]  ;;  %v542_v54 = vld [vmem:[%s10353_s0 + $0xc78] sm:$0xff] }
 0x24f   :  { %v3244_v22 = vadd.f32 %v3243_v59, %v7114_v56  ;;  %2411 = vmatprep.mubr.f32.mxu0 %v537_v48  ;;  %5415 = vmatprep.mubr.msk.f32.mxu1 %vm917_vm0, %v547_v14  ;;  %v540_v56 = vld [vmem:[%s10353_s0 + $0xc68] sm:$0xff]  ;;  %v562_v48 = vld [vmem:[%s10353_s0 + $0xd18] sm:$0xff] }
 0x250   :  { %4430 = vst.msk [vmem:[%s10354_s3 + $0xd8] sm:$0xff] %vm4402_vm1, %v3249_v57 }
 0x251   :  { %4429 = vst.msk [vmem:[%s10354_s3 + $0xd0] sm:$0xff] %vm4402_vm1, %v3244_v22  ;;  %v8162_v51 = vpop.f32.mrb[156].mxu0  ;;  %v5258_v16 = vpop.f32.mrb[156].mxu1 }
 0x252   :  { %v3259_v32 = vadd.f32 %v5258_v16, %v7168_v7  ;;  %v2150_v30 = vpop.f32.mrb[157].mxu0  ;;  %2412 = vmatmul.mubr.f32.gmra.mrb[6].mxu0 %v536_v38  ;;  %v3253_v40 = vpop.f32.mrb[157].mxu1  ;;  %5416 = vmatmul.mubr.msk.f32.gmra.mrb[6].mxu1 %vm917_vm0, %v550_v26  ;;  %v559_v7 = vld [vmem:[%s10353_s0 + $0xd00] sm:$0xff]  ;;  %v545_v38 = vld [vmem:[%s10353_s0 + $0xc90] sm:$0xff]  ;;  %v568_v26 = vld [vmem:[%s10353_s0 + $0xd48] sm:$0xff] }
 0x253   :  { %v3254_v43 = vadd.f32 %v3253_v40, %v7150_v13  ;;  %2416 = vmatprep.mubr.f32.mxu0 %v540_v56  ;;  %5418 = vmatprep.mubr.msk.f32.mxu1 %vm917_vm0, %v553_v36  ;;  %v543_v13 = vld [vmem:[%s10353_s0 + $0xc80] sm:$0xff] }
 0x254   :  { %4432 = vst.msk [vmem:[%s10354_s3 + $0xe8] sm:$0xff] %vm4402_vm1, %v3259_v32 }
 0x255   :  { %4431 = vst.msk [vmem:[%s10354_s3 + $0xe0] sm:$0xff] %vm4402_vm1, %v3254_v43  ;;  %v8188_v10 = vpop.f32.mrb[158].mxu0  ;;  %v5261_v19 = vpop.f32.mrb[158].mxu1  ;;  %v548_v43 = vld [vmem:[%s10353_s0 + $0xca8] sm:$0xff] }
 0x256   :  { %v3269_v4 = vadd.f32 %v5261_v19, %v7204_v44  ;;  %v2155_v46 = vpop.f32.mrb[159].mxu0  ;;  %2417 = vmatmul.mubr.f32.gmra.mrb[8].mxu0 %v539_v60  ;;  %v3263_v1 = vpop.f32.mrb[159].mxu1  ;;  %5419 = vmatmul.mubr.msk.f32.gmra.mrb[8].mxu1 %vm917_vm0, %v556_v24  ;;  %v565_v44 = vld [vmem:[%s10353_s0 + $0xd30] sm:$0xff]  ;;  %v574_v60 = vld [vmem:[%s10353_s0 + $0xd78] sm:$0xff] }
 0x257   :  { %v3264_v42 = vadd.f32 %v3263_v1, %v7186_v45  ;;  %2421 = vmatprep.mubr.f32.mxu0 %v543_v13  ;;  %5421 = vmatprep.mubr.msk.f32.mxu1 %vm917_vm0, %v559_v7  ;;  %v546_v45 = vld [vmem:[%s10353_s0 + $0xc98] sm:$0xff]  ;;  %v551_v1 = vld [vmem:[%s10353_s0 + $0xcc0] sm:$0xff] }
 0x258   :  { %4434 = vst.msk [vmem:[%s10354_s3 + $0xf8] sm:$0xff] %vm4402_vm1, %v3269_v4 }
 0x259   :  { %4433 = vst.msk [vmem:[%s10354_s3 + $0xf0] sm:$0xff] %vm4402_vm1, %v3264_v42  ;;  %v8214_v14 = vpop.f32.mrb[160].mxu0  ;;  %v5264_v20 = vpop.f32.mrb[160].mxu1  ;;  %v580_v42 = vld [vmem:[%s10353_s0 + $0xda8] sm:$0xff] }
 0x25a   :  { %v3279_v57 = vadd.f32 %v5264_v20, %v7240_v12  ;;  %v2160_v27 = vpop.f32.mrb[161].mxu0  ;;  %2422 = vmatmul.mubr.f32.gmra.mrb[10].mxu0 %v542_v54  ;;  %v3273_v59 = vpop.f32.mrb[161].mxu1  ;;  %5422 = vmatmul.mubr.msk.f32.gmra.mrb[10].mxu1 %vm917_vm0, %v562_v48  ;;  %v571_v12 = vld [vmem:[%s10353_s0 + $0xd60] sm:$0xff] }
 0x25b   :  { %v3274_v22 = vadd.f32 %v3273_v59, %v7222_v29  ;;  %2426 = vmatprep.mubr.f32.mxu0 %v546_v45  ;;  %5424 = vmatprep.mubr.msk.f32.mxu1 %vm917_vm0, %v565_v44  ;;  %v549_v29 = vld [vmem:[%s10353_s0 + $0xcb0] sm:$0xff]  ;;  %v554_v27 = vld [vmem:[%s10353_s0 + $0xcd8] sm:$0xff] }
 0x25c   :  { %4436 = vst.msk [vmem:[%s10354_s3 + $0x108] sm:$0xff] %vm4402_vm1, %v3279_v57  ;;  %v586_v59 = vld [vmem:[%s10353_s0 + $0xdd8] sm:$0xff] }
 0x25d   :  { %4435 = vst.msk [vmem:[%s10354_s3 + $0x100] sm:$0xff] %vm4402_vm1, %v3274_v22  ;;  %v8240_v56 = vpop.f32.mrb[162].mxu0  ;;  %v5267_v36 = vpop.f32.mrb[162].mxu1 }
 0x25e   :  { %v3289_v16 = vadd.f32 %v5267_v36, %v7276_v37  ;;  %v2165_v32 = vpop.f32.mrb[163].mxu0  ;;  %2427 = vmatmul.mubr.f32.gmra.mrb[12].mxu0 %v545_v38  ;;  %v3283_v30 = vpop.f32.mrb[163].mxu1  ;;  %5425 = vmatmul.mubr.msk.f32.gmra.mrb[12].mxu1 %vm917_vm0, %v568_v26  ;;  %v577_v37 = vld [vmem:[%s10353_s0 + $0xd90] sm:$0xff] }
 0x25f   :  { %v3284_v40 = vadd.f32 %v3283_v30, %v7258_v6  ;;  %2431 = vmatprep.mubr.f32.mxu0 %v549_v29  ;;  %5427 = vmatprep.mubr.msk.f32.mxu1 %vm917_vm0, %v571_v12  ;;  %v552_v6 = vld [vmem:[%s10353_s0 + $0xcc8] sm:$0xff] }
 0x260   :  { %4438 = vst.msk [vmem:[%s10354_s3 + $0x118] sm:$0xff] %vm4402_vm1, %v3289_v16  ;;  %v557_v16 = vld [vmem:[%s10353_s0 + $0xcf0] sm:$0xff]  ;;  %v592_v32 = vld [vmem:[%s10353_s0 + $0xe08] sm:$0xff] }
 0x261   :  { %4437 = vst.msk [vmem:[%s10354_s3 + $0x110] sm:$0xff] %vm4402_vm1, %v3284_v40  ;;  %v8266_v24 = vpop.f32.mrb[164].mxu0  ;;  %v5270_v13 = vpop.f32.mrb[164].mxu1 }
 0x262   :  { %v3299_v7 = vadd.f32 %v5270_v13, %v7312_v15  ;;  %v2170_v19 = vpop.f32.mrb[165].mxu0  ;;  %2432 = vmatmul.mubr.f32.gmra.mrb[14].mxu0 %v548_v43  ;;  %v3293_v4 = vpop.f32.mrb[165].mxu1  ;;  %5428 = vmatmul.mubr.msk.f32.gmra.mrb[14].mxu1 %vm917_vm0, %v574_v60  ;;  %v583_v15 = vld [vmem:[%s10353_s0 + $0xdc0] sm:$0xff]  ;;  %v560_v13 = vld [vmem:[%s10353_s0 + $0xd08] sm:$0xff] }
 0x263   :  { %v3294_v46 = vadd.f32 %v3293_v4, %v7294_v49  ;;  %2436 = vmatprep.mubr.f32.mxu0 %v552_v6  ;;  %5430 = vmatprep.mubr.msk.f32.mxu1 %vm917_vm0, %v577_v37  ;;  %v555_v49 = vld [vmem:[%s10353_s0 + $0xce0] sm:$0xff] }
 0x264   :  { %4440 = vst.msk [vmem:[%s10354_s3 + $0x128] sm:$0xff] %vm4402_vm1, %v3299_v7  ;;  %v598_v7 = vld [vmem:[%s10353_s0 + $0xe38] sm:$0xff] }
 0x265   :  { %4439 = vst.msk [vmem:[%s10354_s3 + $0x120] sm:$0xff] %vm4402_vm1, %v3294_v46  ;;  %v8292_v54 = vpop.f32.mrb[166].mxu0  ;;  %v5273_v48 = vpop.f32.mrb[166].mxu1 }
 0x266   :  { %v3309_v45 = vadd.f32 %v5273_v48, %v7348_v25  ;;  %v2175_v44 = vpop.f32.mrb[167].mxu0  ;;  %2437 = vmatmul.mubr.f32.gmra.mrb[16].mxu0 %v551_v1  ;;  %v3303_v20 = vpop.f32.mrb[167].mxu1  ;;  %5431 = vmatmul.mubr.msk.f32.gmra.mrb[16].mxu1 %vm917_vm0, %v580_v42  ;;  %v589_v25 = vld [vmem:[%s10353_s0 + $0xdf0] sm:$0xff]  ;;  %v604_v48 = vld [vmem:[%s10353_s0 + $0xe68] sm:$0xff] }
 0x267   :  { %v3304_v57 = vadd.f32 %v3303_v20, %v7330_v61  ;;  %2441 = vmatprep.mubr.f32.mxu0 %v555_v49  ;;  %5433 = vmatprep.mubr.msk.f32.mxu1 %vm917_vm0, %v583_v15  ;;  %v558_v61 = vld [vmem:[%s10353_s0 + $0xcf8] sm:$0xff]  ;;  %v563_v15 = vld [vmem:[%s10353_s0 + $0xd20] sm:$0xff] }
 0x268   :  { %4442 = vst.msk [vmem:[%s10354_s3 + $0x138] sm:$0xff] %vm4402_vm1, %v3309_v45 }
 0x269   :  { %4441 = vst.msk [vmem:[%s10354_s3 + $0x130] sm:$0xff] %vm4402_vm1, %v3304_v57  ;;  %v8318_v22 = vpop.f32.mrb[168].mxu0  ;;  %v5276_v38 = vpop.f32.mrb[168].mxu1 }
 0x26a   :  { %v3319_v26 = vadd.f32 %v5276_v38, %v7384_v39  ;;  %v2180_v29 = vpop.f32.mrb[169].mxu0  ;;  %2442 = vmatmul.mubr.f32.gmra.mrb[18].mxu0 %v554_v27  ;;  %v3313_v12 = vpop.f32.mrb[169].mxu1  ;;  %5434 = vmatmul.mubr.msk.f32.gmra.mrb[18].mxu1 %vm917_vm0, %v586_v59  ;;  %v595_v39 = vld [vmem:[%s10353_s0 + $0xe20] sm:$0xff] }
 0x26b   :  { %v3314_v36 = vadd.f32 %v3313_v12, %v7366_v23  ;;  %2446 = vmatprep.mubr.f32.mxu0 %v558_v61  ;;  %5436 = vmatprep.mubr.msk.f32.mxu1 %vm917_vm0, %v589_v25  ;;  %v561_v23 = vld [vmem:[%s10353_s0 + $0xd10] sm:$0xff]  ;;  %v566_v61 = vld [vmem:[%s10353_s0 + $0xd38] sm:$0xff] }
 0x26c   :  { %4444 = vst.msk [vmem:[%s10354_s3 + $0x148] sm:$0xff] %vm4402_vm1, %v3319_v26  ;;  %v610_v25 = vld [vmem:[%s10353_s0 + $0xe98] sm:$0xff] }
 0x26d   :  { %4443 = vst.msk [vmem:[%s10354_s3 + $0x140] sm:$0xff] %vm4402_vm1, %v3314_v36  ;;  %v8344_v30 = vpop.f32.mrb[170].mxu0  ;;  %v5279_v40 = vpop.f32.mrb[170].mxu1 }
 0x26e   :  { %v3329_v43 = vadd.f32 %v5279_v40, %v7420_v2  ;;  %v2185_v60 = vpop.f32.mrb[171].mxu0  ;;  %2447 = vmatmul.mubr.f32.gmra.mrb[20].mxu0 %v557_v16  ;;  %v3323_v6 = vpop.f32.mrb[171].mxu1  ;;  %5437 = vmatmul.mubr.msk.f32.gmra.mrb[20].mxu1 %vm917_vm0, %v592_v32  ;;  %v601_v2 = vld [vmem:[%s10353_s0 + $0xe50] sm:$0xff] }
 0x26f   :  { %v3324_v37 = vadd.f32 %v3323_v6, %v7402_v47  ;;  %2451 = vmatprep.mubr.f32.mxu0 %v561_v23  ;;  %5439 = vmatprep.mubr.msk.f32.mxu1 %vm917_vm0, %v595_v39  ;;  %v564_v47 = vld [vmem:[%s10353_s0 + $0xd28] sm:$0xff]  ;;  %v569_v32 = vld [vmem:[%s10353_s0 + $0xd50] sm:$0xff] }
 0x270   :  { %4446 = vst.msk [vmem:[%s10354_s3 + $0x158] sm:$0xff] %vm4402_vm1, %v3329_v43  ;;  %v616_v23 = vld [vmem:[%s10353_s0 + $0xec8] sm:$0xff] }
 0x271   :  { %4445 = vst.msk [vmem:[%s10354_s3 + $0x150] sm:$0xff] %vm4402_vm1, %v3324_v37  ;;  %v8370_v19 = vpop.f32.mrb[172].mxu0  ;;  %v5282_v4 = vpop.f32.mrb[172].mxu1 }
 0x272   :  { %v3339_v46 = vadd.f32 %v5282_v4, %v7456_v33  ;;  %v2190_v1 = vpop.f32.mrb[173].mxu0  ;;  %2452 = vmatmul.mubr.f32.gmra.mrb[22].mxu0 %v560_v13  ;;  %v3333_v42 = vpop.f32.mrb[173].mxu1  ;;  %5440 = vmatmul.mubr.msk.f32.gmra.mrb[22].mxu1 %vm917_vm0, %v598_v7  ;;  %v607_v33 = vld [vmem:[%s10353_s0 + $0xe80] sm:$0xff]  ;;  %v572_v13 = vld [vmem:[%s10353_s0 + $0xd68] sm:$0xff]  ;;  %v622_v7 = vld [vmem:[%s10353_s0 + $0xef8] sm:$0xff] }
 0x273   :  { %v3334_v49 = vadd.f32 %v3333_v42, %v7438_v17  ;;  %2456 = vmatprep.mubr.f32.mxu0 %v564_v47  ;;  %5442 = vmatprep.mubr.msk.f32.mxu1 %vm917_vm0, %v601_v2  ;;  %v567_v17 = vld [vmem:[%s10353_s0 + $0xd40] sm:$0xff] }
 0x274   :  { %4448 = vst.msk [vmem:[%s10354_s3 + $0x168] sm:$0xff] %vm4402_vm1, %v3339_v46  ;;  %v10431_v42 = vld [vmem:[#allocation54_spill] sm:$0xff] }
 0x275   :  { %4447 = vst.msk [vmem:[%s10354_s3 + $0x160] sm:$0xff] %vm4402_vm1, %v3334_v49  ;;  %v8396_v45 = vpop.f32.mrb[174].mxu0  ;;  %v5285_v44 = vpop.f32.mrb[174].mxu1 }
 0x276   :  { %v3349_v20 = vadd.f32 %v5285_v44, %v7492_v0  ;;  %v2195_v57 = vpop.f32.mrb[175].mxu0  ;;  %2457 = vmatmul.mubr.f32.gmra.mrb[24].mxu0 %v563_v15  ;;  %v3343_v27 = vpop.f32.mrb[175].mxu1  ;;  %5443 = vmatmul.mubr.msk.f32.gmra.mrb[24].mxu1 %vm917_vm0, %v604_v48  ;;  %v613_v0 = vld [vmem:[%s10353_s0 + $0xeb0] sm:$0xff]  ;;  %v575_v15 = vld [vmem:[%s10353_s0 + $0xd80] sm:$0xff]  ;;  %v628_v48 = vld [vmem:[%s10353_s0 + $0xf28] sm:$0xff] }
 0x277   :  { %v3344_v59 = vadd.f32 %v3343_v27, %v7474_v55  ;;  %2461 = vmatprep.mubr.f32.mxu0 %v567_v17  ;;  %5445 = vmatprep.mubr.msk.f32.mxu1 %vm917_vm0, %v607_v33  ;;  %v570_v55 = vld [vmem:[%s10353_s0 + $0xd58] sm:$0xff]  ;;  %v631_v17 = vld [vmem:[%s10353_s0 + $0xf40] sm:$0xff] }
 0x278   :  { %4450 = vst.msk [vmem:[%s10354_s3 + $0x178] sm:$0xff] %vm4402_vm1, %v3349_v20  ;;  %v10432_v20 = vld [vmem:[#allocation59_spill] sm:$0xff] }
 0x279   :  { %4449 = vst.msk [vmem:[%s10354_s3 + $0x170] sm:$0xff] %vm4402_vm1, %v3344_v59  ;;  %v8422_v38 = vpop.f32.mrb[176].mxu0  ;;  %v5288_v26 = vpop.f32.mrb[176].mxu1 }
 0x27a   :  { %v3359_v29 = vadd.f32 %v5288_v26, %v7528_v41  ;;  %v2200_v12 = vpop.f32.mrb[177].mxu0  ;;  %2462 = vmatmul.mubr.f32.gmra.mrb[26].mxu0 %v566_v61  ;;  %v3353_v36 = vpop.f32.mrb[177].mxu1  ;;  %5446 = vmatmul.mubr.msk.f32.gmra.mrb[26].mxu1 %vm917_vm0, %v610_v25  ;;  %v619_v41 = vld [vmem:[%s10353_s0 + $0xee0] sm:$0xff]  ;;  %v10433_v61 = vld [vmem:[#allocation57_spill] sm:$0xff] }
 0x27b   :  { %v3354_v16 = vadd.f32 %v3353_v36, %v7510_v31  ;;  %2466 = vmatprep.mubr.f32.mxu0 %v570_v55  ;;  %5448 = vmatprep.mubr.msk.f32.mxu1 %vm917_vm0, %v613_v0  ;;  %v573_v31 = vld [vmem:[%s10353_s0 + $0xd70] sm:$0xff]  ;;  %v578_v55 = vld [vmem:[%s10353_s0 + $0xd98] sm:$0xff] }
 0x27c   :  { %4452 = vst.msk [vmem:[%s10354_s3 + $0x188] sm:$0xff] %vm4402_vm1, %v3359_v29  ;;  %v634_v0 = vld [vmem:[%s10353_s0 + $0xf58] sm:$0xff]  ;;  %v637_v29 = vld [vmem:[%s10353_s0 + $0xf70] sm:$0xff] }
 0x27d   :  { %4451 = vst.msk [vmem:[%s10354_s3 + $0x180] sm:$0xff] %vm4402_vm1, %v3354_v16  ;;  %v8448_v39 = vpop.f32.mrb[178].mxu0  ;;  %v5291_v40 = vpop.f32.mrb[178].mxu1  ;;  %v582_v26 = vld [vmem:[%s10353_s0 + $0xdb8] sm:$0xff]  ;;  %v10434_v16 = vld [vmem:[#allocation63_spill] sm:$0xff] }
 0x27e   :  { %v3369_v43 = vadd.f32 %v5291_v40, %v7564_v21  ;;  %v2205_v60 = vpop.f32.mrb[179].mxu0  ;;  %2467 = vmatmul.mubr.f32.gmra.mrb[28].mxu0 %v569_v32  ;;  %v3363_v6 = vpop.f32.mrb[179].mxu1  ;;  %5449 = vmatmul.mubr.msk.f32.gmra.mrb[28].mxu1 %vm917_vm0, %v616_v23  ;;  %v625_v21 = vld [vmem:[%s10353_s0 + $0xf10] sm:$0xff] }
 0x27f   :  { %v3364_v37 = vadd.f32 %v3363_v6, %v7546_v9  ;;  %2471 = vmatprep.mubr.f32.mxu0 %v573_v31  ;;  %5451 = vmatprep.mubr.msk.f32.mxu1 %vm917_vm0, %v619_v41  ;;  %v576_v9 = vld [vmem:[%s10353_s0 + $0xd88] sm:$0xff]  ;;  %v10435_v41 = vld [vmem:[#allocation61_spill] sm:$0xff]  ;;  %v585_v6 = vld [vmem:[%s10353_s0 + $0xdd0] sm:$0xff] }
 0x280   :  { %4454 = vst.msk [vmem:[%s10354_s3 + $0x198] sm:$0xff] %vm4402_vm1, %v3369_v43  ;;  %v581_v43 = vld [vmem:[%s10353_s0 + $0xdb0] sm:$0xff]  ;;  %v640_v60 = vld [vmem:[%s10353_s0 + $0xf88] sm:$0xff] }
 0x281   :  { %4453 = vst.msk [vmem:[%s10354_s3 + $0x190] sm:$0xff] %vm4402_vm1, %v3364_v37  ;;  %v8474_v47 = vpop.f32.mrb[180].mxu0  ;;  %v5294_v2 = vpop.f32.mrb[180].mxu1  ;;  %v643_v37 = vld [vmem:[%s10353_s0 + $0xfa0] sm:$0xff] }
 0x282   :  { %v3379_v4 = vadd.f32 %v5294_v2, %v7600_v63  ;;  %v2210_v46 = vpop.f32.mrb[181].mxu0  ;;  %2472 = vmatmul.mubr.f32.gmra.mrb[30].mxu0 %v572_v13  ;;  %v3373_v1 = vpop.f32.mrb[181].mxu1  ;;  %5452 = vmatmul.mubr.msk.f32.gmra.mrb[30].mxu1 %vm917_vm0, %v622_v7  ;;  %v579_v63 = vld [vmem:[%s10353_s0 + $0xda0] sm:$0xff] }
 0x283   :  { %v3374_v49 = vadd.f32 %v3373_v1, %v10431_v42  ;;  %2476 = vmatprep.mubr.f32.mxu0 %v576_v9  ;;  %5454 = vmatprep.mubr.msk.f32.mxu1 %vm917_vm0, %v625_v21  ;;  %v10436_v9 = vld [vmem:[#allocation67_spill] sm:$0xff]  ;;  %v10437_v46 = vld [vmem:[#allocation65_spill] sm:$0xff] }
 0x284   :  { %4456 = vst.msk [vmem:[%s10354_s3 + $0x1a8] sm:$0xff] %vm4402_vm1, %v3379_v4  ;;  %v584_v42 = vld [vmem:[%s10353_s0 + $0xdc8] sm:$0xff] }
 0x285   :  { %4455 = vst.msk [vmem:[%s10354_s3 + $0x1a0] sm:$0xff] %vm4402_vm1, %v3374_v49  ;;  %v8500_v33 = vpop.f32.mrb[182].mxu0  ;;  %v5297_v44 = vpop.f32.mrb[182].mxu1  ;;  %v646_v49 = vld [vmem:[%s10353_s0 + $0xfb8] sm:$0xff] }
 0x286   :  { %v3389_v57 = vadd.f32 %v5297_v44, %v10432_v20  ;;  %v2215_v27 = vpop.f32.mrb[183].mxu0  ;;  %2477 = vmatmul.mubr.f32.gmra.mrb[32].mxu0 %v575_v15  ;;  %v3383_v59 = vpop.f32.mrb[183].mxu1  ;;  %5455 = vmatmul.mubr.msk.f32.gmra.mrb[32].mxu1 %vm917_vm0, %v628_v48  ;;  %v588_v15 = vld [vmem:[%s10353_s0 + $0xde8] sm:$0xff]  ;;  %v649_v48 = vld [vmem:[%s10353_s0 + $0xfd0] sm:$0xff] }
 0x287   :  { %v3384_v25 = vadd.f32 %v3383_v59, %v10433_v61  ;;  %2481 = vmatprep.mubr.f32.mxu0 %v579_v63  ;;  %5457 = vmatprep.mubr.msk.f32.mxu1 %vm917_vm0, %v631_v17  ;;  %v10438_v44 = vld [vmem:[#allocation71_spill] sm:$0xff]  ;;  %v10439_v59 = vld [vmem:[#allocation69_spill] sm:$0xff] }
 0x288   :  { %4458 = vst.msk [vmem:[%s10354_s3 + $0x1b8] sm:$0xff] %vm4402_vm1, %v3389_v57 }
 0x289   :  { %4457 = vst.msk [vmem:[%s10354_s3 + $0x1b0] sm:$0xff] %vm4402_vm1, %v3384_v25  ;;  %v8526_v12 = vpop.f32.mrb[184].mxu0  ;;  %v5300_v36 = vpop.f32.mrb[184].mxu1  ;;  %v587_v25 = vld [vmem:[%s10353_s0 + $0xde0] sm:$0xff] }
 0x28a   :  { %v3399_v32 = vadd.f32 %v5300_v36, %v10434_v16  ;;  %v2220_v23 = vpop.f32.mrb[185].mxu0  ;;  %2482 = vmatmul.mubr.f32.gmra.mrb[34].mxu0 %v578_v55  ;;  %v3393_v31 = vpop.f32.mrb[185].mxu1  ;;  %5458 = vmatmul.mubr.msk.f32.gmra.mrb[34].mxu1 %vm917_vm0, %v634_v0  ;;  %v652_v55 = vld [vmem:[%s10353_s0 + $0xfe8] sm:$0xff]  ;;  %v591_v0 = vld [vmem:[%s10353_s0 + $0xe00] sm:$0xff] }
 0x28b   :  { %v3394_v40 = vadd.f32 %v3393_v31, %v10435_v41  ;;  %2486 = vmatprep.mubr.f32.mxu0 %v582_v26  ;;  %5460 = vmatprep.mubr.msk.f32.mxu1 %vm917_vm0, %v637_v29  ;;  %v655_v26 = vld [vmem:[%s10353_s0 + $0x1000] sm:$0xff]  ;;  %v10440_v16 = vld [vmem:[#allocation75_spill] sm:$0xff]  ;;  %v10441_v41 = vld [vmem:[#allocation73_spill] sm:$0xff] }
 0x28c   :  { %4460 = vst.msk [vmem:[%s10354_s3 + $0x1c8] sm:$0xff] %vm4402_vm1, %v3399_v32 }
 0x28d   :  { %4459 = vst.msk [vmem:[%s10354_s3 + $0x1c0] sm:$0xff] %vm4402_vm1, %v3394_v40  ;;  %v8552_v13 = vpop.f32.mrb[186].mxu0  ;;  %v5303_v7 = vpop.f32.mrb[186].mxu1 }
 0x28e   :  { %v3409_v21 = vadd.f32 %v5303_v7, %v10436_v9  ;;  %v2225_v2 = vpop.f32.mrb[187].mxu0  ;;  %2487 = vmatmul.mubr.f32.gmra.mrb[36].mxu0 %v581_v43  ;;  %v3403_v4 = vpop.f32.mrb[187].mxu1  ;;  %5461 = vmatmul.mubr.msk.f32.gmra.mrb[36].mxu1 %vm917_vm0, %v640_v60  ;;  %v590_v43 = vld [vmem:[%s10353_s0 + $0xdf8] sm:$0xff] }
 0x28f   :  { %v3404_v1 = vadd.f32 %v3403_v4, %v10437_v46  ;;  %2491 = vmatprep.mubr.f32.mxu0 %v585_v6  ;;  %5463 = vmatprep.mubr.msk.f32.mxu1 %vm917_vm0, %v643_v37  ;;  %v658_v60 = vld [vmem:[%s10353_s0 + $0x1018] sm:$0xff]  ;;  %v661_v37 = vld [vmem:[%s10353_s0 + $0x1030] sm:$0xff] }
 0x290   :  { %4462 = vst.msk [vmem:[%s10354_s3 + $0x1d8] sm:$0xff] %vm4402_vm1, %v3409_v21  ;;  %v594_v6 = vld [vmem:[%s10353_s0 + $0xe18] sm:$0xff] }
 0x291   :  { %4461 = vst.msk [vmem:[%s10354_s3 + $0x1d0] sm:$0xff] %vm4402_vm1, %v3404_v1  ;;  %v8578_v63 = vpop.f32.mrb[188].mxu0  ;;  %v5306_v17 = vpop.f32.mrb[188].mxu1  ;;  %v10442_v46 = vld [vmem:[#allocation77_spill] sm:$0xff] }
 0x292   :  { %v3419_v20 = vadd.f32 %v5306_v17, %v10438_v44  ;;  %v2230_v57 = vpop.f32.mrb[189].mxu0  ;;  %2492 = vmatmul.mubr.f32.gmra.mrb[38].mxu0 %v584_v42  ;;  %v3413_v27 = vpop.f32.mrb[189].mxu1  ;;  %5464 = vmatmul.mubr.msk.f32.gmra.mrb[38].mxu1 %vm917_vm0, %v646_v49  ;;  %v593_v42 = vld [vmem:[%s10353_s0 + $0xe10] sm:$0xff]  ;;  %v664_v49 = vld [vmem:[%s10353_s0 + $0x1048] sm:$0xff] }
 0x293   :  { %v3414_v61 = vadd.f32 %v3413_v27, %v10439_v59  ;;  %2496 = vmatprep.mubr.f32.mxu0 %v588_v15  ;;  %5466 = vmatprep.mubr.msk.f32.mxu1 %vm917_vm0, %v649_v48  ;;  %v667_v15 = vld [vmem:[%s10353_s0 + $0x1060] sm:$0xff]  ;;  %v596_v59 = vld [vmem:[%s10353_s0 + $0xe28] sm:$0xff] }
 0x294   :  { %4464 = vst.msk [vmem:[%s10354_s3 + $0x1e8] sm:$0xff] %vm4402_vm1, %v3419_v20 }
 0x295   :  { %4463 = vst.msk [vmem:[%s10354_s3 + $0x1e0] sm:$0xff] %vm4402_vm1, %v3414_v61  ;;  %v8604_v29 = vpop.f32.mrb[190].mxu0  ;;  %v5309_v36 = vpop.f32.mrb[190].mxu1  ;;  %v670_v61 = vld [vmem:[%s10353_s0 + $0x1078] sm:$0xff] }
 0x296   :  { %v3429_v32 = vadd.f32 %v5309_v36, %v10440_v16  ;;  %v2235_v23 = vpop.f32.mrb[191].mxu0  ;;  %2497 = vmatmul.mubr.f32.gmra.mrb[40].mxu0 %v587_v25  ;;  %v3423_v31 = vpop.f32.mrb[191].mxu1  ;;  %5467 = vmatmul.mubr.msk.f32.gmra.mrb[40].mxu1 %vm917_vm0, %v652_v55 }
 0x297   :  { %v3424_v40 = vadd.f32 %v3423_v31, %v10441_v41  ;;  %2501 = vmatprep.mubr.f32.mxu0 %v591_v0  ;;  %5469 = vmatprep.mubr.msk.f32.mxu1 %vm917_vm0, %v655_v26  ;;  %v676_v23 = vld [vmem:[%s10353_s0 + $0x10a8] sm:$0xff] }
 0x298   :  { %4466 = vst.msk [vmem:[%s10354_s3 + $0x1f8] sm:$0xff] %vm4402_vm1, %v3429_v32  ;;  %v599_v32 = vld [vmem:[%s10353_s0 + $0xe40] sm:$0xff] }
 0x299   :  { %4465 = vst.msk [vmem:[%s10354_s3 + $0x1f0] sm:$0xff] %vm4402_vm1, %v3424_v40  ;;  %v8630_v7 = vpop.f32.mrb[192].mxu0  ;;  %v5312_v9 = vpop.f32.mrb[192].mxu1 }
 0x29a   :  { %v3439_v21 = vadd.f32 %v5312_v9, %v7824_v35  ;;  %v2240_v2 = vpop.f32.mrb[193].mxu0  ;;  %2502 = vmatmul.mubr.f32.gmra.mrb[42].mxu0 %v590_v43  ;;  %v3433_v4 = vpop.f32.mrb[193].mxu1  ;;  %5470 = vmatmul.mubr.msk.f32.gmra.mrb[42].mxu1 %vm917_vm0, %v658_v60  ;;  %v597_v35 = vld [vmem:[%s10353_s0 + $0xe30] sm:$0xff]  ;;  %v682_v9 = vld [vmem:[%s10353_s0 + $0x10d8] sm:$0xff] }
 0x29b   :  { %v3434_v1 = vadd.f32 %v3433_v4, %v10442_v46  ;;  %2506 = vmatprep.mubr.f32.mxu0 %v594_v6  ;;  %5472 = vmatprep.mubr.msk.f32.mxu1 %vm917_vm0, %v661_v37  ;;  %v602_v37 = vld [vmem:[%s10353_s0 + $0xe58] sm:$0xff] }
 0x29c   :  { %4468 = vst.msk [vmem:[%s10354_s3 + $0x208] sm:$0xff] %vm4402_vm1, %v3439_v21 }
 0x29d   :  { %4467 = vst.msk [vmem:[%s10354_s3 + $0x200] sm:$0xff] %vm4402_vm1, %v3434_v1  ;;  %v8656_v48 = vpop.f32.mrb[194].mxu0  ;;  %v5315_v17 = vpop.f32.mrb[194].mxu1 }
 0x29e   :  { %v3449_v44 = vadd.f32 %v5315_v17, %v7876_v28  ;;  %v2245_v20 = vpop.f32.mrb[195].mxu0  ;;  %2507 = vmatmul.mubr.f32.gmra.mrb[44].mxu0 %v593_v42  ;;  %v3443_v57 = vpop.f32.mrb[195].mxu1  ;;  %5473 = vmatmul.mubr.msk.f32.gmra.mrb[44].mxu1 %vm917_vm0, %v664_v49  ;;  %v673_v28 = vld [vmem:[%s10353_s0 + $0x1090] sm:$0xff] }
 0x29f   :  { %v3444_v27 = vadd.f32 %v3443_v57, %v7850_v53  ;;  %2511 = vmatprep.mubr.f32.mxu0 %v597_v35  ;;  %5475 = vmatprep.mubr.msk.f32.mxu1 %vm917_vm0, %v667_v15  ;;  %v600_v53 = vld [vmem:[%s10353_s0 + $0xe48] sm:$0xff]  ;;  %v605_v49 = vld [vmem:[%s10353_s0 + $0xe70] sm:$0xff] }
 0x2a0   :  { %4470 = vst.msk [vmem:[%s10354_s3 + $0x218] sm:$0xff] %vm4402_vm1, %v3449_v44  ;;  %v688_v35 = vld [vmem:[%s10353_s0 + $0x1108] sm:$0xff] }
 0x2a1   :  { %4469 = vst.msk [vmem:[%s10354_s3 + $0x210] sm:$0xff] %vm4402_vm1, %v3444_v27  ;;  %v8682_v25 = vpop.f32.mrb[196].mxu0  ;;  %v5318_v55 = vpop.f32.mrb[196].mxu1 }
 0x2a2   :  { %v3459_v0 = vadd.f32 %v5318_v55, %v7928_v11  ;;  %v2250_v26 = vpop.f32.mrb[197].mxu0  ;;  %2512 = vmatmul.mubr.f32.gmra.mrb[46].mxu0 %v596_v59  ;;  %v3453_v36 = vpop.f32.mrb[197].mxu1  ;;  %5476 = vmatmul.mubr.msk.f32.gmra.mrb[46].mxu1 %vm917_vm0, %v670_v61  ;;  %v679_v11 = vld [vmem:[%s10353_s0 + $0x10c0] sm:$0xff]  ;;  %v608_v59 = vld [vmem:[%s10353_s0 + $0xe88] sm:$0xff]  ;;  %v694_v61 = vld [vmem:[%s10353_s0 + $0x1138] sm:$0xff] }
 0x2a3   :  { %v3454_v16 = vadd.f32 %v3453_v36, %v7902_v50  ;;  %2516 = vmatprep.mubr.f32.mxu0 %v600_v53  ;;  %5478 = vmatprep.mubr.msk.f32.mxu1 %vm917_vm0, %v673_v28  ;;  %v603_v50 = vld [vmem:[%s10353_s0 + $0xe60] sm:$0xff] }
 0x2a4   :  { %4472 = vst.msk [vmem:[%s10354_s3 + $0x228] sm:$0xff] %vm4402_vm1, %v3459_v0 }
 0x2a5   :  { %4471 = vst.msk [vmem:[%s10354_s3 + $0x220] sm:$0xff] %vm4402_vm1, %v3454_v16  ;;  %v8708_v31 = vpop.f32.mrb[198].mxu0  ;;  %v5321_v41 = vpop.f32.mrb[198].mxu1  ;;  %v611_v16 = vld [vmem:[%s10353_s0 + $0xea0] sm:$0xff] }
 0x2a6   :  { %v3469_v40 = vadd.f32 %v5321_v41, %v7980_v62  ;;  %v2255_v43 = vpop.f32.mrb[199].mxu0  ;;  %2517 = vmatmul.mubr.f32.gmra.mrb[48].mxu0 %v599_v32  ;;  %v3463_v60 = vpop.f32.mrb[199].mxu1  ;;  %5479 = vmatmul.mubr.msk.f32.gmra.mrb[48].mxu1 %vm917_vm0, %v676_v23  ;;  %v685_v62 = vld [vmem:[%s10353_s0 + $0x10f0] sm:$0xff]  ;;  %v700_v32 = vld [vmem:[%s10353_s0 + $0x1168] sm:$0xff] }
 0x2a7   :  { %v3464_v6 = vadd.f32 %v3463_v60, %v7954_v58  ;;  %2521 = vmatprep.mubr.f32.mxu0 %v603_v50  ;;  %5481 = vmatprep.mubr.msk.f32.mxu1 %vm917_vm0, %v679_v11  ;;  %v606_v58 = vld [vmem:[%s10353_s0 + $0xe78] sm:$0xff] }
 0x2a8   :  { %4474 = vst.msk [vmem:[%s10354_s3 + $0x238] sm:$0xff] %vm4402_vm1, %v3469_v40  ;;  %v614_v60 = vld [vmem:[%s10353_s0 + $0xeb8] sm:$0xff] }
 0x2a9   :  { %4473 = vst.msk [vmem:[%s10354_s3 + $0x230] sm:$0xff] %vm4402_vm1, %v3464_v6  ;;  %v8734_v21 = vpop.f32.mrb[200].mxu0  ;;  %v5324_v2 = vpop.f32.mrb[200].mxu1  ;;  %v706_v6 = vld [vmem:[%s10353_s0 + $0x1198] sm:$0xff] }
 0x2aa   :  { %v3479_v4 = vadd.f32 %v5324_v2, %v8032_v52  ;;  %v2260_v46 = vpop.f32.mrb[201].mxu0  ;;  %2522 = vmatmul.mubr.f32.gmra.mrb[50].mxu0 %v602_v37  ;;  %v3473_v1 = vpop.f32.mrb[201].mxu1  ;;  %5482 = vmatmul.mubr.msk.f32.gmra.mrb[50].mxu1 %vm917_vm0, %v682_v9  ;;  %v691_v52 = vld [vmem:[%s10353_s0 + $0x1120] sm:$0xff] }
 0x2ab   :  { %v3474_v42 = vadd.f32 %v3473_v1, %v8006_v8  ;;  %2526 = vmatprep.mubr.f32.mxu0 %v606_v58  ;;  %5484 = vmatprep.mubr.msk.f32.mxu1 %vm917_vm0, %v685_v62  ;;  %v609_v8 = vld [vmem:[%s10353_s0 + $0xe90] sm:$0xff]  ;;  %v712_v1 = vld [vmem:[%s10353_s0 + $0x11c8] sm:$0xff] }
 0x2ac   :  { %4476 = vst.msk [vmem:[%s10354_s3 + $0x248] sm:$0xff] %vm4402_vm1, %v3479_v4  ;;  %v617_v46 = vld [vmem:[%s10353_s0 + $0xed0] sm:$0xff] }
 0x2ad   :  { %4475 = vst.msk [vmem:[%s10354_s3 + $0x240] sm:$0xff] %vm4402_vm1, %v3474_v42  ;;  %v8760_v15 = vpop.f32.mrb[202].mxu0  ;;  %v5327_v17 = vpop.f32.mrb[202].mxu1 }
 0x2ae   :  { %v3489_v44 = vadd.f32 %v5327_v17, %v8084_v18  ;;  %v2265_v20 = vpop.f32.mrb[203].mxu0  ;;  %2527 = vmatmul.mubr.f32.gmra.mrb[52].mxu0 %v605_v49  ;;  %v3483_v57 = vpop.f32.mrb[203].mxu1  ;;  %5485 = vmatmul.mubr.msk.f32.gmra.mrb[52].mxu1 %vm917_vm0, %v688_v35  ;;  %v697_v18 = vld [vmem:[%s10353_s0 + $0x1150] sm:$0xff] }
 0x2af   :  { %v3484_v27 = vadd.f32 %v3483_v57, %v8058_v34  ;;  %2531 = vmatprep.mubr.f32.mxu0 %v609_v8  ;;  %5487 = vmatprep.mubr.msk.f32.mxu1 %vm917_vm0, %v691_v52  ;;  %v612_v34 = vld [vmem:[%s10353_s0 + $0xea8] sm:$0xff]  ;;  %v718_v20 = vld [vmem:[%s10353_s0 + $0x11f8] sm:$0xff] }
 0x2b0   :  { %4478 = vst.msk [vmem:[%s10354_s3 + $0x258] sm:$0xff] %vm4402_vm1, %v3489_v44  ;;  %v620_v44 = vld [vmem:[%s10353_s0 + $0xee8] sm:$0xff] }
 0x2b1   :  { %4477 = vst.msk [vmem:[%s10354_s3 + $0x250] sm:$0xff] %vm4402_vm1, %v3484_v27  ;;  %v8786_v53 = vpop.f32.mrb[204].mxu0  ;;  %v5330_v28 = vpop.f32.mrb[204].mxu1 }
 0x2b2   :  { %v3499_v55 = vadd.f32 %v5330_v28, %v8136_v5  ;;  %v2270_v0 = vpop.f32.mrb[205].mxu0  ;;  %2532 = vmatmul.mubr.f32.gmra.mrb[54].mxu0 %v608_v59  ;;  %v3493_v26 = vpop.f32.mrb[205].mxu1  ;;  %5488 = vmatmul.mubr.msk.f32.gmra.mrb[54].mxu1 %vm917_vm0, %v694_v61  ;;  %v703_v5 = vld [vmem:[%s10353_s0 + $0x1180] sm:$0xff] }
 0x2b3   :  { %v3494_v36 = vadd.f32 %v3493_v26, %v8110_v3  ;;  %2536 = vmatprep.mubr.f32.mxu0 %v612_v34  ;;  %5490 = vmatprep.mubr.msk.f32.mxu1 %vm917_vm0, %v697_v18  ;;  %v615_v3 = vld [vmem:[%s10353_s0 + $0xec0] sm:$0xff] }
 0x2b4   :  { %4480 = vst.msk [vmem:[%s10354_s3 + $0x268] sm:$0xff] %vm4402_vm1, %v3499_v55  ;;  %v623_v28 = vld [vmem:[%s10353_s0 + $0xf00] sm:$0xff]  ;;  %v724_v55 = vld [vmem:[%s10353_s0 + $0x1228] sm:$0xff] }
 0x2b5   :  { %4479 = vst.msk [vmem:[%s10354_s3 + $0x260] sm:$0xff] %vm4402_vm1, %v3494_v36  ;;  %v8812_v23 = vpop.f32.mrb[206].mxu0  ;;  %v5333_v50 = vpop.f32.mrb[206].mxu1 }
 0x2b6   :  { %v3509_v11 = vadd.f32 %v5333_v50, %v8188_v10  ;;  %v2275_v41 = vpop.f32.mrb[207].mxu0  ;;  %2537 = vmatmul.mubr.f32.gmra.mrb[56].mxu0 %v611_v16  ;;  %v3503_v40 = vpop.f32.mrb[207].mxu1  ;;  %5491 = vmatmul.mubr.msk.f32.gmra.mrb[56].mxu1 %vm917_vm0, %v700_v32  ;;  %v709_v10 = vld [vmem:[%s10353_s0 + $0x11b0] sm:$0xff]  ;;  %v730_v50 = vld [vmem:[%s10353_s0 + $0x1258] sm:$0xff] }
 0x2b7   :  { %v3504_v43 = vadd.f32 %v3503_v40, %v8162_v51  ;;  %2541 = vmatprep.mubr.f32.mxu0 %v615_v3  ;;  %5493 = vmatprep.mubr.msk.f32.mxu1 %vm917_vm0, %v703_v5  ;;  %v618_v51 = vld [vmem:[%s10353_s0 + $0xed8] sm:$0xff] }
 0x2b8   :  { %4482 = vst.msk [vmem:[%s10354_s3 + $0x278] sm:$0xff] %vm4402_vm1, %v3509_v11  ;;  %v626_v5 = vld [vmem:[%s10353_s0 + $0xf18] sm:$0xff] }
 0x2b9   :  { %4481 = vst.msk [vmem:[%s10354_s3 + $0x270] sm:$0xff] %vm4402_vm1, %v3504_v43  ;;  %v8838_v37 = vpop.f32.mrb[208].mxu0  ;;  %v5336_v9 = vpop.f32.mrb[208].mxu1 }
 0x2ba   :  { %v3519_v58 = vadd.f32 %v5336_v9, %v8240_v56  ;;  %v2280_v62 = vpop.f32.mrb[209].mxu0  ;;  %2542 = vmatmul.mubr.f32.gmra.mrb[58].mxu0 %v614_v60  ;;  %v3513_v2 = vpop.f32.mrb[209].mxu1  ;;  %5494 = vmatmul.mubr.msk.f32.gmra.mrb[58].mxu1 %vm917_vm0, %v706_v6  ;;  %v715_v56 = vld [vmem:[%s10353_s0 + $0x11e0] sm:$0xff] }
 0x2bb   :  { %v3514_v4 = vadd.f32 %v3513_v2, %v8214_v14  ;;  %2546 = vmatprep.mubr.f32.mxu0 %v618_v51  ;;  %5496 = vmatprep.mubr.msk.f32.mxu1 %vm917_vm0, %v709_v10  ;;  %v621_v14 = vld [vmem:[%s10353_s0 + $0xef0] sm:$0xff]  ;;  %v736_v10 = vld [vmem:[%s10353_s0 + $0x1288] sm:$0xff] }
 0x2bc   :  { %4484 = vst.msk [vmem:[%s10354_s3 + $0x288] sm:$0xff] %vm4402_vm1, %v3519_v58  ;;  %v629_v51 = vld [vmem:[%s10353_s0 + $0xf30] sm:$0xff] }
 0x2bd   :  { %4483 = vst.msk [vmem:[%s10354_s3 + $0x280] sm:$0xff] %vm4402_vm1, %v3514_v4  ;;  %v8864_v42 = vpop.f32.mrb[210].mxu0  ;;  %v5339_v49 = vpop.f32.mrb[210].mxu1 }
 0x2be   :  { %v3529_v35 = vadd.f32 %v5339_v49, %v8292_v54  ;;  %v2285_v8 = vpop.f32.mrb[211].mxu0  ;;  %2547 = vmatmul.mubr.f32.gmra.mrb[60].mxu0 %v617_v46  ;;  %v3523_v52 = vpop.f32.mrb[211].mxu1  ;;  %5497 = vmatmul.mubr.msk.f32.gmra.mrb[60].mxu1 %vm917_vm0, %v712_v1  ;;  %v721_v54 = vld [vmem:[%s10353_s0 + $0x1210] sm:$0xff]  ;;  %v632_v1 = vld [vmem:[%s10353_s0 + $0xf48] sm:$0xff] }
 0x2bf   :  { %v3524_v17 = vadd.f32 %v3523_v52, %v8266_v24  ;;  %2551 = vmatprep.mubr.f32.mxu0 %v621_v14  ;;  %5499 = vmatprep.mubr.msk.f32.mxu1 %vm917_vm0, %v715_v56  ;;  %v624_v24 = vld [vmem:[%s10353_s0 + $0xf08] sm:$0xff]  ;;  %v742_v14 = vld [vmem:[%s10353_s0 + $0x12b8] sm:$0xff] }
 0x2c0   :  { %4486 = vst.msk [vmem:[%s10354_s3 + $0x298] sm:$0xff] %vm4402_vm1, %v3529_v35 }
 0x2c1   :  { %4485 = vst.msk [vmem:[%s10354_s3 + $0x290] sm:$0xff] %vm4402_vm1, %v3524_v17  ;;  %v8890_v57 = vpop.f32.mrb[212].mxu0  ;;  %v5342_v27 = vpop.f32.mrb[212].mxu1 }
 0x2c2   :  { %v3539_v59 = vadd.f32 %v5342_v27, %v8344_v30  ;;  %v2290_v61 = vpop.f32.mrb[213].mxu0  ;;  %2552 = vmatmul.mubr.f32.gmra.mrb[62].mxu0 %v620_v44  ;;  %v3533_v34 = vpop.f32.mrb[213].mxu1  ;;  %5500 = vmatmul.mubr.msk.f32.gmra.mrb[62].mxu1 %vm917_vm0, %v718_v20  ;;  %v727_v30 = vld [vmem:[%s10353_s0 + $0x1240] sm:$0xff]  ;;  %v748_v20 = vld [vmem:[%s10353_s0 + $0x12e8] sm:$0xff] }
 0x2c3   :  { %v3534_v18 = vadd.f32 %v3533_v34, %v8318_v22  ;;  %2556 = vmatprep.mubr.f32.mxu0 %v624_v24  ;;  %5502 = vmatprep.mubr.msk.f32.mxu1 %vm917_vm0, %v721_v54  ;;  %v627_v22 = vld [vmem:[%s10353_s0 + $0xf20] sm:$0xff] }
 0x2c4   :  { %4488 = vst.msk [vmem:[%s10354_s3 + $0x2a8] sm:$0xff] %vm4402_vm1, %v3539_v59  ;;  %v635_v44 = vld [vmem:[%s10353_s0 + $0xf60] sm:$0xff] }
 0x2c5   :  { %4487 = vst.msk [vmem:[%s10354_s3 + $0x2a0] sm:$0xff] %vm4402_vm1, %v3534_v18  ;;  %v8916_v0 = vpop.f32.mrb[214].mxu0  ;;  %v5345_v26 = vpop.f32.mrb[214].mxu1  ;;  %v638_v18 = vld [vmem:[%s10353_s0 + $0xf78] sm:$0xff] }
 0x2c6   :  { %v3549_v36 = vadd.f32 %v5345_v26, %v8396_v45  ;;  %v2295_v16 = vpop.f32.mrb[215].mxu0  ;;  %2557 = vmatmul.mubr.f32.gmra.mrb[64].mxu0 %v623_v28  ;;  %v3543_v32 = vpop.f32.mrb[215].mxu1  ;;  %5503 = vmatmul.mubr.msk.f32.gmra.mrb[64].mxu1 %vm917_vm0, %v724_v55  ;;  %v733_v45 = vld [vmem:[%s10353_s0 + $0x1270] sm:$0xff]  ;;  %v754_v28 = vld [vmem:[%s10353_s0 + $0x1318] sm:$0xff] }
 0x2c7   :  { %v3544_v3 = vadd.f32 %v3543_v32, %v8370_v19  ;;  %2561 = vmatprep.mubr.f32.mxu0 %v627_v22  ;;  %5505 = vmatprep.mubr.msk.f32.mxu1 %vm917_vm0, %v727_v30  ;;  %v630_v19 = vld [vmem:[%s10353_s0 + $0xf38] sm:$0xff]  ;;  %v641_v32 = vld [vmem:[%s10353_s0 + $0xf90] sm:$0xff] }
 0x2c8   :  { %4490 = vst.msk [vmem:[%s10354_s3 + $0x2b8] sm:$0xff] %vm4402_vm1, %v3549_v36 }
 0x2c9   :  { %4489 = vst.msk [vmem:[%s10354_s3 + $0x2b0] sm:$0xff] %vm4402_vm1, %v3544_v3  ;;  %v8942_v11 = vpop.f32.mrb[216].mxu0  ;;  %v5348_v41 = vpop.f32.mrb[216].mxu1  ;;  %v760_v3 = vld [vmem:[%s10353_s0 + $0x1348] sm:$0xff] }
 0x2ca   :  { %v3559_v40 = vadd.f32 %v5348_v41, %v8448_v39  ;;  %v2300_v43 = vpop.f32.mrb[217].mxu0  ;;  %2562 = vmatmul.mubr.f32.gmra.mrb[66].mxu0 %v626_v5  ;;  %v3553_v60 = vpop.f32.mrb[217].mxu1  ;;  %5506 = vmatmul.mubr.msk.f32.gmra.mrb[66].mxu1 %vm917_vm0, %v730_v50  ;;  %v739_v39 = vld [vmem:[%s10353_s0 + $0x12a0] sm:$0xff] }
 0x2cb   :  { %v3554_v6 = vadd.f32 %v3553_v60, %v8422_v38  ;;  %2566 = vmatprep.mubr.f32.mxu0 %v630_v19  ;;  %5508 = vmatprep.mubr.msk.f32.mxu1 %vm917_vm0, %v733_v45  ;;  %v633_v38 = vld [vmem:[%s10353_s0 + $0xf50] sm:$0xff]  ;;  %v644_v43 = vld [vmem:[%s10353_s0 + $0xfa8] sm:$0xff]  ;;  %v766_v60 = vld [vmem:[%s10353_s0 + $0x1378] sm:$0xff] }
 0x2cc   :  { %4492 = vst.msk [vmem:[%s10354_s3 + $0x2c8] sm:$0xff] %vm4402_vm1, %v3559_v40 }
 0x2cd   :  { %4491 = vst.msk [vmem:[%s10354_s3 + $0x2c0] sm:$0xff] %vm4402_vm1, %v3554_v6  ;;  %v8968_v9 = vpop.f32.mrb[218].mxu0  ;;  %v5351_v58 = vpop.f32.mrb[218].mxu1 }
 0x2ce   :  { %v3569_v62 = vadd.f32 %v5351_v58, %v8500_v33  ;;  %v2305_v2 = vpop.f32.mrb[219].mxu0  ;;  %2567 = vmatmul.mubr.f32.gmra.mrb[68].mxu0 %v629_v51  ;;  %v3563_v4 = vpop.f32.mrb[219].mxu1  ;;  %5509 = vmatmul.mubr.msk.f32.gmra.mrb[68].mxu1 %vm917_vm0, %v736_v10  ;;  %v745_v33 = vld [vmem:[%s10353_s0 + $0x12d0] sm:$0xff] }
 0x2cf   :  { %v3564_v46 = vadd.f32 %v3563_v4, %v8474_v47  ;;  %2571 = vmatprep.mubr.f32.mxu0 %v633_v38  ;;  %5511 = vmatprep.mubr.msk.f32.mxu1 %vm917_vm0, %v739_v39  ;;  %v636_v47 = vld [vmem:[%s10353_s0 + $0xf68] sm:$0xff] }
 0x2d0   :  { %4494 = vst.msk [vmem:[%s10354_s3 + $0x2d8] sm:$0xff] %vm4402_vm1, %v3569_v62  ;;  %v647_v62 = vld [vmem:[%s10353_s0 + $0xfc0] sm:$0xff]  ;;  %v772_v2 = vld [vmem:[%s10353_s0 + $0x13a8] sm:$0xff] }
 0x2d1   :  { %4493 = vst.msk [vmem:[%s10354_s3 + $0x2d0] sm:$0xff] %vm4402_vm1, %v3564_v46  ;;  %v8994_v56 = vpop.f32.mrb[220].mxu0  ;;  %v5354_v49 = vpop.f32.mrb[220].mxu1 }
 0x2d2   :  { %v3579_v35 = vadd.f32 %v5354_v49, %v8552_v13  ;;  %v2310_v8 = vpop.f32.mrb[221].mxu0  ;;  %2572 = vmatmul.mubr.f32.gmra.mrb[70].mxu0 %v632_v1  ;;  %v3573_v52 = vpop.f32.mrb[221].mxu1  ;;  %5512 = vmatmul.mubr.msk.f32.gmra.mrb[70].mxu1 %vm917_vm0, %v742_v14  ;;  %v751_v13 = vld [vmem:[%s10353_s0 + $0x1300] sm:$0xff]  ;;  %v650_v49 = vld [vmem:[%s10353_s0 + $0xfd8] sm:$0xff] }
 0x2d3   :  { %v3574_v17 = vadd.f32 %v3573_v52, %v8526_v12  ;;  %2576 = vmatprep.mubr.f32.mxu0 %v636_v47  ;;  %5514 = vmatprep.mubr.msk.f32.mxu1 %vm917_vm0, %v745_v33  ;;  %v639_v12 = vld [vmem:[%s10353_s0 + $0xf80] sm:$0xff] }
 0x2d4   :  { %4496 = vst.msk [vmem:[%s10354_s3 + $0x2e8] sm:$0xff] %vm4402_vm1, %v3579_v35  ;;  %v778_v35 = vld [vmem:[%s10353_s0 + $0x13d8] sm:$0xff] }
 0x2d5   :  { %4495 = vst.msk [vmem:[%s10354_s3 + $0x2e0] sm:$0xff] %vm4402_vm1, %v3574_v17  ;;  %v9020_v24 = vpop.f32.mrb[222].mxu0  ;;  %v5357_v54 = vpop.f32.mrb[222].mxu1 }
 0x2d6   :  { %v3589_v27 = vadd.f32 %v5357_v54, %v8604_v29  ;;  %v2315_v59 = vpop.f32.mrb[223].mxu0  ;;  %2577 = vmatmul.mubr.f32.gmra.mrb[72].mxu0 %v635_v44  ;;  %v3583_v61 = vpop.f32.mrb[223].mxu1  ;;  %5515 = vmatmul.mubr.msk.f32.gmra.mrb[72].mxu1 %vm917_vm0, %v748_v20  ;;  %v757_v29 = vld [vmem:[%s10353_s0 + $0x1330] sm:$0xff]  ;;  %v784_v54 = vld [vmem:[%s10353_s0 + $0x1408] sm:$0xff] }
 0x2d7   :  { %v3584_v34 = vadd.f32 %v3583_v61, %v8578_v63  ;;  %2581 = vmatprep.mubr.f32.mxu0 %v639_v12  ;;  %5517 = vmatprep.mubr.msk.f32.mxu1 %vm917_vm0, %v751_v13  ;;  %v642_v63 = vld [vmem:[%s10353_s0 + $0xf98] sm:$0xff]  ;;  %v653_v13 = vld [vmem:[%s10353_s0 + $0xff0] sm:$0xff] }
 0x2d8   :  { %4498 = vst.msk [vmem:[%s10354_s3 + $0x2f8] sm:$0xff] %vm4402_vm1, %v3589_v27 }
 0x2d9   :  { %4497 = vst.msk [vmem:[%s10354_s3 + $0x2f0] sm:$0xff] %vm4402_vm1, %v3584_v34  ;;  %v9046_v55 = vpop.f32.mrb[224].mxu0  ;;  %v5360_v22 = vpop.f32.mrb[224].mxu1 }
 0x2da   :  { %v3599_v30 = vadd.f32 %v5360_v22, %v8656_v48  ;;  %v2320_v26 = vpop.f32.mrb[225].mxu0  ;;  %2582 = vmatmul.mubr.f32.gmra.mrb[74].mxu0 %v638_v18  ;;  %v3593_v36 = vpop.f32.mrb[225].mxu1  ;;  %5518 = vmatmul.mubr.msk.f32.gmra.mrb[74].mxu1 %vm917_vm0, %v754_v28  ;;  %v763_v48 = vld [vmem:[%s10353_s0 + $0x1360] sm:$0xff] }
 0x2db   :  { %v3594_v16 = vadd.f32 %v3593_v36, %v8630_v7  ;;  %2586 = vmatprep.mubr.f32.mxu0 %v642_v63  ;;  %5520 = vmatprep.mubr.msk.f32.mxu1 %vm917_vm0, %v757_v29  ;;  %v645_v7 = vld [vmem:[%s10353_s0 + $0xfb0] sm:$0xff]  ;;  %v656_v63 = vld [vmem:[%s10353_s0 + $0x1008] sm:$0xff]  ;;  %v790_v29 = vld [vmem:[%s10353_s0 + $0x1438] sm:$0xff] }
 0x2dc   :  { %4500 = vst.msk [vmem:[%s10354_s3 + $0x308] sm:$0xff] %vm4402_vm1, %v3599_v30 }
 0x2dd   :  { %4499 = vst.msk [vmem:[%s10354_s3 + $0x300] sm:$0xff] %vm4402_vm1, %v3594_v16  ;;  %v9072_v5 = vpop.f32.mrb[226].mxu0  ;;  %v5363_v50 = vpop.f32.mrb[226].mxu1 }
 0x2de   :  { %v3609_v19 = vadd.f32 %v5363_v50, %v8708_v31  ;;  %v2325_v45 = vpop.f32.mrb[227].mxu0  ;;  %2587 = vmatmul.mubr.f32.gmra.mrb[76].mxu0 %v641_v32  ;;  %v3603_v41 = vpop.f32.mrb[227].mxu1  ;;  %5521 = vmatmul.mubr.msk.f32.gmra.mrb[76].mxu1 %vm917_vm0, %v760_v3  ;;  %v769_v31 = vld [vmem:[%s10353_s0 + $0x1390] sm:$0xff]  ;;  %v659_v3 = vld [vmem:[%s10353_s0 + $0x1020] sm:$0xff] }
 0x2df   :  { %v3604_v40 = vadd.f32 %v3603_v41, %v8682_v25  ;;  %2591 = vmatprep.mubr.f32.mxu0 %v645_v7  ;;  %5523 = vmatprep.mubr.msk.f32.mxu1 %vm917_vm0, %v763_v48  ;;  %v648_v25 = vld [vmem:[%s10353_s0 + $0xfc8] sm:$0xff] }
 0x2e0   :  { %4502 = vst.msk [vmem:[%s10354_s3 + $0x318] sm:$0xff] %vm4402_vm1, %v3609_v19  ;;  %v796_v7 = vld [vmem:[%s10353_s0 + $0x1468] sm:$0xff] }
 0x2e1   :  { %4501 = vst.msk [vmem:[%s10354_s3 + $0x310] sm:$0xff] %vm4402_vm1, %v3604_v40  ;;  %v9098_v6 = vpop.f32.mrb[228].mxu0  ;;  %v5366_v51 = vpop.f32.mrb[228].mxu1 }
 0x2e2   :  { %v3619_v10 = vadd.f32 %v5366_v51, %v8760_v15  ;;  %v2330_v38 = vpop.f32.mrb[229].mxu0  ;;  %2592 = vmatmul.mubr.f32.gmra.mrb[78].mxu0 %v644_v43  ;;  %v3613_v39 = vpop.f32.mrb[229].mxu1  ;;  %5524 = vmatmul.mubr.msk.f32.gmra.mrb[78].mxu1 %vm917_vm0, %v766_v60  ;;  %v775_v15 = vld [vmem:[%s10353_s0 + $0x13c0] sm:$0xff]  ;;  %v662_v43 = vld [vmem:[%s10353_s0 + $0x1038] sm:$0xff] }
 0x2e3   :  { %v3614_v58 = vadd.f32 %v3613_v39, %v8734_v21  ;;  %2596 = vmatprep.mubr.f32.mxu0 %v648_v25  ;;  %5526 = vmatprep.mubr.msk.f32.mxu1 %vm917_vm0, %v769_v31  ;;  %v651_v21 = vld [vmem:[%s10353_s0 + $0xfe0] sm:$0xff]  ;;  %v802_v60 = vld [vmem:[%s10353_s0 + $0x1498] sm:$0xff] }
 0x2e4   :  { %4504 = vst.msk [vmem:[%s10354_s3 + $0x328] sm:$0xff] %vm4402_vm1, %v3619_v10 }
 0x2e5   :  { %4503 = vst.msk [vmem:[%s10354_s3 + $0x320] sm:$0xff] %vm4402_vm1, %v3614_v58  ;;  %v9124_v4 = vpop.f32.mrb[230].mxu0  ;;  %v5369_v46 = vpop.f32.mrb[230].mxu1  ;;  %v665_v58 = vld [vmem:[%s10353_s0 + $0x1050] sm:$0xff] }
 0x2e6   :  { %v3629_v1 = vadd.f32 %v5369_v46, %v8812_v23  ;;  %v2335_v14 = vpop.f32.mrb[231].mxu0  ;;  %2597 = vmatmul.mubr.f32.gmra.mrb[80].mxu0 %v647_v62  ;;  %v3623_v47 = vpop.f32.mrb[231].mxu1  ;;  %5527 = vmatmul.mubr.msk.f32.gmra.mrb[80].mxu1 %vm917_vm0, %v772_v2  ;;  %v781_v23 = vld [vmem:[%s10353_s0 + $0x13f0] sm:$0xff]  ;;  %v808_v62 = vld [vmem:[%s10353_s0 + $0x14c8] sm:$0xff] }
 0x2e7   :  { %v3624_v33 = vadd.f32 %v3623_v47, %v8786_v53  ;;  %2601 = vmatprep.mubr.f32.mxu0 %v651_v21  ;;  %5529 = vmatprep.mubr.msk.f32.mxu1 %vm917_vm0, %v775_v15  ;;  %v654_v53 = vld [vmem:[%s10353_s0 + $0xff8] sm:$0xff]  ;;  %v668_v47 = vld [vmem:[%s10353_s0 + $0x1068] sm:$0xff] }
 0x2e8   :  { %4506 = vst.msk [vmem:[%s10354_s3 + $0x338] sm:$0xff] %vm4402_vm1, %v3629_v1 }
 0x2e9   :  { %4505 = vst.msk [vmem:[%s10354_s3 + $0x330] sm:$0xff] %vm4402_vm1, %v3624_v33  ;;  %v9150_v8 = vpop.f32.mrb[232].mxu0  ;;  %v5372_v52 = vpop.f32.mrb[232].mxu1  ;;  %v814_v33 = vld [vmem:[%s10353_s0 + $0x14f8] sm:$0xff] }
 0x2ea   :  { %v3639_v17 = vadd.f32 %v5372_v52, %v8864_v42  ;;  %v2340_v44 = vpop.f32.mrb[233].mxu0  ;;  %2602 = vmatmul.mubr.f32.gmra.mrb[82].mxu0 %v650_v49  ;;  %v3633_v20 = vpop.f32.mrb[233].mxu1  ;;  %5530 = vmatmul.mubr.msk.f32.gmra.mrb[82].mxu1 %vm917_vm0, %v778_v35  ;;  %v787_v42 = vld [vmem:[%s10353_s0 + $0x1420] sm:$0xff] }
 0x2eb   :  { %v3634_v12 = vadd.f32 %v3633_v20, %v8838_v37  ;;  %2606 = vmatprep.mubr.f32.mxu0 %v654_v53  ;;  %5532 = vmatprep.mubr.msk.f32.mxu1 %vm917_vm0, %v781_v23  ;;  %v657_v37 = vld [vmem:[%s10353_s0 + $0x1010] sm:$0xff]  ;;  %v671_v44 = vld [vmem:[%s10353_s0 + $0x1080] sm:$0xff]  ;;  %v820_v20 = vld [vmem:[%s10353_s0 + $0x1528] sm:$0xff] }
 0x2ec   :  { %4508 = vst.msk [vmem:[%s10354_s3 + $0x348] sm:$0xff] %vm4402_vm1, %v3639_v17 }
 0x2ed   :  { %4507 = vst.msk [vmem:[%s10354_s3 + $0x340] sm:$0xff] %vm4402_vm1, %v3634_v12  ;;  %v9176_v27 = vpop.f32.mrb[234].mxu0  ;;  %v5375_v59 = vpop.f32.mrb[234].mxu1  ;;  %v823_v12 = vld [vmem:[%s10353_s0 + $0x1540] sm:$0xff] }
 0x2ee   :  { %v3649_v61 = vadd.f32 %v5375_v59, %v8916_v0  ;;  %v2345_v34 = vpop.f32.mrb[235].mxu0  ;;  %2607 = vmatmul.mubr.f32.gmra.mrb[84].mxu0 %v653_v13  ;;  %v3643_v18 = vpop.f32.mrb[235].mxu1  ;;  %5533 = vmatmul.mubr.msk.f32.gmra.mrb[84].mxu1 %vm917_vm0, %v784_v54  ;;  %v793_v0 = vld [vmem:[%s10353_s0 + $0x1450] sm:$0xff] }
 0x2ef   :  { %v3644_v28 = vadd.f32 %v3643_v18, %v8890_v57  ;;  %2611 = vmatprep.mubr.f32.mxu0 %v657_v37  ;;  %5535 = vmatprep.mubr.msk.f32.mxu1 %vm917_vm0, %v787_v42  ;;  %v660_v57 = vld [vmem:[%s10353_s0 + $0x1028] sm:$0xff]  ;;  %v826_v34 = vld [vmem:[%s10353_s0 + $0x1558] sm:$0xff] }
 0x2f0   :  { %4510 = vst.msk [vmem:[%s10354_s3 + $0x358] sm:$0xff] %vm4402_vm1, %v3649_v61  ;;  %v674_v61 = vld [vmem:[%s10353_s0 + $0x1098] sm:$0xff] }
 0x2f1   :  { %4509 = vst.msk [vmem:[%s10354_s3 + $0x350] sm:$0xff] %vm4402_vm1, %v3644_v28  ;;  %v9202_v22 = vpop.f32.mrb[236].mxu0  ;;  %v5378_v30 = vpop.f32.mrb[236].mxu1  ;;  %v678_v18 = vld [vmem:[%s10353_s0 + $0x10b8] sm:$0xff]  ;;  %v829_v28 = vld [vmem:[%s10353_s0 + $0x1570] sm:$0xff] }
 0x2f2   :  { %v3659_v26 = vadd.f32 %v5378_v30, %v8968_v9  ;;  %v2350_v36 = vpop.f32.mrb[237].mxu0  ;;  %2612 = vmatmul.mubr.f32.gmra.mrb[86].mxu0 %v656_v63  ;;  %v3653_v16 = vpop.f32.mrb[237].mxu1  ;;  %5536 = vmatmul.mubr.msk.f32.gmra.mrb[86].mxu1 %vm917_vm0, %v790_v29  ;;  %v799_v9 = vld [vmem:[%s10353_s0 + $0x1480] sm:$0xff] }
 0x2f3   :  { %v3654_v32 = vadd.f32 %v3653_v16, %v8942_v11  ;;  %2616 = vmatprep.mubr.f32.mxu0 %v660_v57  ;;  %5538 = vmatprep.mubr.msk.f32.mxu1 %vm917_vm0, %v793_v0  ;;  %v663_v11 = vld [vmem:[%s10353_s0 + $0x1040] sm:$0xff]  ;;  %v832_v36 = vld [vmem:[%s10353_s0 + $0x1588] sm:$0xff]  ;;  %v681_v16 = vld [vmem:[%s10353_s0 + $0x10d0] sm:$0xff] }
 0x2f4   :  { %4512 = vst.msk [vmem:[%s10354_s3 + $0x368] sm:$0xff] %vm4402_vm1, %v3659_v26  ;;  %v677_v26 = vld [vmem:[%s10353_s0 + $0x10b0] sm:$0xff] }
 0x2f5   :  { %4511 = vst.msk [vmem:[%s10354_s3 + $0x360] sm:$0xff] %vm4402_vm1, %v3654_v32  ;;  %v9228_v48 = vpop.f32.mrb[238].mxu0  ;;  %v5381_v50 = vpop.f32.mrb[238].mxu1  ;;  %v835_v32 = vld [vmem:[%s10353_s0 + $0x15a0] sm:$0xff] }
 0x2f6   :  { %v3669_v19 = vadd.f32 %v5381_v50, %v9020_v24  ;;  %v2355_v45 = vpop.f32.mrb[239].mxu0  ;;  %2617 = vmatmul.mubr.f32.gmra.mrb[88].mxu0 %v659_v3  ;;  %v3663_v41 = vpop.f32.mrb[239].mxu1  ;;  %5539 = vmatmul.mubr.msk.f32.gmra.mrb[88].mxu1 %vm917_vm0, %v796_v7  ;;  %v805_v24 = vld [vmem:[%s10353_s0 + $0x14b0] sm:$0xff] }
 0x2f7   :  { %v3664_v40 = vadd.f32 %v3663_v41, %v8994_v56  ;;  %2621 = vmatprep.mubr.f32.mxu0 %v663_v11  ;;  %5541 = vmatprep.mubr.msk.f32.mxu1 %vm917_vm0, %v799_v9  ;;  %v666_v56 = vld [vmem:[%s10353_s0 + $0x1058] sm:$0xff]  ;;  %v684_v41 = vld [vmem:[%s10353_s0 + $0x10e8] sm:$0xff] }
 0x2f8   :  { %4514 = vst.msk [vmem:[%s10354_s3 + $0x378] sm:$0xff] %vm4402_vm1, %v3669_v19  ;;  %v680_v19 = vld [vmem:[%s10353_s0 + $0x10c8] sm:$0xff]  ;;  %v838_v45 = vld [vmem:[%s10353_s0 + $0x15b8] sm:$0xff] }
 0x2f9   :  { %4513 = vst.msk [vmem:[%s10354_s3 + $0x370] sm:$0xff] %vm4402_vm1, %v3664_v40  ;;  %v9254_v25 = vpop.f32.mrb[240].mxu0  ;;  %v5384_v31 = vpop.f32.mrb[240].mxu1  ;;  %v841_v40 = vld [vmem:[%s10353_s0 + $0x15d0] sm:$0xff] }
 0x2fa   :  { %v3679_v51 = vadd.f32 %v5384_v31, %v9072_v5  ;;  %v2360_v10 = vpop.f32.mrb[241].mxu0  ;;  %2622 = vmatmul.mubr.f32.gmra.mrb[90].mxu0 %v662_v43  ;;  %v3673_v38 = vpop.f32.mrb[241].mxu1  ;;  %5542 = vmatmul.mubr.msk.f32.gmra.mrb[90].mxu1 %vm917_vm0, %v802_v60  ;;  %v811_v5 = vld [vmem:[%s10353_s0 + $0x14e0] sm:$0xff] }
 0x2fb   :  { %v3674_v39 = vadd.f32 %v3673_v38, %v9046_v55  ;;  %2626 = vmatprep.mubr.f32.mxu0 %v666_v56  ;;  %5544 = vmatprep.mubr.msk.f32.mxu1 %vm917_vm0, %v805_v24  ;;  %v669_v55 = vld [vmem:[%s10353_s0 + $0x1070] sm:$0xff]  ;;  %v844_v10 = vld [vmem:[%s10353_s0 + $0x15e8] sm:$0xff]  ;;  %v687_v38 = vld [vmem:[%s10353_s0 + $0x1100] sm:$0xff] }
 0x2fc   :  { %4516 = vst.msk [vmem:[%s10354_s3 + $0x388] sm:$0xff] %vm4402_vm1, %v3679_v51  ;;  %v683_v51 = vld [vmem:[%s10353_s0 + $0x10e0] sm:$0xff] }
 0x2fd   :  { %4515 = vst.msk [vmem:[%s10354_s3 + $0x380] sm:$0xff] %vm4402_vm1, %v3674_v39  ;;  %v2363_v2 = vpop.f32.mrb[242].mxu0  ;;  %v5387_v21 = vpop.f32.mrb[242].mxu1  ;;  %v847_v39 = vld [vmem:[%s10353_s0 + $0x1600] sm:$0xff] }
 0x2fe   :  { %v3689_v15 = vadd.f32 %v5387_v21, %v9124_v4  ;;  %v2365_v46 = vpop.f32.mrb[243].mxu0  ;;  %2627 = vmatmul.mubr.f32.gmra.mrb[92].mxu0 %v665_v58  ;;  %v3683_v1 = vpop.f32.mrb[243].mxu1  ;;  %5545 = vmatmul.mubr.msk.f32.gmra.mrb[92].mxu1 %vm917_vm0, %v808_v62  ;;  %v817_v4 = vld [vmem:[%s10353_s0 + $0x1510] sm:$0xff] }
 0x2ff   :  { %v3684_v14 = vadd.f32 %v3683_v1, %v9098_v6  ;;  %2631 = vmatprep.mubr.f32.mxu0 %v669_v55  ;;  %5547 = vmatprep.mubr.msk.f32.mxu1 %vm917_vm0, %v811_v5  ;;  %v672_v6 = vld [vmem:[%s10353_s0 + $0x1088] sm:$0xff]  ;;  %v850_v46 = vld [vmem:[%s10353_s0 + $0x1618] sm:$0xff] }
 0x300   :  { %4518 = vst.msk [vmem:[%s10354_s3 + $0x398] sm:$0xff] %vm4402_vm1, %v3689_v15  ;;  %v686_v15 = vld [vmem:[%s10353_s0 + $0x10f8] sm:$0xff] }
 0x301   :  { %4517 = vst.msk [vmem:[%s10354_s3 + $0x390] sm:$0xff] %vm4402_vm1, %v3684_v14  ;;  %v2368_v49 = vpop.f32.mrb[244].mxu0  ;;  %v5390_v35 = vpop.f32.mrb[244].mxu1  ;;  %v690_v1 = vld [vmem:[%s10353_s0 + $0x1118] sm:$0xff]  ;;  %v853_v14 = vld [vmem:[%s10353_s0 + $0x1630] sm:$0xff] }
 0x302   :  { %v3699_v53 = vadd.f32 %v5390_v35, %v9176_v27  ;;  %v2370_v23 = vpop.f32.mrb[245].mxu0  ;;  %2632 = vmatmul.mubr.f32.gmra.mrb[94].mxu0 %v668_v47  ;;  %v3693_v52 = vpop.f32.mrb[245].mxu1  ;;  %5548 = vmatmul.mubr.msk.f32.gmra.mrb[94].mxu1 %vm917_vm0, %v814_v33  ;;  %v689_v35 = vld [vmem:[%s10353_s0 + $0x1110] sm:$0xff] }
 0x303   :  { %v3694_v17 = vadd.f32 %v3693_v52, %v9150_v8  ;;  %2636 = vmatprep.mubr.f32.mxu0 %v672_v6  ;;  %5550 = vmatprep.mubr.msk.f32.mxu1 %vm917_vm0, %v817_v4  ;;  %v675_v8 = vld [vmem:[%s10353_s0 + $0x10a0] sm:$0xff]  ;;  %v693_v23 = vld [vmem:[%s10353_s0 + $0x1130] sm:$0xff] }
 0x304   :  { %4520 = vst.msk [vmem:[%s10354_s3 + $0x3a8] sm:$0xff] %vm4402_vm1, %v3699_v53  ;;  %v856_v53 = vld [vmem:[%s10353_s0 + $0x1648] sm:$0xff]  ;;  %v859_v52 = vld [vmem:[%s10353_s0 + $0x1660] sm:$0xff] }
 0x305   :  { %4519 = vst.msk [vmem:[%s10354_s3 + $0x3a0] sm:$0xff] %vm4402_vm1, %v3694_v17  ;;  %v2373_v13 = vpop.f32.mrb[246].mxu0  ;;  %v5393_v54 = vpop.f32.mrb[246].mxu1 }
 0x306   :  { %v3709_v37 = vadd.f32 %v5393_v54, %v9228_v48  ;;  %v2375_v42 = vpop.f32.mrb[247].mxu0  ;;  %2637 = vmatmul.mubr.f32.gmra.mrb[96].mxu0 %v671_v44  ;;  %v3703_v27 = vpop.f32.mrb[247].mxu1  ;;  %5551 = vmatmul.mubr.msk.f32.gmra.mrb[96].mxu1 %vm917_vm0, %v820_v20  ;;  %v862_v54 = vld [vmem:[%s10353_s0 + $0x1678] sm:$0xff] }
 0x307   :  { %v3704_v59 = vadd.f32 %v3703_v27, %v9202_v22  ;;  %2641 = vmatprep.mubr.f32.mxu0 %v675_v8  ;;  %5553 = vmatprep.mubr.msk.f32.mxu1 %vm917_vm0, %v823_v12  ;;  %v865_v42 = vld [vmem:[%s10353_s0 + $0x1690] sm:$0xff] }
 0x308   :  { %4522 = vst.msk [vmem:[%s10354_s3 + $0x3b8] sm:$0xff] %vm4402_vm1, %v3709_v37  ;;  %v696_v37 = vld [vmem:[%s10353_s0 + $0x1148] sm:$0xff] }
 0x309   :  { %4521 = vst.msk [vmem:[%s10354_s3 + $0x3b0] sm:$0xff] %vm4402_vm1, %v3704_v59  ;;  %v2378_v63 = vpop.f32.mrb[248].mxu0  ;;  %v5396_v29 = vpop.f32.mrb[248].mxu1 }
 0x30a   :  { %v3719_v57 = vadd.f32 %v5396_v29, %v2363_v2  ;;  %v2380_v0 = vpop.f32.mrb[249].mxu0  ;;  %2642 = vmatmul.mubr.f32.gmra.mrb[98].mxu0 %v674_v61  ;;  %v3713_v22 = vpop.f32.mrb[249].mxu1  ;;  %5554 = vmatmul.mubr.msk.f32.gmra.mrb[98].mxu1 %vm917_vm0, %v826_v34  ;;  %v699_v29 = vld [vmem:[%s10353_s0 + $0x1160] sm:$0xff] }
 0x30b   :  { %v3714_v30 = vadd.f32 %v3713_v22, %v9254_v25  ;;  %2646 = vmatprep.mubr.f32.mxu0 %v678_v18  ;;  %5556 = vmatprep.mubr.msk.f32.mxu1 %vm917_vm0, %v829_v28  ;;  %v695_v28 = vld [vmem:[%s10353_s0 + $0x1140] sm:$0xff] }
 0x30c   :  { %4524 = vst.msk [vmem:[%s10354_s3 + $0x3c8] sm:$0xff] %vm4402_vm1, %v3719_v57  ;;  %v871_v57 = vld [vmem:[%s10353_s0 + $0x16c0] sm:$0xff] }
 0x30d   :  { %4523 = vst.msk [vmem:[%s10354_s3 + $0x3c0] sm:$0xff] %vm4402_vm1, %v3714_v30  ;;  %v2383_v3 = vpop.f32.mrb[250].mxu0  ;;  %v5399_v7 = vpop.f32.mrb[250].mxu1 }
 0x30e   :  { %v3729_v11 = vadd.f32 %v5399_v7, %v2373_v13  ;;  %v2385_v9 = vpop.f32.mrb[251].mxu0  ;;  %2647 = vmatmul.mubr.f32.gmra.mrb[100].mxu0 %v677_v26  ;;  %v3723_v48 = vpop.f32.mrb[251].mxu1  ;;  %5557 = vmatmul.mubr.msk.f32.gmra.mrb[100].mxu1 %vm917_vm0, %v832_v36  ;;  %v692_v13 = vld [vmem:[%s10353_s0 + $0x1128] sm:$0xff]  ;;  %v877_v7 = vld [vmem:[%s10353_s0 + $0x16f0] sm:$0xff] }
 0x30f   :  { %v3724_v50 = vadd.f32 %v3723_v48, %v2368_v49  ;;  %2651 = vmatprep.mubr.f32.mxu0 %v681_v16  ;;  %5559 = vmatprep.mubr.msk.f32.mxu1 %vm917_vm0, %v835_v32  ;;  %v698_v16 = vld [vmem:[%s10353_s0 + $0x1158] sm:$0xff] }
 0x310   :  { %4526 = vst.msk [vmem:[%s10354_s3 + $0x3d8] sm:$0xff] %vm4402_vm1, %v3729_v11  ;;  %v874_v32 = vld [vmem:[%s10353_s0 + $0x16d8] sm:$0xff] }
 0x311   :  { %4525 = vst.msk [vmem:[%s10354_s3 + $0x3d0] sm:$0xff] %vm4402_vm1, %v3724_v50  ;;  %v2388_v43 = vpop.f32.mrb[252].mxu0  ;;  %v5402_v60 = vpop.f32.mrb[252].mxu1 }
 0x312   :  { %v3739_v56 = vadd.f32 %v5402_v60, %v2383_v3  ;;  %v2390_v24 = vpop.f32.mrb[253].mxu0  ;;  %2652 = vmatmul.mubr.f32.gmra.mrb[102].mxu0 %v680_v19  ;;  %v3733_v25 = vpop.f32.mrb[253].mxu1  ;;  %5560 = vmatmul.mubr.msk.f32.gmra.mrb[102].mxu1 %vm917_vm0, %v838_v45  ;;  %v702_v3 = vld [vmem:[%s10353_s0 + $0x1178] sm:$0xff]  ;;  %v701_v45 = vld [vmem:[%s10353_s0 + $0x1170] sm:$0xff] }
 0x313   :  { %v3734_v31 = vadd.f32 %v3733_v25, %v2378_v63  ;;  %2656 = vmatprep.mubr.f32.mxu0 %v684_v41  ;;  %5562 = vmatprep.mubr.msk.f32.mxu1 %vm917_vm0, %v841_v40  ;;  %v868_v63 = vld [vmem:[%s10353_s0 + $0x16a8] sm:$0xff]  ;;  %v705_v40 = vld [vmem:[%s10353_s0 + $0x1190] sm:$0xff] }
 0x314   :  { %4528 = vst.msk [vmem:[%s10354_s3 + $0x3e8] sm:$0xff] %vm4402_vm1, %v3739_v56  ;;  %v880_v41 = vld [vmem:[%s10353_s0 + $0x1708] sm:$0xff] }
 0x315   :  { %4527 = vst.msk [vmem:[%s10354_s3 + $0x3e0] sm:$0xff] %vm4402_vm1, %v3734_v31  ;;  %v2393_v58 = vpop.f32.mrb[254].mxu0  ;;  %v5405_v62 = vpop.f32.mrb[254].mxu1 }
 0x316   :  { %v3749_v55 = vadd.f32 %v5405_v62, %v2393_v58  ;;  %v2395_v5 = vpop.f32.mrb[255].mxu0  ;;  %2657 = vmatmul.mubr.f32.gmra.mrb[104].mxu0 %v683_v51  ;;  %v3743_v2 = vpop.f32.mrb[255].mxu1  ;;  %5563 = vmatmul.mubr.msk.f32.gmra.mrb[104].mxu1 %vm917_vm0, %v844_v10  ;;  %v704_v51 = vld [vmem:[%s10353_s0 + $0x1188] sm:$0xff]  ;;  %v886_v10 = vld [vmem:[%s10353_s0 + $0x1738] sm:$0xff] }
 0x317   :  { %v3744_v21 = vadd.f32 %v3743_v2, %v2388_v43  ;;  %2661 = vmatprep.mubr.f32.mxu0 %v687_v38  ;;  %5565 = vmatprep.mubr.msk.f32.mxu1 %vm917_vm0, %v847_v39  ;;  %v883_v43 = vld [vmem:[%s10353_s0 + $0x1720] sm:$0xff]  ;;  %v708_v38 = vld [vmem:[%s10353_s0 + $0x11a8] sm:$0xff]  ;;  %v889_v39 = vld [vmem:[%s10353_s0 + $0x1750] sm:$0xff] }
 0x318   :  { %4530 = vst.msk [vmem:[%s10354_s3 + $0x3f8] sm:$0xff] %vm4402_vm1, %v3749_v55 }
 0x319   :  { %4529 = vst.msk [vmem:[%s10354_s3 + $0x3f0] sm:$0xff] %vm4402_vm1, %v3744_v21  ;;  %v2398_v47 = vpop.f32.mrb[0].mxu0  ;;  %v5408_v33 = vpop.f32.mrb[0].mxu1  ;;  %v707_v21 = vld [vmem:[%s10353_s0 + $0x11a0] sm:$0xff] }
 0x31a   :  { %v2400_v6 = vpop.f32.mrb[1].mxu0  ;;  %2662 = vmatmul.mubr.f32.gmra.mrb[106].mxu0 %v686_v15  ;;  %v3753_v4 = vpop.f32.mrb[1].mxu1  ;;  %5566 = vmatmul.mubr.msk.f32.gmra.mrb[106].mxu1 %vm917_vm0, %v850_v46  ;;  %v892_v15 = vld [vmem:[%s10353_s0 + $0x1768] sm:$0xff]  ;;  %v711_v46 = vld [vmem:[%s10353_s0 + $0x11c0] sm:$0xff] }
 0x31b   :  { %v3754_v49 = vadd.f32 %v3753_v4, %v2398_v47  ;;  %2666 = vmatprep.mubr.f32.mxu0 %v690_v1  ;;  %5568 = vmatprep.mubr.msk.f32.mxu1 %vm917_vm0, %v853_v14  ;;  %v895_v1 = vld [vmem:[%s10353_s0 + $0x1780] sm:$0xff] }
 0x31d   :  { %4531 = vst.msk [vmem:[%s10354_s3 + $0x400] sm:$0xff] %vm4402_vm1, %v3754_v49  ;;  %v2403_v17 = vpop.f32.mrb[2].mxu0  ;;  %v5411_v44 = vpop.f32.mrb[2].mxu1  ;;  %v710_v49 = vld [vmem:[%s10353_s0 + $0x11b8] sm:$0xff] }
 0x31e   :  { %v3759_v20 = vadd.f32 %v5408_v33, %v2403_v17  ;;  %v2405_v8 = vpop.f32.mrb[3].mxu0  ;;  %2667 = vmatmul.mubr.f32.gmra.mrb[108].mxu0 %v689_v35  ;;  %5569 = vmatmul.mubr.msk.f32.gmra.mrb[108].mxu1 %vm917_vm0, %v856_v53  ;;  %v3763_v12 = vpop.f32.mrb[3].mxu1  ;;  %v898_v35 = vld [vmem:[%s10353_s0 + $0x1798] sm:$0xff] }
 0x31f   :  { %2671 = vmatprep.mubr.f32.mxu0 %v693_v23  ;;  %5571 = vmatprep.mubr.msk.f32.mxu1 %vm917_vm0, %v859_v52  ;;  %v714_v53 = vld [vmem:[%s10353_s0 + $0x11d8] sm:$0xff]  ;;  %v901_v23 = vld [vmem:[%s10353_s0 + $0x17b0] sm:$0xff] }
 0x320   :  { %4532 = vst.msk [vmem:[%s10354_s3 + $0x408] sm:$0xff] %vm4402_vm1, %v3759_v20 }
 0x321   :  { %v2408_v27 = vpop.f32.mrb[4].mxu0  ;;  %v5414_v59 = vpop.f32.mrb[4].mxu1 }
 0x322   :  { %v3764_v61 = vadd.f32 %v3763_v12, %v2408_v27  ;;  %v2410_v34 = vpop.f32.mrb[5].mxu0  ;;  %2672 = vmatmul.mubr.f32.gmra.mrb[110].mxu0 %v692_v13  ;;  %5572 = vmatmul.mubr.msk.f32.gmra.mrb[110].mxu1 %vm917_vm0, %v862_v54  ;;  %v3773_v18 = vpop.f32.mrb[5].mxu1  ;;  %v713_v12 = vld [vmem:[%s10353_s0 + $0x11d0] sm:$0xff]  ;;  %v904_v13 = vld [vmem:[%s10353_s0 + $0x17c8] sm:$0xff] }
 0x323   :  { %2676 = vmatprep.mubr.f32.mxu0 %v696_v37  ;;  %5574 = vmatprep.mubr.msk.f32.mxu1 %vm917_vm0, %v865_v42  ;;  %v717_v54 = vld [vmem:[%s10353_s0 + $0x11f0] sm:$0xff]  ;;  %v907_v37 = vld [vmem:[%s10353_s0 + $0x17e0] sm:$0xff] }
 0x324   :  { %4533 = vst.msk [vmem:[%s10354_s3 + $0x410] sm:$0xff] %vm4402_vm1, %v3764_v61 }
 0x325   :  { %v2413_v0 = vpop.f32.mrb[6].mxu0  ;;  %v5417_v22 = vpop.f32.mrb[6].mxu1 }
 0x326   :  { %v3769_v30 = vadd.f32 %v5411_v44, %v2413_v0  ;;  %v2415_v26 = vpop.f32.mrb[7].mxu0  ;;  %2677 = vmatmul.mubr.f32.gmra.mrb[112].mxu0 %v695_v28  ;;  %5575 = vmatmul.mubr.msk.f32.gmra.mrb[112].mxu1 %vm917_vm0, %v868_v63  ;;  %v3783_v36 = vpop.f32.mrb[7].mxu1  ;;  %v910_v28 = vld [vmem:[%s10353_s0 + $0x17f8] sm:$0xff]  ;;  %v720_v63 = vld [vmem:[%s10353_s0 + $0x1208] sm:$0xff] }
 0x327   :  { %2681 = vmatprep.mubr.f32.mxu0 %v699_v29  ;;  %5577 = vmatprep.mubr.msk.f32.mxu1 %vm917_vm0, %v871_v57  ;;  %v913_v29 = vld [vmem:[%s10353_s0 + $0x1810] sm:$0xff] }
 0x328   :  { %4534 = vst.msk [vmem:[%s10354_s3 + $0x418] sm:$0xff] %vm4402_vm1, %v3769_v30 }
 0x329   :  { %v2418_v11 = vpop.f32.mrb[8].mxu0  ;;  %v9513_v9 = vpop.f32.mrb[8].mxu1 }
 0x32a   :  { %v3774_v48 = vadd.f32 %v3773_v18, %v2418_v11  ;;  %v2420_v50 = vpop.f32.mrb[9].mxu0  ;;  %2682 = vmatmul.mubr.f32.gmra.mrb[114].mxu0 %v698_v16  ;;  %5578 = vmatmul.mubr.msk.f32.gmra.mrb[114].mxu1 %vm917_vm0, %v874_v32  ;;  %v3793_v19 = vpop.f32.mrb[9].mxu1  ;;  %v716_v18 = vld [vmem:[%s10353_s0 + $0x11e8] sm:$0xff]  ;;  %v723_v32 = vld [vmem:[%s10353_s0 + $0x1220] sm:$0xff] }
 0x32b   :  { %2686 = vmatprep.mubr.f32.mxu0 %v702_v3  ;;  %5580 = vmatprep.mubr.msk.f32.mxu1 %vm917_vm0, %v877_v7  ;;  %v916_v16 = vld [vmem:[%s10353_s0 + $0x1828] sm:$0xff]  ;;  %v722_v50 = vld [vmem:[%s10353_s0 + $0x1218] sm:$0xff] }
 0x32c   :  { %4535 = vst.msk [vmem:[%s10354_s3 + $0x420] sm:$0xff] %vm4402_vm1, %v3774_v48 }
 0x32d   :  { %v2423_v60 = vpop.f32.mrb[10].mxu0  ;;  %v9533_v56 = vpop.f32.mrb[10].mxu1 }
 0x32e   :  { %v3779_v24 = vadd.f32 %v5414_v59, %v2423_v60  ;;  %v2425_v25 = vpop.f32.mrb[11].mxu0  ;;  %2687 = vmatmul.mubr.f32.gmra.mrb[116].mxu0 %v701_v45  ;;  %5581 = vmatmul.mubr.msk.f32.gmra.mrb[116].mxu1 %vm917_vm0, %v880_v41  ;;  %v9536_v31 = vpop.f32.mrb[11].mxu1 }
 0x32f   :  { %2691 = vmatprep.mubr.f32.mxu0 %v705_v40  ;;  %5583 = vmatprep.mubr.msk.f32.mxu1 %vm917_vm0, %v883_v43 }
 0x330   :  { %4536 = vst.msk [vmem:[%s10354_s3 + $0x428] sm:$0xff] %vm4402_vm1, %v3779_v24 }
 0x331   :  { %v2428_v58 = vpop.f32.mrb[12].mxu0  ;;  %v9555_v62 = vpop.f32.mrb[12].mxu1 }
 0x332   :  { %v3784_v55 = vadd.f32 %v3783_v36, %v2428_v58  ;;  %v2430_v5 = vpop.f32.mrb[13].mxu0  ;;  %2692 = vmatmul.mubr.f32.gmra.mrb[118].mxu0 %v704_v51  ;;  %5584 = vmatmul.mubr.msk.f32.gmra.mrb[118].mxu1 %vm917_vm0, %v886_v10  ;;  %v9558_v2 = vpop.f32.mrb[13].mxu1  ;;  %v719_v36 = vld [vmem:[%s10353_s0 + $0x1200] sm:$0xff] }
 0x333   :  { %2696 = vmatprep.mubr.f32.mxu0 %v708_v38  ;;  %5586 = vmatprep.mubr.msk.f32.mxu1 %vm917_vm0, %v889_v39 }
 0x334   :  { %4537 = vst.msk [vmem:[%s10354_s3 + $0x430] sm:$0xff] %vm4402_vm1, %v3784_v55 }
 0x335   :  { %v2433_v14 = vpop.f32.mrb[14].mxu0  ;;  %v9577_v47 = vpop.f32.mrb[14].mxu1 }
 0x336   :  { %v3789_v33 = vadd.f32 %v5417_v22, %v2433_v14  ;;  %v2435_v6 = vpop.f32.mrb[15].mxu0  ;;  %2697 = vmatmul.mubr.f32.gmra.mrb[120].mxu0 %v707_v21  ;;  %5587 = vmatmul.mubr.msk.f32.gmra.mrb[120].mxu1 %vm917_vm0, %v892_v15  ;;  %v9580_v4 = vpop.f32.mrb[15].mxu1 }
 0x337   :  { %2701 = vmatprep.mubr.f32.mxu0 %v711_v46  ;;  %5589 = vmatprep.mubr.msk.f32.mxu1 %vm917_vm0, %v895_v1 }
 0x338   :  { %4538 = vst.msk [vmem:[%s10354_s3 + $0x438] sm:$0xff] %vm4402_vm1, %v3789_v33 }
 0x339   :  { %v2438_v52 = vpop.f32.mrb[16].mxu0  ;;  %v9599_v17 = vpop.f32.mrb[16].mxu1 }
 0x33a   :  { %v3794_v44 = vadd.f32 %v3793_v19, %v2438_v52  ;;  %v2440_v20 = vpop.f32.mrb[17].mxu0  ;;  %2702 = vmatmul.mubr.f32.gmra.mrb[122].mxu0 %v710_v49  ;;  %5590 = vmatmul.mubr.msk.f32.gmra.mrb[122].mxu1 %vm917_vm0, %v898_v35  ;;  %v9602_v8 = vpop.f32.mrb[17].mxu1 }
 0x33b   :  { %2706 = vmatprep.mubr.f32.mxu0 %v714_v53  ;;  %5592 = vmatprep.mubr.msk.f32.mxu1 %vm917_vm0, %v901_v23 }
 0x33c   :  { %4539 = vst.msk [vmem:[%s10354_s3 + $0x440] sm:$0xff] %vm4402_vm1, %v3794_v44 }
 0x33d   :  { %v2443_v42 = vpop.f32.mrb[18].mxu0  ;;  %v9621_v27 = vpop.f32.mrb[18].mxu1 }
 0x33e   :  { %v3799_v59 = vadd.f32 %v9513_v9, %v2443_v42  ;;  %v2445_v61 = vpop.f32.mrb[19].mxu0  ;;  %2707 = vmatmul.mubr.f32.gmra.mrb[124].mxu0 %v713_v12  ;;  %5593 = vmatmul.mubr.msk.f32.gmra.mrb[124].mxu1 %vm917_vm0, %v904_v13  ;;  %v9625_v34 = vpop.f32.mrb[19].mxu1 }
 0x33f   :  { %2711 = vmatprep.mubr.f32.mxu0 %v717_v54  ;;  %5595 = vmatprep.mubr.msk.f32.mxu1 %vm917_vm0, %v907_v37 }
 0x340   :  { %4540 = vst.msk [vmem:[%s10354_s3 + $0x448] sm:$0xff] %vm4402_vm1, %v3799_v59 }
 0x341   :  { %v2448_v57 = vpop.f32.mrb[20].mxu0  ;;  %v9644_v0 = vpop.f32.mrb[20].mxu1 }
 0x342   :  { %v3804_v22 = vadd.f32 %v9536_v31, %v2448_v57  ;;  %v2450_v30 = vpop.f32.mrb[21].mxu0  ;;  %2712 = vmatmul.mubr.f32.gmra.mrb[126].mxu0 %v716_v18  ;;  %5596 = vmatmul.mubr.msk.f32.gmra.mrb[126].mxu1 %vm917_vm0, %v910_v28  ;;  %v9648_v26 = vpop.f32.mrb[21].mxu1 }
 0x343   :  { %2716 = vmatprep.mubr.f32.mxu0 %v720_v63  ;;  %5598 = vmatprep.mubr.msk.f32.mxu1 %vm917_vm0, %v913_v29 }
 0x344   :  { %4541 = vst.msk [vmem:[%s10354_s3 + $0x450] sm:$0xff] %vm4402_vm1, %v3804_v22 }
 0x345   :  { %v2453_v3 = vpop.f32.mrb[22].mxu0  ;;  %v9664_v7 = vpop.f32.mrb[22].mxu1 }
 0x346   :  { %v3809_v11 = vadd.f32 %v9533_v56, %v2453_v3  ;;  %v2455_v9 = vpop.f32.mrb[23].mxu0  ;;  %2717 = vmatmul.mubr.f32.gmra.mrb[128].mxu0 %v719_v36  ;;  %5599 = vmatmul.mubr.msk.f32.gmra.mrb[128].mxu1 %vm917_vm0, %v916_v16  ;;  %v9668_v48 = vpop.f32.mrb[23].mxu1 }
 0x347   :  { %2721 = vmatprep.mubr.f32.mxu0 %v723_v32 }
 0x348   :  { %4542 = vst.msk [vmem:[%s10354_s3 + $0x458] sm:$0xff] %vm4402_vm1, %v3809_v11 }
 0x349   :  { %v2458_v19 = vpop.f32.mrb[24].mxu0  ;;  %v9677_v45 = vpop.f32.mrb[24].mxu1 }
 0x34a   :  { %v3814_v41 = vadd.f32 %v9558_v2, %v2458_v19  ;;  %v2460_v40 = vpop.f32.mrb[25].mxu0  ;;  %2722 = vmatmul.mubr.f32.gmra.mrb[130].mxu0 %v722_v50  ;;  %v9680_v43 = vpop.f32.mrb[25].mxu1 }
 0x34c   :  { %4543 = vst.msk [vmem:[%s10354_s3 + $0x460] sm:$0xff] %vm4402_vm1, %v3814_v41 }
 0x34d   :  { %v2463_v60 = vpop.f32.mrb[26].mxu0  ;;  %v9686_v56 = vpop.f32.mrb[26].mxu1 }
 0x34e   :  { %v3819_v24 = vadd.f32 %v9555_v62, %v2463_v60  ;;  %v2465_v25 = vpop.f32.mrb[27].mxu0  ;;  %v9689_v31 = vpop.f32.mrb[27].mxu1 }
 0x350   :  { %4544 = vst.msk [vmem:[%s10354_s3 + $0x468] sm:$0xff] %vm4402_vm1, %v3819_v24 }
 0x351   :  { %v2468_v51 = vpop.f32.mrb[28].mxu0  ;;  %v9695_v10 = vpop.f32.mrb[28].mxu1 }
 0x352   :  { %v3824_v38 = vadd.f32 %v9580_v4, %v2468_v51  ;;  %v2470_v39 = vpop.f32.mrb[29].mxu0  ;;  %v9698_v58 = vpop.f32.mrb[29].mxu1 }
 0x354   :  { %4545 = vst.msk [vmem:[%s10354_s3 + $0x470] sm:$0xff] %vm4402_vm1, %v3824_v38 }
 0x355   :  { %v2473_v62 = vpop.f32.mrb[30].mxu0  ;;  %v9704_v55 = vpop.f32.mrb[30].mxu1 }
 0x356   :  { %v3829_v5 = vadd.f32 %v9577_v47, %v2473_v62  ;;  %v2475_v2 = vpop.f32.mrb[31].mxu0  ;;  %v9707_v21 = vpop.f32.mrb[31].mxu1 }
 0x358   :  { %4546 = vst.msk [vmem:[%s10354_s3 + $0x478] sm:$0xff] %vm4402_vm1, %v3829_v5 }
 0x359   :  { %v2478_v15 = vpop.f32.mrb[32].mxu0  ;;  %v9713_v46 = vpop.f32.mrb[32].mxu1 }
 0x35a   :  { %v3834_v1 = vadd.f32 %v9602_v8, %v2478_v15  ;;  %v2480_v14 = vpop.f32.mrb[33].mxu0  ;;  %v9716_v33 = vpop.f32.mrb[33].mxu1 }
 0x35c   :  { %4547 = vst.msk [vmem:[%s10354_s3 + $0x480] sm:$0xff] %vm4402_vm1, %v3834_v1 }
 0x35d   :  { %v2483_v47 = vpop.f32.mrb[34].mxu0  ;;  %v9722_v6 = vpop.f32.mrb[34].mxu1 }
 0x35e   :  { %v3839_v4 = vadd.f32 %v9599_v17, %v2483_v47  ;;  %v2485_v49 = vpop.f32.mrb[35].mxu0  ;;  %v9725_v35 = vpop.f32.mrb[35].mxu1 }
 0x360   :  { %4548 = vst.msk [vmem:[%s10354_s3 + $0x488] sm:$0xff] %vm4402_vm1, %v3839_v4 }
 0x361   :  { %v2488_v53 = vpop.f32.mrb[36].mxu0  ;;  %v9731_v23 = vpop.f32.mrb[36].mxu1 }
 0x362   :  { %v3844_v52 = vadd.f32 %v9625_v34, %v2488_v53  ;;  %v2490_v44 = vpop.f32.mrb[37].mxu0  ;;  %v9734_v20 = vpop.f32.mrb[37].mxu1 }
 0x364   :  { %4549 = vst.msk [vmem:[%s10354_s3 + $0x490] sm:$0xff] %vm4402_vm1, %v3844_v52 }
 0x365   :  { %v2493_v17 = vpop.f32.mrb[38].mxu0  ;;  %v9740_v8 = vpop.f32.mrb[38].mxu1 }
 0x366   :  { %v3849_v12 = vadd.f32 %v9621_v27, %v2493_v17  ;;  %v2495_v13 = vpop.f32.mrb[39].mxu0  ;;  %v9743_v54 = vpop.f32.mrb[39].mxu1 }
 0x368   :  { %4550 = vst.msk [vmem:[%s10354_s3 + $0x498] sm:$0xff] %vm4402_vm1, %v3849_v12 }
 0x369   :  { %v2498_v37 = vpop.f32.mrb[40].mxu0  ;;  %v9749_v42 = vpop.f32.mrb[40].mxu1 }
 0x36a   :  { %v3854_v59 = vadd.f32 %v9648_v26, %v2498_v37  ;;  %v2500_v61 = vpop.f32.mrb[41].mxu0  ;;  %v9752_v34 = vpop.f32.mrb[41].mxu1 }
 0x36c   :  { %4551 = vst.msk [vmem:[%s10354_s3 + $0x4a0] sm:$0xff] %vm4402_vm1, %v3854_v59 }
 0x36d   :  { %v2503_v27 = vpop.f32.mrb[42].mxu0  ;;  %v9758_v18 = vpop.f32.mrb[42].mxu1 }
 0x36e   :  { %v3859_v28 = vadd.f32 %v9644_v0, %v2503_v27  ;;  %v2505_v63 = vpop.f32.mrb[43].mxu0  ;;  %v9761_v29 = vpop.f32.mrb[43].mxu1 }
 0x370   :  { %4552 = vst.msk [vmem:[%s10354_s3 + $0x4a8] sm:$0xff] %vm4402_vm1, %v3859_v28 }
 0x371   :  { %v2508_v57 = vpop.f32.mrb[44].mxu0  ;;  %v9767_v22 = vpop.f32.mrb[44].mxu1 }
 0x372   :  { %v3864_v30 = vadd.f32 %v9668_v48, %v2508_v57  ;;  %v2510_v26 = vpop.f32.mrb[45].mxu0  ;;  %v9770_v36 = vpop.f32.mrb[45].mxu1 }
 0x374   :  { %4553 = vst.msk [vmem:[%s10354_s3 + $0x4b0] sm:$0xff] %vm4402_vm1, %v3864_v30 }
 0x375   :  { %v2513_v0 = vpop.f32.mrb[46].mxu0  ;;  %v9776_v16 = vpop.f32.mrb[46].mxu1 }
 0x376   :  { %v3869_v32 = vadd.f32 %v9664_v7, %v2513_v0  ;;  %v2515_v3 = vpop.f32.mrb[47].mxu0  ;;  %v9779_v11 = vpop.f32.mrb[47].mxu1 }
 0x378   :  { %4554 = vst.msk [vmem:[%s10354_s3 + $0x4b8] sm:$0xff] %vm4402_vm1, %v3869_v32 }
 0x379   :  { %v2518_v9 = vpop.f32.mrb[48].mxu0  ;;  %v9785_v48 = vpop.f32.mrb[48].mxu1 }
 0x37a   :  { %v3874_v50 = vadd.f32 %v9680_v43, %v2518_v9  ;;  %v2520_v19 = vpop.f32.mrb[49].mxu0  ;;  %v9788_v41 = vpop.f32.mrb[49].mxu1  ;;  %v10443_v9 = vld [vmem:[#allocation3_spill] sm:$0xff] }
 0x37c   :  { %4555 = vst.msk [vmem:[%s10354_s3 + $0x4c0] sm:$0xff] %vm4402_vm1, %v3874_v50 }
 0x37d   :  { %v2523_v7 = vpop.f32.mrb[50].mxu0  ;;  %v9794_v40 = vpop.f32.mrb[50].mxu1 }
 0x37e   :  { %v3879_v60 = vadd.f32 %v9677_v45, %v2523_v7  ;;  %v2525_v24 = vpop.f32.mrb[51].mxu0  ;;  %v9797_v25 = vpop.f32.mrb[51].mxu1 }
 0x380   :  { %4556 = vst.msk [vmem:[%s10354_s3 + $0x4c8] sm:$0xff] %vm4402_vm1, %v3879_v60  ;;  %v10444_v60 = vld [vmem:[#allocation2_spill] sm:$0xff] }
 0x381   :  { %v2528_v43 = vpop.f32.mrb[52].mxu0  ;;  %v9803_v51 = vpop.f32.mrb[52].mxu1 }
 0x382   :  { %v3884_v38 = vadd.f32 %v9689_v31, %v2528_v43  ;;  %v2530_v39 = vpop.f32.mrb[53].mxu0  ;;  %v9806_v62 = vpop.f32.mrb[53].mxu1 }
 0x384   :  { %4557 = vst.msk [vmem:[%s10354_s3 + $0x4d0] sm:$0xff] %vm4402_vm1, %v3884_v38  ;;  %v10445_v38 = vld [vmem:[#allocation5_spill] sm:$0xff] }
 0x385   :  { %v2533_v45 = vpop.f32.mrb[54].mxu0  ;;  %v9812_v5 = vpop.f32.mrb[54].mxu1 }
 0x386   :  { %v3889_v2 = vadd.f32 %v9686_v56, %v2533_v45  ;;  %v2535_v15 = vpop.f32.mrb[55].mxu0  ;;  %v9815_v1 = vpop.f32.mrb[55].mxu1 }
 0x387   :  { %v10446_v15 = vld [vmem:[#allocation4_spill] sm:$0xff] }
 0x388   :  { %4558 = vst.msk [vmem:[%s10354_s3 + $0x4d8] sm:$0xff] %vm4402_vm1, %v3889_v2 }
 0x389   :  { %v2538_v31 = vpop.f32.mrb[56].mxu0  ;;  %v9821_v14 = vpop.f32.mrb[56].mxu1 }
 0x38a   :  { %v3894_v47 = vadd.f32 %v9698_v58, %v2538_v31  ;;  %v2540_v4 = vpop.f32.mrb[57].mxu0  ;;  %v9824_v49 = vpop.f32.mrb[57].mxu1 }
 0x38c   :  { %4559 = vst.msk [vmem:[%s10354_s3 + $0x4e0] sm:$0xff] %vm4402_vm1, %v3894_v47 }
 0x38d   :  { %v2543_v56 = vpop.f32.mrb[58].mxu0  ;;  %v9830_v53 = vpop.f32.mrb[58].mxu1 }
 0x38e   :  { %v3899_v52 = vadd.f32 %v9695_v10, %v2543_v56  ;;  %v2545_v44 = vpop.f32.mrb[59].mxu0  ;;  %v9833_v17 = vpop.f32.mrb[59].mxu1  ;;  %v10447_v56 = vld [vmem:[#allocation7_spill] sm:$0xff] }
 0x390   :  { %4560 = vst.msk [vmem:[%s10354_s3 + $0x4e8] sm:$0xff] %vm4402_vm1, %v3899_v52 }
 0x391   :  { %v2548_v58 = vpop.f32.mrb[60].mxu0  ;;  %v9839_v12 = vpop.f32.mrb[60].mxu1 }
 0x392   :  { %v3904_v13 = vadd.f32 %v9707_v21, %v2548_v58  ;;  %v2550_v37 = vpop.f32.mrb[61].mxu0  ;;  %v9842_v59 = vpop.f32.mrb[61].mxu1 }
 0x394   :  { %4561 = vst.msk [vmem:[%s10354_s3 + $0x4f0] sm:$0xff] %vm4402_vm1, %v3904_v13  ;;  %v10448_v13 = vld [vmem:[#allocation6_spill] sm:$0xff] }
 0x395   :  { %v2553_v10 = vpop.f32.mrb[62].mxu0  ;;  %v9848_v61 = vpop.f32.mrb[62].mxu1 }
 0x396   :  { %v3909_v27 = vadd.f32 %v9704_v55, %v2553_v10  ;;  %v2555_v28 = vpop.f32.mrb[63].mxu0  ;;  %v9851_v63 = vpop.f32.mrb[63].mxu1 }
 0x397   :  { %v10449_v28 = vld [vmem:[#allocation9_spill] sm:$0xff] }
 0x398   :  { %4562 = vst.msk [vmem:[%s10354_s3 + $0x4f8] sm:$0xff] %vm4402_vm1, %v3909_v27 }
 0x399   :  { %v2558_v21 = vpop.f32.mrb[64].mxu0  ;;  %v9857_v57 = vpop.f32.mrb[64].mxu1 }
 0x39a   :  { %v3914_v30 = vadd.f32 %v9716_v33, %v2558_v21  ;;  %v2560_v26 = vpop.f32.mrb[65].mxu0  ;;  %v9860_v0 = vpop.f32.mrb[65].mxu1 }
 0x39c   :  { %4563 = vst.msk [vmem:[%s10354_s3 + $0x500] sm:$0xff] %vm4402_vm1, %v3914_v30 }
 0x39d   :  { %v2563_v55 = vpop.f32.mrb[66].mxu0  ;;  %v5507_v32 = vpop.f32.mrb[66].mxu1 }
 0x39e   :  { %v3919_v3 = vadd.f32 %v9713_v46, %v2563_v55  ;;  %v4089_v50 = vadd.f32 %v5507_v32, %v10443_v9  ;;  %v2565_v19 = vpop.f32.mrb[67].mxu0  ;;  %v4083_v7 = vpop.f32.mrb[67].mxu1  ;;  %v10450_v55 = vld [vmem:[#allocation8_spill] sm:$0xff] }
 0x39f   :  { %v4084_v24 = vadd.f32 %v4083_v7, %v10444_v60 }
 0x3a0   :  { %4564 = vst.msk [vmem:[%s10354_s3 + $0x508] sm:$0xff] %vm4402_vm1, %v3919_v3  ;;  %4598 = vst.msk [vmem:[%s10354_s3 + $0x618] sm:$0xff] %vm4402_vm1, %v4089_v50  ;;  %v10451_v50 = vld [vmem:[#allocation11_spill] sm:$0xff] }
 0x3a1   :  { %4597 = vst.msk [vmem:[%s10354_s3 + $0x610] sm:$0xff] %vm4402_vm1, %v4084_v24  ;;  %v2568_v46 = vpop.f32.mrb[68].mxu0  ;;  %v5510_v33 = vpop.f32.mrb[68].mxu1  ;;  %v10452_v24 = vld [vmem:[#allocation10_spill] sm:$0xff] }
 0x3a2   :  { %v3924_v43 = vadd.f32 %v9725_v35, %v2568_v46  ;;  %v4099_v39 = vadd.f32 %v5510_v33, %v10445_v38  ;;  %v2570_v45 = vpop.f32.mrb[69].mxu0  ;;  %v4093_v2 = vpop.f32.mrb[69].mxu1  ;;  %v10453_v38 = vld [vmem:[#allocation13_spill] sm:$0xff] }
 0x3a3   :  { %v4094_v31 = vadd.f32 %v4093_v2, %v10446_v15  ;;  %v10454_v15 = vld [vmem:[#allocation12_spill] sm:$0xff] }
 0x3a4   :  { %4565 = vst.msk [vmem:[%s10354_s3 + $0x510] sm:$0xff] %vm4402_vm1, %v3924_v43  ;;  %4600 = vst.msk [vmem:[%s10354_s3 + $0x628] sm:$0xff] %vm4402_vm1, %v4099_v39 }
 0x3a5   :  { %4599 = vst.msk [vmem:[%s10354_s3 + $0x620] sm:$0xff] %vm4402_vm1, %v4094_v31  ;;  %v2573_v35 = vpop.f32.mrb[70].mxu0  ;;  %v5513_v47 = vpop.f32.mrb[70].mxu1 }
 0x3a6   :  { %v3929_v4 = vadd.f32 %v9722_v6, %v2573_v35  ;;  %v4109_v52 = vadd.f32 %v5513_v47, %v10447_v56  ;;  %v2575_v44 = vpop.f32.mrb[71].mxu0  ;;  %v4103_v58 = vpop.f32.mrb[71].mxu1 }
 0x3a7   :  { %v4104_v37 = vadd.f32 %v4103_v58, %v10448_v13  ;;  %v10456_v58 = vld [vmem:[#allocation14_spill] sm:$0xff] }
 0x3a8   :  { %4566 = vst.msk [vmem:[%s10354_s3 + $0x518] sm:$0xff] %vm4402_vm1, %v3929_v4  ;;  %4602 = vst.msk [vmem:[%s10354_s3 + $0x638] sm:$0xff] %vm4402_vm1, %v4109_v52  ;;  %v10455_v4 = vld [vmem:[#allocation15_spill] sm:$0xff] }
 0x3a9   :  { %4601 = vst.msk [vmem:[%s10354_s3 + $0x630] sm:$0xff] %vm4402_vm1, %v4104_v37  ;;  %v2578_v6 = vpop.f32.mrb[72].mxu0  ;;  %v5516_v10 = vpop.f32.mrb[72].mxu1 }
 0x3aa   :  { %v3934_v27 = vadd.f32 %v9734_v20, %v2578_v6  ;;  %v4119_v21 = vadd.f32 %v5516_v10, %v10449_v28  ;;  %v2580_v30 = vpop.f32.mrb[73].mxu0  ;;  %v4113_v26 = vpop.f32.mrb[73].mxu1  ;;  %v10457_v10 = vld [vmem:[#allocation17_spill] sm:$0xff] }
 0x3ab   :  { %v4114_v32 = vadd.f32 %v4113_v26, %v10450_v55  ;;  %v10458_v30 = vld [vmem:[#allocation16_spill] sm:$0xff] }
 0x3ac   :  { %4567 = vst.msk [vmem:[%s10354_s3 + $0x520] sm:$0xff] %vm4402_vm1, %v3934_v27  ;;  %4604 = vst.msk [vmem:[%s10354_s3 + $0x648] sm:$0xff] %vm4402_vm1, %v4119_v21 }
 0x3ad   :  { %4603 = vst.msk [vmem:[%s10354_s3 + $0x640] sm:$0xff] %vm4402_vm1, %v4114_v32  ;;  %v2583_v20 = vpop.f32.mrb[74].mxu0  ;;  %v5519_v3 = vpop.f32.mrb[74].mxu1 }
 0x3ae   :  { %v3939_v9 = vadd.f32 %v9731_v23, %v2583_v20  ;;  %v4129_v19 = vadd.f32 %v5519_v3, %v10451_v50  ;;  %v2585_v7 = vpop.f32.mrb[75].mxu0  ;;  %v4123_v60 = vpop.f32.mrb[75].mxu1  ;;  %v10459_v20 = vld [vmem:[#allocation19_spill] sm:$0xff] }
 0x3af   :  { %v4124_v46 = vadd.f32 %v4123_v60, %v10452_v24 }
 0x3b0   :  { %4568 = vst.msk [vmem:[%s10354_s3 + $0x528] sm:$0xff] %vm4402_vm1, %v3939_v9  ;;  %4606 = vst.msk [vmem:[%s10354_s3 + $0x658] sm:$0xff] %vm4402_vm1, %v4129_v19  ;;  %v10460_v19 = vld [vmem:[#allocation18_spill] sm:$0xff] }
 0x3b1   :  { %4605 = vst.msk [vmem:[%s10354_s3 + $0x650] sm:$0xff] %vm4402_vm1, %v4124_v46  ;;  %v2588_v23 = vpop.f32.mrb[76].mxu0  ;;  %v5522_v33 = vpop.f32.mrb[76].mxu1  ;;  %v10461_v46 = vld [vmem:[#allocation21_spill] sm:$0xff] }
 0x3b2   :  { %v3944_v43 = vadd.f32 %v9743_v54, %v2588_v23  ;;  %v4139_v39 = vadd.f32 %v5522_v33, %v10453_v38  ;;  %v2590_v45 = vpop.f32.mrb[77].mxu0  ;;  %v4133_v2 = vpop.f32.mrb[77].mxu1  ;;  %v10462_v38 = vld [vmem:[#allocation20_spill] sm:$0xff] }
 0x3b3   :  { %v4134_v31 = vadd.f32 %v4133_v2, %v10454_v15  ;;  %v10463_v15 = vld [vmem:[#allocation23_spill] sm:$0xff] }
 0x3b4   :  { %4569 = vst.msk [vmem:[%s10354_s3 + $0x530] sm:$0xff] %vm4402_vm1, %v3944_v43  ;;  %4608 = vst.msk [vmem:[%s10354_s3 + $0x668] sm:$0xff] %vm4402_vm1, %v4139_v39 }
 0x3b5   :  { %4607 = vst.msk [vmem:[%s10354_s3 + $0x660] sm:$0xff] %vm4402_vm1, %v4134_v31  ;;  %v2593_v54 = vpop.f32.mrb[78].mxu0  ;;  %v5525_v35 = vpop.f32.mrb[78].mxu1 }
 0x3b6   :  { %v3949_v47 = vadd.f32 %v9740_v8, %v2593_v54  ;;  %v4149_v56 = vadd.f32 %v5525_v35, %v10455_v4  ;;  %v2595_v52 = vpop.f32.mrb[79].mxu0  ;;  %v4143_v44 = vpop.f32.mrb[79].mxu1 }
 0x3b7   :  { %v4144_v13 = vadd.f32 %v4143_v44, %v10456_v58  ;;  %v10465_v44 = vld [vmem:[#allocation25_spill] sm:$0xff] }
 0x3b8   :  { %4570 = vst.msk [vmem:[%s10354_s3 + $0x538] sm:$0xff] %vm4402_vm1, %v3949_v47  ;;  %4610 = vst.msk [vmem:[%s10354_s3 + $0x678] sm:$0xff] %vm4402_vm1, %v4149_v56  ;;  %v10464_v47 = vld [vmem:[#allocation22_spill] sm:$0xff] }
 0x3b9   :  { %4609 = vst.msk [vmem:[%s10354_s3 + $0x670] sm:$0xff] %vm4402_vm1, %v4144_v13  ;;  %v2598_v8 = vpop.f32.mrb[80].mxu0  ;;  %v5528_v37 = vpop.f32.mrb[80].mxu1 }
 0x3ba   :  { %v3954_v6 = vadd.f32 %v9752_v34, %v2598_v8  ;;  %v4159_v27 = vadd.f32 %v5528_v37, %v10457_v10  ;;  %v2600_v28 = vpop.f32.mrb[81].mxu0  ;;  %v4153_v21 = vpop.f32.mrb[81].mxu1  ;;  %v10466_v37 = vld [vmem:[#allocation24_spill] sm:$0xff] }
 0x3bb   :  { %v4154_v26 = vadd.f32 %v4153_v21, %v10458_v30  ;;  %v10467_v28 = vld [vmem:[#allocation27_spill] sm:$0xff] }
 0x3bc   :  { %4571 = vst.msk [vmem:[%s10354_s3 + $0x540] sm:$0xff] %vm4402_vm1, %v3954_v6  ;;  %4612 = vst.msk [vmem:[%s10354_s3 + $0x688] sm:$0xff] %vm4402_vm1, %v4159_v27 }
 0x3bd   :  { %4611 = vst.msk [vmem:[%s10354_s3 + $0x680] sm:$0xff] %vm4402_vm1, %v4154_v26  ;;  %v2603_v34 = vpop.f32.mrb[82].mxu0  ;;  %v5531_v55 = vpop.f32.mrb[82].mxu1 }
 0x3be   :  { %v3959_v32 = vadd.f32 %v9749_v42, %v2603_v34  ;;  %v4169_v3 = vadd.f32 %v5531_v55, %v10459_v20  ;;  %v2605_v9 = vpop.f32.mrb[83].mxu0  ;;  %v4163_v50 = vpop.f32.mrb[83].mxu1  ;;  %v10468_v34 = vld [vmem:[#allocation26_spill] sm:$0xff] }
 0x3bf   :  { %v4164_v7 = vadd.f32 %v4163_v50, %v10460_v19 }
 0x3c0   :  { %4572 = vst.msk [vmem:[%s10354_s3 + $0x548] sm:$0xff] %vm4402_vm1, %v3959_v32  ;;  %4614 = vst.msk [vmem:[%s10354_s3 + $0x698] sm:$0xff] %vm4402_vm1, %v4169_v3  ;;  %v10469_v3 = vld [vmem:[#allocation29_spill] sm:$0xff] }
 0x3c1   :  { %4613 = vst.msk [vmem:[%s10354_s3 + $0x690] sm:$0xff] %vm4402_vm1, %v4164_v7  ;;  %v2608_v42 = vpop.f32.mrb[84].mxu0  ;;  %v5534_v60 = vpop.f32.mrb[84].mxu1  ;;  %v10470_v7 = vld [vmem:[#allocation28_spill] sm:$0xff] }
 0x3c2   :  { %v3964_v24 = vadd.f32 %v9761_v29, %v2608_v42  ;;  %v4179_v23 = vadd.f32 %v5534_v60, %v10461_v46  ;;  %v2610_v33 = vpop.f32.mrb[85].mxu0  ;;  %v4173_v43 = vpop.f32.mrb[85].mxu1  ;;  %v10471_v46 = vld [vmem:[#allocation31_spill] sm:$0xff] }
 0x3c3   :  { %v4174_v39 = vadd.f32 %v4173_v43, %v10462_v38  ;;  %v10472_v38 = vld [vmem:[#allocation30_spill] sm:$0xff] }
 0x3c4   :  { %4573 = vst.msk [vmem:[%s10354_s3 + $0x550] sm:$0xff] %vm4402_vm1, %v3964_v24  ;;  %4616 = vst.msk [vmem:[%s10354_s3 + $0x6a8] sm:$0xff] %vm4402_vm1, %v4179_v23 }
 0x3c5   :  { %4615 = vst.msk [vmem:[%s10354_s3 + $0x6a0] sm:$0xff] %vm4402_vm1, %v4174_v39  ;;  %v2613_v29 = vpop.f32.mrb[86].mxu0  ;;  %v5537_v45 = vpop.f32.mrb[86].mxu1 }
 0x3c6   :  { %v3969_v2 = vadd.f32 %v9758_v18, %v2613_v29  ;;  %v4189_v31 = vadd.f32 %v5537_v45, %v10463_v15  ;;  %v2615_v54 = vpop.f32.mrb[87].mxu0  ;;  %v4183_v35 = vpop.f32.mrb[87].mxu1 }
 0x3c7   :  { %v4184_v4 = vadd.f32 %v4183_v35, %v10464_v47  ;;  %v10474_v35 = vld [vmem:[#allocation32_spill] sm:$0xff] }
 0x3c8   :  { %4574 = vst.msk [vmem:[%s10354_s3 + $0x558] sm:$0xff] %vm4402_vm1, %v3969_v2  ;;  %4618 = vst.msk [vmem:[%s10354_s3 + $0x6b8] sm:$0xff] %vm4402_vm1, %v4189_v31  ;;  %v10473_v2 = vld [vmem:[#allocation33_spill] sm:$0xff] }
 0x3c9   :  { %4617 = vst.msk [vmem:[%s10354_s3 + $0x6b0] sm:$0xff] %vm4402_vm1, %v4184_v4  ;;  %v2618_v18 = vpop.f32.mrb[88].mxu0  ;;  %v5540_v56 = vpop.f32.mrb[88].mxu1 }
 0x3ca   :  { %v3974_v52 = vadd.f32 %v9770_v36, %v2618_v18  ;;  %v4199_v58 = vadd.f32 %v5540_v56, %v10465_v44  ;;  %v2620_v13 = vpop.f32.mrb[89].mxu0  ;;  %v4193_v8 = vpop.f32.mrb[89].mxu1  ;;  %v10475_v56 = vld [vmem:[#allocation35_spill] sm:$0xff] }
 0x3cb   :  { %v4194_v6 = vadd.f32 %v4193_v8, %v10466_v37  ;;  %v10476_v13 = vld [vmem:[#allocation34_spill] sm:$0xff] }
 0x3cc   :  { %4575 = vst.msk [vmem:[%s10354_s3 + $0x560] sm:$0xff] %vm4402_vm1, %v3974_v52  ;;  %4620 = vst.msk [vmem:[%s10354_s3 + $0x6c8] sm:$0xff] %vm4402_vm1, %v4199_v58 }
 0x3cd   :  { %4619 = vst.msk [vmem:[%s10354_s3 + $0x6c0] sm:$0xff] %vm4402_vm1, %v4194_v6  ;;  %v2623_v36 = vpop.f32.mrb[90].mxu0  ;;  %v5543_v10 = vpop.f32.mrb[90].mxu1 }
 0x3ce   :  { %v3979_v27 = vadd.f32 %v9767_v22, %v2623_v36  ;;  %v4209_v21 = vadd.f32 %v5543_v10, %v10467_v28  ;;  %v2625_v30 = vpop.f32.mrb[91].mxu0  ;;  %v4203_v26 = vpop.f32.mrb[91].mxu1  ;;  %v10477_v36 = vld [vmem:[#allocation37_spill] sm:$0xff] }
 0x3cf   :  { %v4204_v55 = vadd.f32 %v4203_v26, %v10468_v34 }
 0x3d0   :  { %4576 = vst.msk [vmem:[%s10354_s3 + $0x568] sm:$0xff] %vm4402_vm1, %v3979_v27  ;;  %4622 = vst.msk [vmem:[%s10354_s3 + $0x6d8] sm:$0xff] %vm4402_vm1, %v4209_v21  ;;  %v10478_v21 = vld [vmem:[#allocation36_spill] sm:$0xff] }
 0x3d1   :  { %4621 = vst.msk [vmem:[%s10354_s3 + $0x6d0] sm:$0xff] %vm4402_vm1, %v4204_v55  ;;  %v2628_v22 = vpop.f32.mrb[92].mxu0  ;;  %v5546_v32 = vpop.f32.mrb[92].mxu1  ;;  %v10479_v55 = vld [vmem:[#allocation39_spill] sm:$0xff] }
 0x3d2   :  { %v3984_v20 = vadd.f32 %v9779_v11, %v2628_v22  ;;  %v4219_v9 = vadd.f32 %v5546_v32, %v10469_v3  ;;  %v2630_v50 = vpop.f32.mrb[93].mxu0  ;;  %v4213_v19 = vpop.f32.mrb[93].mxu1  ;;  %v10480_v3 = vld [vmem:[#allocation38_spill] sm:$0xff] }
 0x3d3   :  { %v4214_v42 = vadd.f32 %v4213_v19, %v10470_v7  ;;  %v10481_v7 = vld [vmem:[#allocation41_spill] sm:$0xff] }
 0x3d4   :  { %4577 = vst.msk [vmem:[%s10354_s3 + $0x570] sm:$0xff] %vm4402_vm1, %v3984_v20  ;;  %4624 = vst.msk [vmem:[%s10354_s3 + $0x6e8] sm:$0xff] %vm4402_vm1, %v4219_v9 }
 0x3d5   :  { %4623 = vst.msk [vmem:[%s10354_s3 + $0x6e0] sm:$0xff] %vm4402_vm1, %v4214_v42  ;;  %v2633_v11 = vpop.f32.mrb[94].mxu0  ;;  %v5549_v60 = vpop.f32.mrb[94].mxu1 }
 0x3d6   :  { %v3989_v24 = vadd.f32 %v9776_v16, %v2633_v11  ;;  %v4229_v23 = vadd.f32 %v5549_v60, %v10471_v46  ;;  %v2635_v33 = vpop.f32.mrb[95].mxu0  ;;  %v4223_v43 = vpop.f32.mrb[95].mxu1 }
 0x3d7   :  { %v4224_v39 = vadd.f32 %v4223_v43, %v10472_v38  ;;  %v10483_v43 = vld [vmem:[#allocation43_spill] sm:$0xff] }
 0x3d8   :  { %4578 = vst.msk [vmem:[%s10354_s3 + $0x578] sm:$0xff] %vm4402_vm1, %v3989_v24  ;;  %4626 = vst.msk [vmem:[%s10354_s3 + $0x6f8] sm:$0xff] %vm4402_vm1, %v4229_v23  ;;  %v10482_v24 = vld [vmem:[#allocation40_spill] sm:$0xff] }
 0x3d9   :  { %4625 = vst.msk [vmem:[%s10354_s3 + $0x6f0] sm:$0xff] %vm4402_vm1, %v4224_v39  ;;  %v2638_v16 = vpop.f32.mrb[96].mxu0  ;;  %v5552_v29 = vpop.f32.mrb[96].mxu1 }
 0x3da   :  { %v3994_v45 = vadd.f32 %v9788_v41, %v2638_v16  ;;  %v4239_v15 = vadd.f32 %v5552_v29, %v10473_v2  ;;  %v2640_v31 = vpop.f32.mrb[97].mxu0  ;;  %v4233_v54 = vpop.f32.mrb[97].mxu1  ;;  %v10484_v29 = vld [vmem:[#allocation42_spill] sm:$0xff] }
 0x3db   :  { %v4234_v47 = vadd.f32 %v4233_v54, %v10474_v35  ;;  %v10485_v31 = vld [vmem:[#allocation45_spill] sm:$0xff] }
 0x3dc   :  { %4579 = vst.msk [vmem:[%s10354_s3 + $0x580] sm:$0xff] %vm4402_vm1, %v3994_v45  ;;  %4628 = vst.msk [vmem:[%s10354_s3 + $0x708] sm:$0xff] %vm4402_vm1, %v4239_v15 }
 0x3dd   :  { %4627 = vst.msk [vmem:[%s10354_s3 + $0x700] sm:$0xff] %vm4402_vm1, %v4234_v47  ;;  %v2643_v41 = vpop.f32.mrb[98].mxu0  ;;  %v5555_v4 = vpop.f32.mrb[98].mxu1 }
 0x3de   :  { %v3999_v18 = vadd.f32 %v9785_v48, %v2643_v41  ;;  %v4249_v52 = vadd.f32 %v5555_v4, %v10475_v56  ;;  %v2645_v44 = vpop.f32.mrb[99].mxu0  ;;  %v4243_v58 = vpop.f32.mrb[99].mxu1  ;;  %v10486_v41 = vld [vmem:[#allocation44_spill] sm:$0xff] }
 0x3df   :  { %v4244_v8 = vadd.f32 %v4243_v58, %v10476_v13 }
 0x3e0   :  { %4580 = vst.msk [vmem:[%s10354_s3 + $0x588] sm:$0xff] %vm4402_vm1, %v3999_v18  ;;  %4630 = vst.msk [vmem:[%s10354_s3 + $0x718] sm:$0xff] %vm4402_vm1, %v4249_v52  ;;  %v10487_v52 = vld [vmem:[#allocation47_spill] sm:$0xff] }
 0x3e1   :  { %4629 = vst.msk [vmem:[%s10354_s3 + $0x710] sm:$0xff] %vm4402_vm1, %v4244_v8  ;;  %v2648_v48 = vpop.f32.mrb[100].mxu0  ;;  %v5558_v37 = vpop.f32.mrb[100].mxu1  ;;  %v10488_v8 = vld [vmem:[#allocation46_spill] sm:$0xff] }
 0x3e2   :  { %v4004_v6 = vadd.f32 %v9797_v25, %v2648_v48  ;;  %v4259_v10 = vadd.f32 %v5558_v37, %v10477_v36  ;;  %v2650_v27 = vpop.f32.mrb[101].mxu0  ;;  %v4253_v28 = vpop.f32.mrb[101].mxu1  ;;  %v10489_v36 = vld [vmem:[#allocation49_spill] sm:$0xff] }
 0x3e3   :  { %v4254_v30 = vadd.f32 %v4253_v28, %v10478_v21  ;;  %v10490_v21 = vld [vmem:[#allocation48_spill] sm:$0xff] }
 0x3e4   :  { %4581 = vst.msk [vmem:[%s10354_s3 + $0x590] sm:$0xff] %vm4402_vm1, %v4004_v6  ;;  %4632 = vst.msk [vmem:[%s10354_s3 + $0x728] sm:$0xff] %vm4402_vm1, %v4259_v10 }
 0x3e5   :  { %4631 = vst.msk [vmem:[%s10354_s3 + $0x720] sm:$0xff] %vm4402_vm1, %v4254_v30  ;;  %v2653_v25 = vpop.f32.mrb[102].mxu0  ;;  %v5561_v26 = vpop.f32.mrb[102].mxu1 }
 0x3e6   :  { %v4009_v34 = vadd.f32 %v9794_v40, %v2653_v25  ;;  %v4269_v22 = vadd.f32 %v5561_v26, %v10479_v55  ;;  %v2655_v32 = vpop.f32.mrb[103].mxu0  ;;  %v4263_v20 = vpop.f32.mrb[103].mxu1 }
 0x3e7   :  { %v4264_v9 = vadd.f32 %v4263_v20, %v10480_v3  ;;  %v10492_v20 = vld [vmem:[#allocation50_spill] sm:$0xff] }
 0x3e8   :  { %4582 = vst.msk [vmem:[%s10354_s3 + $0x598] sm:$0xff] %vm4402_vm1, %v4009_v34  ;;  %4634 = vst.msk [vmem:[%s10354_s3 + $0x738] sm:$0xff] %vm4402_vm1, %v4269_v22  ;;  %v10491_v34 = vld [vmem:[#allocation51_spill] sm:$0xff] }
 0x3e9   :  { %4633 = vst.msk [vmem:[%s10354_s3 + $0x730] sm:$0xff] %vm4402_vm1, %v4264_v9  ;;  %v2658_v40 = vpop.f32.mrb[104].mxu0  ;;  %v5564_v50 = vpop.f32.mrb[104].mxu1 }
 0x3ea   :  { %v4014_v19 = vadd.f32 %v9806_v62, %v2658_v40  ;;  %v4279_v42 = vadd.f32 %v5564_v50, %v10481_v7  ;;  %v2660_v11 = vpop.f32.mrb[105].mxu0  ;;  %v4273_v60 = vpop.f32.mrb[105].mxu1  ;;  %v10493_v50 = vld [vmem:[#allocation53_spill] sm:$0xff] }
 0x3eb   :  { %v4274_v46 = vadd.f32 %v4273_v60, %v10482_v24  ;;  %v10494_v11 = vld [vmem:[#allocation52_spill] sm:$0xff] }
 0x3ec   :  { %4583 = vst.msk [vmem:[%s10354_s3 + $0x5a0] sm:$0xff] %vm4402_vm1, %v4014_v19  ;;  %4636 = vst.msk [vmem:[%s10354_s3 + $0x748] sm:$0xff] %vm4402_vm1, %v4279_v42 }
 0x3ed   :  { %4635 = vst.msk [vmem:[%s10354_s3 + $0x740] sm:$0xff] %vm4402_vm1, %v4274_v46  ;;  %v2663_v62 = vpop.f32.mrb[106].mxu0  ;;  %v5567_v23 = vpop.f32.mrb[106].mxu1 }
 0x3ee   :  { %v4019_v33 = vadd.f32 %v9803_v51, %v2663_v62  ;;  %v4289_v38 = vadd.f32 %v5567_v23, %v10483_v43  ;;  %v2665_v39 = vpop.f32.mrb[107].mxu0  ;;  %v4283_v16 = vpop.f32.mrb[107].mxu1  ;;  %v10495_v62 = vld [vmem:[#allocation56_spill] sm:$0xff] }
 0x3ef   :  { %v4284_v45 = vadd.f32 %v4283_v16, %v10484_v29 }
 0x3f0   :  { %4584 = vst.msk [vmem:[%s10354_s3 + $0x5a8] sm:$0xff] %vm4402_vm1, %v4019_v33  ;;  %4638 = vst.msk [vmem:[%s10354_s3 + $0x758] sm:$0xff] %vm4402_vm1, %v4289_v38  ;;  %v10496_v38 = vld [vmem:[#allocation55_spill] sm:$0xff] }
 0x3f1   :  { %4637 = vst.msk [vmem:[%s10354_s3 + $0x750] sm:$0xff] %vm4402_vm1, %v4284_v45  ;;  %v2668_v51 = vpop.f32.mrb[108].mxu0  ;;  %v5570_v2 = vpop.f32.mrb[108].mxu1  ;;  %v10497_v45 = vld [vmem:[#allocation60_spill] sm:$0xff] }
 0x3f2   :  { %v4024_v15 = vadd.f32 %v9815_v1, %v2668_v51  ;;  %v4299_v54 = vadd.f32 %v5570_v2, %v10485_v31  ;;  %v2670_v35 = vpop.f32.mrb[109].mxu0  ;;  %v4293_v47 = vpop.f32.mrb[109].mxu1  ;;  %v10498_v31 = vld [vmem:[#allocation58_spill] sm:$0xff] }
 0x3f3   :  { %v4294_v4 = vadd.f32 %v4293_v47, %v10486_v41  ;;  %v10499_v41 = vld [vmem:[#allocation64_spill] sm:$0xff] }
 0x3f4   :  { %4585 = vst.msk [vmem:[%s10354_s3 + $0x5b0] sm:$0xff] %vm4402_vm1, %v4024_v15  ;;  %4640 = vst.msk [vmem:[%s10354_s3 + $0x768] sm:$0xff] %vm4402_vm1, %v4299_v54 }
 0x3f5   :  { %4639 = vst.msk [vmem:[%s10354_s3 + $0x760] sm:$0xff] %vm4402_vm1, %v4294_v4  ;;  %v2673_v1 = vpop.f32.mrb[110].mxu0  ;;  %v5573_v18 = vpop.f32.mrb[110].mxu1 }
 0x3f6   :  { %v4029_v56 = vadd.f32 %v9812_v5, %v2673_v1  ;;  %v4309_v44 = vadd.f32 %v5573_v18, %v10487_v52  ;;  %v2675_v58 = vpop.f32.mrb[111].mxu0  ;;  %v4303_v13 = vpop.f32.mrb[111].mxu1 }
 0x3f7   :  { %v4304_v48 = vadd.f32 %v4303_v13, %v10488_v8  ;;  %v10501_v13 = vld [vmem:[#allocation68_spill] sm:$0xff] }
 0x3f8   :  { %4586 = vst.msk [vmem:[%s10354_s3 + $0x5b8] sm:$0xff] %vm4402_vm1, %v4029_v56  ;;  %4642 = vst.msk [vmem:[%s10354_s3 + $0x778] sm:$0xff] %vm4402_vm1, %v4309_v44  ;;  %v10500_v56 = vld [vmem:[#allocation62_spill] sm:$0xff] }
 0x3f9   :  { %4641 = vst.msk [vmem:[%s10354_s3 + $0x770] sm:$0xff] %vm4402_vm1, %v4304_v48  ;;  %v2678_v5 = vpop.f32.mrb[112].mxu0  ;;  %v5576_v37 = vpop.f32.mrb[112].mxu1 }
 0x3fa   :  { %v4034_v6 = vadd.f32 %v9824_v49, %v2678_v5  ;;  %v4319_v10 = vadd.f32 %v5576_v37, %v10489_v36  ;;  %v2680_v27 = vpop.f32.mrb[113].mxu0  ;;  %v4313_v28 = vpop.f32.mrb[113].mxu1  ;;  %v10502_v37 = vld [vmem:[#allocation66_spill] sm:$0xff] }
 0x3fb   :  { %v4314_v30 = vadd.f32 %v4313_v28, %v10490_v21  ;;  %v10503_v27 = vld [vmem:[#allocation72_spill] sm:$0xff] }
 0x3fc   :  { %4587 = vst.msk [vmem:[%s10354_s3 + $0x5c0] sm:$0xff] %vm4402_vm1, %v4034_v6  ;;  %4644 = vst.msk [vmem:[%s10354_s3 + $0x788] sm:$0xff] %vm4402_vm1, %v4319_v10 }
 0x3fd   :  { %4643 = vst.msk [vmem:[%s10354_s3 + $0x780] sm:$0xff] %vm4402_vm1, %v4314_v30  ;;  %v2683_v49 = vpop.f32.mrb[114].mxu0  ;;  %v5579_v25 = vpop.f32.mrb[114].mxu1 }
 0x3fe   :  { %v4039_v26 = vadd.f32 %v9821_v14, %v2683_v49  ;;  %v4329_v55 = vadd.f32 %v5579_v25, %v10491_v34  ;;  %v2685_v22 = vpop.f32.mrb[115].mxu0  ;;  %v4323_v32 = vpop.f32.mrb[115].mxu1  ;;  %v10504_v49 = vld [vmem:[#allocation70_spill] sm:$0xff] }
 0x3ff   :  { %v4324_v3 = vadd.f32 %v4323_v32, %v10492_v20 }
 0x400   :  { %4588 = vst.msk [vmem:[%s10354_s3 + $0x5c8] sm:$0xff] %vm4402_vm1, %v4039_v26  ;;  %4646 = vst.msk [vmem:[%s10354_s3 + $0x798] sm:$0xff] %vm4402_vm1, %v4329_v55  ;;  %v10505_v55 = vld [vmem:[#allocation76_spill] sm:$0xff] }
 0x401   :  { %4645 = vst.msk [vmem:[%s10354_s3 + $0x790] sm:$0xff] %vm4402_vm1, %v4324_v3  ;;  %v2688_v14 = vpop.f32.mrb[116].mxu0  ;;  %v5582_v9 = vpop.f32.mrb[116].mxu1  ;;  %v10506_v3 = vld [vmem:[#allocation74_spill] sm:$0xff] }
 0x402   :  { %v4044_v40 = vadd.f32 %v9833_v17, %v2688_v14  ;;  %v4339_v19 = vadd.f32 %v5582_v9, %v10493_v50  ;;  %v2690_v7 = vpop.f32.mrb[117].mxu0  ;;  %v4333_v42 = vpop.f32.mrb[117].mxu1 }
 0x403   :  { %v4334_v60 = vadd.f32 %v4333_v42, %v10494_v11 }
 0x404   :  { %4589 = vst.msk [vmem:[%s10354_s3 + $0x5d0] sm:$0xff] %vm4402_vm1, %v4044_v40  ;;  %4648 = vst.msk [vmem:[%s10354_s3 + $0x7a8] sm:$0xff] %vm4402_vm1, %v4339_v19 }
 0x405   :  { %4647 = vst.msk [vmem:[%s10354_s3 + $0x7a0] sm:$0xff] %vm4402_vm1, %v4334_v60  ;;  %v2693_v17 = vpop.f32.mrb[118].mxu0  ;;  %v5585_v24 = vpop.f32.mrb[118].mxu1 }
 0x406   :  { %v4049_v46 = vadd.f32 %v9830_v53, %v2693_v17  ;;  %v4349_v23 = vadd.f32 %v5585_v24, %v10495_v62  ;;  %v2695_v33 = vpop.f32.mrb[119].mxu0  ;;  %v4343_v43 = vpop.f32.mrb[119].mxu1 }
 0x407   :  { %v4344_v39 = vadd.f32 %v4343_v43, %v10496_v38 }
 0x408   :  { %4590 = vst.msk [vmem:[%s10354_s3 + $0x5d8] sm:$0xff] %vm4402_vm1, %v4049_v46  ;;  %4650 = vst.msk [vmem:[%s10354_s3 + $0x7b8] sm:$0xff] %vm4402_vm1, %v4349_v23 }
 0x409   :  { %4649 = vst.msk [vmem:[%s10354_s3 + $0x7b0] sm:$0xff] %vm4402_vm1, %v4344_v39  ;;  %v2698_v53 = vpop.f32.mrb[120].mxu0  ;;  %v5588_v16 = vpop.f32.mrb[120].mxu1 }
 0x40a   :  { %v4054_v29 = vadd.f32 %v9842_v59, %v2698_v53  ;;  %v4359_v51 = vadd.f32 %v5588_v16, %v10497_v45  ;;  %v2700_v2 = vpop.f32.mrb[121].mxu0  ;;  %v4353_v15 = vpop.f32.mrb[121].mxu1 }
 0x40b   :  { %v4354_v54 = vadd.f32 %v4353_v15, %v10498_v31 }
 0x40c   :  { %4591 = vst.msk [vmem:[%s10354_s3 + $0x5e0] sm:$0xff] %vm4402_vm1, %v4054_v29  ;;  %4652 = vst.msk [vmem:[%s10354_s3 + $0x7c8] sm:$0xff] %vm4402_vm1, %v4359_v51 }
 0x40d   :  { %4651 = vst.msk [vmem:[%s10354_s3 + $0x7c0] sm:$0xff] %vm4402_vm1, %v4354_v54  ;;  %v2703_v59 = vpop.f32.mrb[122].mxu0  ;;  %v5591_v35 = vpop.f32.mrb[122].mxu1 }
 0x40e   :  { %v4059_v47 = vadd.f32 %v9839_v12, %v2703_v59  ;;  %v4369_v4 = vadd.f32 %v5591_v35, %v10499_v41  ;;  %v2705_v1 = vpop.f32.mrb[123].mxu0  ;;  %v4363_v18 = vpop.f32.mrb[123].mxu1 }
 0x40f   :  { %v4364_v52 = vadd.f32 %v4363_v18, %v10500_v56 }
 0x410   :  { %4592 = vst.msk [vmem:[%s10354_s3 + $0x5e8] sm:$0xff] %vm4402_vm1, %v4059_v47  ;;  %4654 = vst.msk [vmem:[%s10354_s3 + $0x7d8] sm:$0xff] %vm4402_vm1, %v4369_v4 }
 0x411   :  { %4653 = vst.msk [vmem:[%s10354_s3 + $0x7d0] sm:$0xff] %vm4402_vm1, %v4364_v52  ;;  %v2708_v12 = vpop.f32.mrb[124].mxu0  ;;  %v5594_v44 = vpop.f32.mrb[124].mxu1 }
 0x412   :  { %v4064_v58 = vadd.f32 %v9851_v63, %v2708_v12  ;;  %v4379_v8 = vadd.f32 %v5594_v44, %v10501_v13  ;;  %v2710_v48 = vpop.f32.mrb[125].mxu0  ;;  %v4373_v5 = vpop.f32.mrb[125].mxu1 }
 0x413   :  { %v4374_v6 = vadd.f32 %v4373_v5, %v10502_v37 }
 0x414   :  { %4593 = vst.msk [vmem:[%s10354_s3 + $0x5f0] sm:$0xff] %vm4402_vm1, %v4064_v58  ;;  %4656 = vst.msk [vmem:[%s10354_s3 + $0x7e8] sm:$0xff] %vm4402_vm1, %v4379_v8 }
 0x415   :  { %4655 = vst.msk [vmem:[%s10354_s3 + $0x7e0] sm:$0xff] %vm4402_vm1, %v4374_v6  ;;  %v2713_v63 = vpop.f32.mrb[126].mxu0  ;;  %v5597_v36 = vpop.f32.mrb[126].mxu1 }
 0x416   :  { %v4069_v10 = vadd.f32 %v9848_v61, %v2713_v63  ;;  %v4389_v28 = vadd.f32 %v5597_v36, %v10503_v27  ;;  %v2715_v21 = vpop.f32.mrb[127].mxu0  ;;  %v4383_v30 = vpop.f32.mrb[127].mxu1 }
 0x417   :  { %v4384_v25 = vadd.f32 %v4383_v30, %v10504_v49 }
 0x418   :  { %4594 = vst.msk [vmem:[%s10354_s3 + $0x5f8] sm:$0xff] %vm4402_vm1, %v4069_v10  ;;  %4658 = vst.msk [vmem:[%s10354_s3 + $0x7f8] sm:$0xff] %vm4402_vm1, %v4389_v28 }
 0x419   :  { %4657 = vst.msk [vmem:[%s10354_s3 + $0x7f0] sm:$0xff] %vm4402_vm1, %v4384_v25  ;;  %v2718_v61 = vpop.f32.mrb[128].mxu0  ;;  %v5600_v26 = vpop.f32.mrb[128].mxu1 }
 0x41a   :  { %v4074_v34 = vadd.f32 %v9860_v0, %v2718_v61  ;;  %v4399_v22 = vadd.f32 %v5600_v26, %v10505_v55  ;;  %v2720_v32 = vpop.f32.mrb[129].mxu0  ;;  %v4393_v20 = vpop.f32.mrb[129].mxu1 }
 0x41b   :  { %v4394_v14 = vadd.f32 %v4393_v20, %v10506_v3 }
 0x41c   :  { %4595 = vst.msk [vmem:[%s10354_s3 + $0x600] sm:$0xff] %vm4402_vm1, %v4074_v34  ;;  %4660 = vst.msk [vmem:[%s10354_s3 + $0x808] sm:$0xff] %vm4402_vm1, %v4399_v22 }
 0x41d   :  { %4659 = vst.msk [vmem:[%s10354_s3 + $0x800] sm:$0xff] %vm4402_vm1, %v4394_v14  ;;  %v2723_v0 = vpop.f32.mrb[130].mxu0 }
 0x41e   :  { %v4079_v9 = vadd.f32 %v9857_v57, %v2723_v0  ;;  %v2725_v40 = vpop.f32.mrb[131].mxu0 }
 0x420   :  { %4596 = vst.msk [vmem:[%s10354_s3 + $0x608] sm:$0xff] %vm4402_vm1, %v4079_v9 }

</bundles_post_ra>
